<compile_context>
chip_gen: v7x
topology: tpu7x:2x2x1
jax: 0.10.0
libtpu: 0.0.40
codegen_flags: <defaults>
</compile_context>

<pallas_src>
import functools

import jax
import jax.numpy as jnp
from jax.experimental import pallas as pl
from jax.experimental.pallas import tpu as pltpu


_VMEM_LIMIT = 32 * 1024 * 1024   # safe scoped limit on v5e/v6e/v7x
_BN_EPS = 1e-5
_LRELU_SLOPE = 0.2


def _round_up(x, m):
    return (x + m - 1) // m * m


def _pad_channels(c):
    # Lane padding: 128 always works (v5e MXU is 128-wide); for realistic channel
    # counts (>128) pad to 256 so the 2x256x256 MXU on v6e/v7x stays fully fed.
    return _round_up(c, 256) if c > 128 else 128


# ----------------------------- Pallas kernels --------------------------------


def _matmul_act_kernel(p_ref, w_ref, o_ref, *, act):
    """Conv-as-matmul tile + activation (layers without BatchNorm)."""
    y = jnp.dot(p_ref[...], w_ref[...], preferred_element_type=jnp.float32)
    if act == "lrelu":
        y = jnp.where(y > 0, y, _LRELU_SLOPE * y)
    elif act == "sigmoid":
        # Numerically-stable sigmoid; exp runs on the EUP.
        ey = jnp.exp(-jnp.abs(y))
        y = jnp.where(y >= 0, 1.0 / (1.0 + ey), ey / (1.0 + ey))
    o_ref[...] = y.astype(o_ref.dtype)


def _conv_bn_lrelu_kernel(p_ref, w_ref, gb_ref, o_ref,
                          y_scr, sum_scr, ssq_scr, sc_scr, sh_scr,
                          *, tm, inv_m):
    """Fused conv-matmul + train-mode BatchNorm + LeakyReLU.

    grid = (2, n_m_tiles); both axes sequential ("arbitrary").
      phase 0: matmul tile -> f32 y kept in VMEM scratch + accumulate stats.
      phase 1: fold stats into scale/shift once, then normalize + LeakyReLU
               every tile from the VMEM scratch and write the bf16 output.
    """
    phase = pl.program_id(0)
    i = pl.program_id(1)
    row = pl.multiple_of(i * tm, tm)

    @pl.when(phase == 0)
    def _():
        @pl.when(i == 0)
        def _():
            sum_scr[...] = jnp.zeros_like(sum_scr)
            ssq_scr[...] = jnp.zeros_like(ssq_scr)

        y = jnp.dot(p_ref[...], w_ref[...], preferred_element_type=jnp.float32)
        y_scr[pl.ds(row, tm), :] = y
        sum_scr[...] += jnp.sum(y, axis=0, keepdims=True)
        # TODO(synk): E[y^2]-E[y]^2 in f32 can lose precision for large means;
        # a shifted/Welford accumulation would be more robust.
        ssq_scr[...] += jnp.sum(y * y, axis=0, keepdims=True)

    @pl.when(phase == 1)
    def _():
        @pl.when(i == 0)
        def _():
            mean = sum_scr[...] * inv_m
            var = jnp.maximum(ssq_scr[...] * inv_m - mean * mean, 0.0)
            scale = gb_ref[0:1, :] * jax.lax.rsqrt(var + _BN_EPS)
            sc_scr[...] = scale
            sh_scr[...] = gb_ref[1:2, :] - mean * scale

        y = y_scr[pl.ds(row, tm), :]
        y = y * sc_scr[...] + sh_scr[...]
        o_ref[...] = jnp.where(y > 0, y, _LRELU_SLOPE * y).astype(o_ref.dtype)


# --------------------------- pallas_call wrappers -----------------------------


def _compiler_params(semantics):
    return pltpu.CompilerParams(
        dimension_semantics=semantics,
        vmem_limit_bytes=_VMEM_LIMIT,
    )


def conv_matmul_act(patches, w_mat, act, tm, out_dtype):
    m_pad, k_pad = patches.shape
    c_pad = w_mat.shape[1]
    return pl.pallas_call(
        functools.partial(_matmul_act_kernel, act=act),
        out_shape=jax.ShapeDtypeStruct((m_pad, c_pad), out_dtype),
        grid_spec=pltpu.PrefetchScalarGridSpec(
            num_scalar_prefetch=0,
            grid=(m_pad // tm,),
            in_specs=[
                pl.BlockSpec((tm, k_pad), lambda i: (i, 0)),
                pl.BlockSpec((k_pad, c_pad), lambda i: (0, 0)),
            ],
            out_specs=pl.BlockSpec((tm, c_pad), lambda i: (i, 0)),
        ),
        compiler_params=_compiler_params(("parallel",)),
    )(patches, w_mat)


def conv_bn_lrelu(patches, w_mat, gb, tm, n_rows):
    m_pad, k_pad = patches.shape
    c_pad = w_mat.shape[1]
    n_tiles = m_pad // tm
    return pl.pallas_call(
        functools.partial(_conv_bn_lrelu_kernel, tm=tm, inv_m=1.0 / n_rows),
        out_shape=jax.ShapeDtypeStruct((m_pad, c_pad), jnp.bfloat16),
        grid_spec=pltpu.PrefetchScalarGridSpec(
            num_scalar_prefetch=0,
            grid=(2, n_tiles),
            in_specs=[
                # phase 0 walks the M tiles; phase 1 pins block 0 (one re-DMA max).
                pl.BlockSpec((tm, k_pad), lambda p, i: (i * (1 - p), 0)),
                pl.BlockSpec((k_pad, c_pad), lambda p, i: (0, 0)),
                pl.BlockSpec((2, c_pad), lambda p, i: (0, 0)),
            ],
            # phase 0 pins block 0 (never flushed with garbage); phase 1 walks
            # the M tiles and writes each output block exactly once.
            out_specs=pl.BlockSpec((tm, c_pad), lambda p, i: (i * p, 0)),
            scratch_shapes=[
                pltpu.VMEM((m_pad, c_pad), jnp.float32),  # y (pre-BN), f32
                pltpu.VMEM((1, c_pad), jnp.float32),      # per-channel sum
                pltpu.VMEM((1, c_pad), jnp.float32),      # per-channel sum of squares
                pltpu.VMEM((1, c_pad), jnp.float32),      # scale
                pltpu.VMEM((1, c_pad), jnp.float32),      # shift
            ],
        ),
        compiler_params=_compiler_params(("arbitrary", "arbitrary")),
    )(patches, w_mat, gb)


# ------------------------------- JAX glue -------------------------------------


def im2col(x, k, stride, pad):
    """x: (N, H, W, C) bf16 -> patches (N*Ho*Wo, k*k*C) with (i, j, c) ordering."""
    N, H, W, C = x.shape
    xp = jnp.pad(x, ((0, 0), (pad, pad), (pad, pad), (0, 0)))
    Ho = (H + 2 * pad - k) // stride + 1
    Wo = (W + 2 * pad - k) // stride + 1
    cols = []
    for i in range(k):
        for j in range(k):
            cols.append(xp[:, i:i + stride * Ho:stride, j:j + stride * Wo:stride, :])
    p = jnp.stack(cols, axis=3)  # (N, Ho, Wo, k*k, C)
    return p.reshape(N * Ho * Wo, k * k * C), Ho, Wo


def orthogonal_init(key, shape):
    """Mimics nn.init.orthogonal_ on a conv weight of given shape."""
    rows = shape[0]
    cols = 1
    for s in shape[1:]:
        cols *= s
    flat = (rows, cols) if rows >= cols else (cols, rows)
    a = jax.random.normal(key, flat, dtype=jnp.float32)
    q, r = jnp.linalg.qr(a)
    q = q * jnp.sign(jnp.diag(r))[None, :]
    if rows < cols:
        q = q.T
    return q.reshape(shape)


def spectral_normalize(w, n_iter=5):
    """SpectralNorm: divide weight by its largest singular value (power iteration)."""
    c_out = w.shape[0]
    w_mat = w.reshape(c_out, -1)
    u = jnp.ones((c_out,), jnp.float32) / jnp.sqrt(jnp.float32(c_out))
    for _ in range(n_iter):
        v = w_mat.T @ u
        v = v / (jnp.linalg.norm(v) + 1e-12)
        u = w_mat @ v
        u = u / (jnp.linalg.norm(u) + 1e-12)
    sigma = u @ (w_mat @ v)
    return w / sigma


_LAYER_CFG = [
    # (name, stride, pad, use_bn, activation)
    ("conv1", 2, 1, False, "lrelu"),
    ("conv2", 2, 1, True, "lrelu"),
    ("conv3", 2, 1, True, "lrelu"),
    ("conv4", 2, 1, True, "lrelu"),
    ("conv5", 1, 0, False, "sigmoid"),
]


def init_discriminator_params(key, nc, ndf):
    """image_size == 64 branch: raw (spectrally-normalized) conv weights + BN affine."""
    shapes = {
        "conv1": (ndf, nc, 4, 4),
        "conv2": (ndf * 2, ndf, 4, 4),
        "conv3": (ndf * 4, ndf * 2, 4, 4),
        "conv4": (ndf * 8, ndf * 4, 4, 4),
        "conv5": (1, ndf * 8, 4, 4),
    }
    params = {}
    keys = jax.random.split(key, len(shapes))
    for k_, (name, shp) in zip(keys, shapes.items()):
        w = orthogonal_init(k_, shp)
        params[name] = spectral_normalize(w)
    for name, c in (("conv2", ndf * 2), ("conv3", ndf * 4), ("conv4", ndf * 8)):
        params[name + "_gamma"] = jnp.ones((c,), jnp.float32)
        params[name + "_beta"] = jnp.zeros((c,), jnp.float32)
    return params


def prepare_discriminator_params(params):
    """Hoisted per-forward weight preprocessing (done once, outside the jit):
    transpose to (kh*kw*c_in, c_out) matmul layout, pad to MXU-friendly tiles,
    cast to bf16, and pack gamma/beta into a (2, C_pad) f32 array."""
    prep = {}
    meta = []
    for name, stride, pad, use_bn, act in _LAYER_CFG:
        w = params[name]                      # (c_out, c_in, kh, kw)
        c_out, c_in, kh, kw = w.shape
        K = kh * kw * c_in
        k_pad = _pad_channels(K)
        c_pad = _pad_channels(c_out)
        w_mat = jnp.transpose(w, (2, 3, 1, 0)).reshape(K, c_out)
        w_mat = jnp.pad(w_mat, ((0, k_pad - K), (0, c_pad - c_out))).astype(jnp.bfloat16)
        entry = {"w_mat": w_mat}
        if use_bn:
            gamma = jnp.pad(params[name + "_gamma"], (0, c_pad - c_out))
            beta = jnp.pad(params[name + "_beta"], (0, c_pad - c_out))
            entry["gb"] = jnp.stack([gamma, beta], axis=0).astype(jnp.float32)
        prep[name] = entry
        meta.append((name, int(c_out), int(kh), stride, pad, use_bn, act))
    return prep, tuple(meta)


def _pick_tm(m8, parallel):
    """Row-tile size: big tiles amortize per-step overhead; for 'parallel' layers
    make sure there are >=2 M tiles so the v7x second TensorCore gets work."""
    tm = min(1024, m8)
    if parallel and tm == m8 and m8 >= 16 and (m8 // 2) % 8 == 0:
        tm = m8 // 2
    return tm


def _conv_layer(x, prep_l, meta_l):
    _, c_out, k, stride, pad, use_bn, act = meta_l
    w_mat = prep_l["w_mat"]
    k_pad, _ = w_mat.shape
    N = x.shape[0]

    patches, Ho, Wo = im2col(x, k, stride, pad)         # (M, K) bf16
    M, K = patches.shape
    m8 = _round_up(M, 8)
    tm = _pick_tm(m8, parallel=not use_bn)
    m_pad = _round_up(M, tm)
    patches = jnp.pad(patches, ((0, m_pad - M), (0, k_pad - K)))

    if use_bn:
        y = conv_bn_lrelu(patches, w_mat, prep_l["gb"], tm, M)
    else:
        out_dtype = jnp.float32 if act == "sigmoid" else jnp.bfloat16
        y = conv_matmul_act(patches, w_mat, act, tm, out_dtype)

    # TODO(synk): keep the padded (M_pad, C_pad) layout across layers and gather
    # the im2col patches in-kernel to remove this slice/reshape/pad glue.
    return y[:M, :c_out].reshape(N, Ho, Wo, c_out)


def make_discriminator_forward(meta):
    def forward(x_nchw, prep):
        # PyTorch NCHW f32 -> NHWC bf16 internal layout (bf16 MXU matmuls).
        x = jnp.transpose(x_nchw, (0, 2, 3, 1)).astype(jnp.bfloat16)
        for meta_l in meta:
            x = _conv_layer(x, prep[meta_l[0]], meta_l)
        # Final x: (N, 1, 1, 1); PyTorch: output.view(-1, 1).squeeze(1) -> (N,)
        return x.reshape(-1).astype(jnp.float32)
    return jax.jit(forward)


# --------------------------------- main ---------------------------------------

if __name__ == "__main__":
    key = jax.random.PRNGKey(0)
    k_params, k_input = jax.random.split(key)

    # image_size=64 (required by the conv stack), nc=3, ndf=8, batch=2.
    nc, ndf, batch, image_size = 3, 8, 2, 64
    params = init_discriminator_params(k_params, nc, ndf)
    prep, meta = prepare_discriminator_params(params)
    x = jax.random.normal(k_input, (batch, nc, image_size, image_size), dtype=jnp.float32)

    fwd = make_discriminator_forward(meta)
    out = jax.block_until_ready(fwd(x, prep))

    assert out.shape == (batch,), out.shape
    assert bool(jnp.all(jnp.isfinite(out)))
    assert bool(jnp.all((out >= 0.0) & (out <= 1.0)))  # sigmoid range
    print("KERNEL_OK")
</pallas_src>

<mosaic_0001>
module attributes {stable_mosaic.version = 11 : i64} {
  func.func @_matmul_act_kernel(%arg0: i32, %arg1: memref<1024x128xbf16, #tpu.memory_space<vmem>>, %arg2: memref<128x128xbf16, #tpu.memory_space<vmem>>, %arg3: memref<1024x128xbf16, #tpu.memory_space<vmem>>) attributes {dimension_semantics = [#tpu.dimension_semantics<parallel>], iteration_bounds = array<i64: 2>, scalar_prefetch = 0 : i64, scratch_operands = 0 : i64, tpu.core_type = #tpu.core_type<tc>, window_params = [{transform_indices = @transform_0, window_bounds = array<i64: 1024, 128>}, {pipeline_mode = #tpu.pipeline_mode<synchronous>, transform_indices = @transform_1, window_bounds = array<i64: 128, 128>}, {transform_indices = @transform_2, window_bounds = array<i64: 1024, 128>}]} {
    %c0 = arith.constant 0 : index
    %c0_0 = arith.constant 0 : index
    %0 = vector.load %arg1[%c0, %c0_0] : memref<1024x128xbf16, #tpu.memory_space<vmem>>, vector<1024x128xbf16>
    %c0_1 = arith.constant 0 : index
    %c0_2 = arith.constant 0 : index
    %1 = vector.load %arg2[%c0_1, %c0_2] : memref<128x128xbf16, #tpu.memory_space<vmem>>, vector<128x128xbf16>
    %cst = arith.constant dense<0.000000e+00> : vector<1024x128xf32>
    %2 = tpu.matmul %0, %1, %cst {dimension_numbers = #tpu.dot_dimension_numbers<[1], [0], [0], [1], [0, 0, 1, 1], [], []>} : vector<1024x128xbf16>, vector<128x128xbf16>, vector<1024x128xf32> -> vector<1024x128xf32>
    %cst_3 = arith.constant 0.000000e+00 : f32
    %3 = vector.broadcast %cst_3 : f32 to vector<1024x128xf32>
    %4 = arith.cmpf ogt, %2, %3 : vector<1024x128xf32>
    %cst_4 = arith.constant 2.000000e-01 : f32
    %5 = vector.broadcast %cst_4 : f32 to vector<1024x128xf32>
    %6 = arith.mulf %5, %2 : vector<1024x128xf32>
    %7 = arith.select %4, %2, %6 : vector<1024x128xi1>, vector<1024x128xf32>
    %8 = arith.truncf %7 : vector<1024x128xf32> to vector<1024x128xbf16>
    %c0_5 = arith.constant 0 : index
    %c0_6 = arith.constant 0 : index
    %9 = vector.load %arg3[%c0_5, %c0_6] : memref<1024x128xbf16, #tpu.memory_space<vmem>>, vector<1024x128xbf16>
    tpu.vector_store %arg3[%c0_5, %c0_6], %8 {strides = array<i32>} : memref<1024x128xbf16, #tpu.memory_space<vmem>>, vector<1024x128xbf16>,
    return
  }
  func.func @transform_0(%arg0: i32) -> (i32, i32) {
    %c0_i32 = arith.constant 0 : i32
    %c0_i32_0 = arith.constant 0 : i32
    return %arg0, %c0_i32 : i32, i32
  }
  func.func @transform_1(%arg0: i32) -> (i32, i32) {
    %c0_i32 = arith.constant 0 : i32
    %c0_i32_0 = arith.constant 0 : i32
    %c0_i32_1 = arith.constant 0 : i32
    return %c0_i32, %c0_i32_0 : i32, i32
  }
  func.func @transform_2(%arg0: i32) -> (i32, i32) {
    %c0_i32 = arith.constant 0 : i32
    %c0_i32_0 = arith.constant 0 : i32
    return %arg0, %c0_i32 : i32, i32
  }
}

module attributes {stable_mosaic.version = 11 : i64} {
  func.func @_conv_bn_lrelu_kernel(%arg0: i32, %arg1: i32, %arg2: memref<512x128xbf16, #tpu.memory_space<vmem>>, %arg3: memref<128x128xbf16, #tpu.memory_space<vmem>>, %arg4: memref<2x128xf32, #tpu.memory_space<vmem>>, %arg5: memref<512x128xbf16, #tpu.memory_space<vmem>>, %arg6: memref<512x128xf32, #tpu.memory_space<vmem>>, %arg7: memref<1x128xf32, #tpu.memory_space<vmem>>, %arg8: memref<1x128xf32, #tpu.memory_space<vmem>>, %arg9: memref<1x128xf32, #tpu.memory_space<vmem>>, %arg10: memref<1x128xf32, #tpu.memory_space<vmem>>) attributes {dimension_semantics = [#tpu.dimension_semantics<arbitrary>, #tpu.dimension_semantics<arbitrary>], iteration_bounds = array<i64: 2, 1>, scalar_prefetch = 0 : i64, scratch_operands = 5 : i64, tpu.core_type = #tpu.core_type<tc>, window_params = [{transform_indices = @transform_0, window_bounds = array<i64: 512, 128>}, {pipeline_mode = #tpu.pipeline_mode<synchronous>, transform_indices = @transform_1, window_bounds = array<i64: 128, 128>}, {pipeline_mode = #tpu.pipeline_mode<synchronous>, transform_indices = @transform_2, window_bounds = array<i64: 2, 128>}, {transform_indices = @transform_3, window_bounds = array<i64: 512, 128>}]} {
    %c512_i32 = arith.constant 512 : i32
    %0 = arith.muli %arg1, %c512_i32 : i32
    %1 = tpu.assume_multiple %0, 512 : i32
    %c0_i32 = arith.constant 0 : i32
    %2 = arith.cmpi eq, %arg0, %c0_i32 : i32
    %3 = arith.extui %2 : i1 to i32
    %c0_i32_0 = arith.constant 0 : i32
    %4 = arith.cmpi ne, %3, %c0_i32_0 : i32
    scf.if %4 {
      %c0_i32_2 = arith.constant 0 : i32
      %8 = arith.cmpi eq, %arg1, %c0_i32_2 : i32
      %9 = arith.extui %8 : i1 to i32
      %c0_i32_3 = arith.constant 0 : i32
      %10 = arith.cmpi ne, %9, %c0_i32_3 : i32
      scf.if %10 {
        %cst_18 = arith.constant 0.000000e+00 : f32
        %27 = vector.broadcast %cst_18 : f32 to vector<1x128xf32>
        %c0_19 = arith.constant 0 : index
        %c0_20 = arith.constant 0 : index
        %28 = vector.load %arg7[%c0_19, %c0_20] : memref<1x128xf32, #tpu.memory_space<vmem>>, vector<1x128xf32>
        tpu.vector_store %arg7[%c0_19, %c0_20], %27 {strides = array<i32>} : memref<1x128xf32, #tpu.memory_space<vmem>>, vector<1x128xf32>,
        %cst_21 = arith.constant 0.000000e+00 : f32
        %29 = vector.broadcast %cst_21 : f32 to vector<1x128xf32>
        %c0_22 = arith.constant 0 : index
        %c0_23 = arith.constant 0 : index
        %30 = vector.load %arg8[%c0_22, %c0_23] : memref<1x128xf32, #tpu.memory_space<vmem>>, vector<1x128xf32>
        tpu.vector_store %arg8[%c0_22, %c0_23], %29 {strides = array<i32>} : memref<1x128xf32, #tpu.memory_space<vmem>>, vector<1x128xf32>,
      } else {
      }
      %c0 = arith.constant 0 : index
      %c0_4 = arith.constant 0 : index
      %11 = vector.load %arg2[%c0, %c0_4] : memref<512x128xbf16, #tpu.memory_space<vmem>>, vector<512x128xbf16>
      %c0_5 = arith.constant 0 : index
      %c0_6 = arith.constant 0 : index
      %12 = vector.load %arg3[%c0_5, %c0_6] : memref<128x128xbf16, #tpu.memory_space<vmem>>, vector<128x128xbf16>
      %cst = arith.constant dense<0.000000e+00> : vector<512x128xf32>
      %13 = tpu.matmul %11, %12, %cst {dimension_numbers = #tpu.dot_dimension_numbers<[1], [0], [0], [1], [0, 0, 1, 1], [], []>} : vector<512x128xbf16>, vector<128x128xbf16>, vector<512x128xf32> -> vector<512x128xf32>
      %14 = arith.index_cast %1 : i32 to index
      %c0_7 = arith.constant 0 : index
      %15 = vector.load %arg6[%14, %c0_7] : memref<512x128xf32, #tpu.memory_space<vmem>>, vector<512x128xf32>
      tpu.vector_store %arg6[%14, %c0_7], %13 {strides = array<i32>} : memref<512x128xf32, #tpu.memory_space<vmem>>, vector<512x128xf32>,
      %c0_8 = arith.constant 0 : index
      %c0_9 = arith.constant 0 : index
      %16 = vector.load %arg7[%c0_8, %c0_9] : memref<1x128xf32, #tpu.memory_space<vmem>>, vector<1x128xf32>
      %cst_10 = arith.constant dense<0.000000e+00> : vector<128xf32>
      %17 = vector.multi_reduction <add>, %13, %cst_10 [0] : vector<512x128xf32> to vector<128xf32>
      %18 = vector.shape_cast %17 : vector<128xf32> to vector<1x128xf32>
      %19 = arith.addf %16, %18 : vector<1x128xf32>
      %c0_11 = arith.constant 0 : index
      %c0_12 = arith.constant 0 : index
      %20 = vector.load %arg7[%c0_11, %c0_12] : memref<1x128xf32, #tpu.memory_space<vmem>>, vector<1x128xf32>
      tpu.vector_store %arg7[%c0_11, %c0_12], %19 {strides = array<i32>} : memref<1x128xf32, #tpu.memory_space<vmem>>, vector<1x128xf32>,
      %c0_13 = arith.constant 0 : index
      %c0_14 = arith.constant 0 : index
      %21 = vector.load %arg8[%c0_13, %c0_14] : memref<1x128xf32, #tpu.memory_space<vmem>>, vector<1x128xf32>
      %22 = arith.mulf %13, %13 : vector<512x128xf32>
      %cst_15 = arith.constant dense<0.000000e+00> : vector<128xf32>
      %23 = vector.multi_reduction <add>, %22, %cst_15 [0] : vector<512x128xf32> to vector<128xf32>
      %24 = vector.shape_cast %23 : vector<128xf32> to vector<1x128xf32>
      %25 = arith.addf %21, %24 : vector<1x128xf32>
      %c0_16 = arith.constant 0 : index
      %c0_17 = arith.constant 0 : index
      %26 = vector.load %arg8[%c0_16, %c0_17] : memref<1x128xf32, #tpu.memory_space<vmem>>, vector<1x128xf32>
      tpu.vector_store %arg8[%c0_16, %c0_17], %25 {strides = array<i32>} : memref<1x128xf32, #tpu.memory_space<vmem>>, vector<1x128xf32>,
    } else {
    }
    %c1_i32 = arith.constant 1 : i32
    %5 = arith.cmpi eq, %arg0, %c1_i32 : i32
    %6 = arith.extui %5 : i1 to i32
    %c0_i32_1 = arith.constant 0 : i32
    %7 = arith.cmpi ne, %6, %c0_i32_1 : i32
    scf.if %7 {
      %c0_i32_2 = arith.constant 0 : i32
      %8 = arith.cmpi eq, %arg1, %c0_i32_2 : i32
      %9 = arith.extui %8 : i1 to i32
      %c0_i32_3 = arith.constant 0 : i32
      %10 = arith.cmpi ne, %9, %c0_i32_3 : i32
      scf.if %10 {
        %c0_11 = arith.constant 0 : index
        %c0_12 = arith.constant 0 : index
        %26 = vector.load %arg7[%c0_11, %c0_12] : memref<1x128xf32, #tpu.memory_space<vmem>>, vector<1x128xf32>
        %cst_13 = arith.constant 0.001953125 : f32
        %27 = vector.broadcast %cst_13 : f32 to vector<1x128xf32>
        %28 = arith.mulf %26, %27 : vector<1x128xf32>
        %c0_14 = arith.constant 0 : index
        %c0_15 = arith.constant 0 : index
        %29 = vector.load %arg8[%c0_14, %c0_15] : memref<1x128xf32, #tpu.memory_space<vmem>>, vector<1x128xf32>
        %cst_16 = arith.constant 0.001953125 : f32
        %30 = vector.broadcast %cst_16 : f32 to vector<1x128xf32>
        %31 = arith.mulf %29, %30 : vector<1x128xf32>
        %32 = arith.mulf %28, %28 : vector<1x128xf32>
        %33 = arith.subf %31, %32 : vector<1x128xf32>
        %cst_17 = arith.constant 0.000000e+00 : f32
        %34 = vector.broadcast %cst_17 : f32 to vector<1x128xf32>
        %35 = arith.maximumf %33, %34 : vector<1x128xf32>
        %c0_18 = arith.constant 0 : index
        %c0_19 = arith.constant 0 : index
        %36 = vector.load %arg4[%c0_18, %c0_19] : memref<2x128xf32, #tpu.memory_space<vmem>>, vector<1x128xf32>
        %cst_20 = arith.constant 9.99999974E-6 : f32
        %37 = vector.broadcast %cst_20 : f32 to vector<1x128xf32>
        %38 = arith.addf %35, %37 : vector<1x128xf32>
        %39 = math.rsqrt %38 : vector<1x128xf32>
        %40 = arith.mulf %36, %39 : vector<1x128xf32>
        %c0_21 = arith.constant 0 : index
        %c0_22 = arith.constant 0 : index
        %41 = vector.load %arg9[%c0_21, %c0_22] : memref<1x128xf32, #tpu.memory_space<vmem>>, vector<1x128xf32>
        tpu.vector_store %arg9[%c0_21, %c0_22], %40 {strides = array<i32>} : memref<1x128xf32, #tpu.memory_space<vmem>>, vector<1x128xf32>,
        %c1 = arith.constant 1 : index
        %c0_23 = arith.constant 0 : index
        %42 = vector.load %arg4[%c1, %c0_23] : memref<2x128xf32, #tpu.memory_space<vmem>>, vector<1x128xf32>
        %43 = arith.mulf %28, %40 : vector<1x128xf32>
        %44 = arith.subf %42, %43 : vector<1x128xf32>
        %c0_24 = arith.constant 0 : index
        %c0_25 = arith.constant 0 : index
        %45 = vector.load %arg10[%c0_24, %c0_25] : memref<1x128xf32, #tpu.memory_space<vmem>>, vector<1x128xf32>
        tpu.vector_store %arg10[%c0_24, %c0_25], %44 {strides = array<i32>} : memref<1x128xf32, #tpu.memory_space<vmem>>, vector<1x128xf32>,
      } else {
      }
      %11 = arith.index_cast %1 : i32 to index
      %c0 = arith.constant 0 : index
      %12 = vector.load %arg6[%11, %c0] : memref<512x128xf32, #tpu.memory_space<vmem>>, vector<512x128xf32>
      %c0_4 = arith.constant 0 : index
      %c0_5 = arith.constant 0 : index
      %13 = vector.load %arg9[%c0_4, %c0_5] : memref<1x128xf32, #tpu.memory_space<vmem>>, vector<1x128xf32>
      %14 = vector.broadcast %13 : vector<1x128xf32> to vector<512x128xf32>
      %15 = arith.mulf %12, %14 : vector<512x128xf32>
      %c0_6 = arith.constant 0 : index
      %c0_7 = arith.constant 0 : index
      %16 = vector.load %arg10[%c0_6, %c0_7] : memref<1x128xf32, #tpu.memory_space<vmem>>, vector<1x128xf32>
      %17 = vector.broadcast %16 : vector<1x128xf32> to vector<512x128xf32>
      %18 = arith.addf %15, %17 : vector<512x128xf32>
      %cst = arith.constant 0.000000e+00 : f32
      %19 = vector.broadcast %cst : f32 to vector<512x128xf32>
      %20 = arith.cmpf ogt, %18, %19 : vector<512x128xf32>
      %cst_8 = arith.constant 2.000000e-01 : f32
      %21 = vector.broadcast %cst_8 : f32 to vector<512x128xf32>
      %22 = arith.mulf %21, %18 : vector<512x128xf32>
      %23 = arith.select %20, %18, %22 : vector<512x128xi1>, vector<512x128xf32>
      %24 = arith.truncf %23 : vector<512x128xf32> to vector<512x128xbf16>
      %c0_9 = arith.constant 0 : index
      %c0_10 = arith.constant 0 : index
      %25 = vector.load %arg5[%c0_9, %c0_10] : memref<512x128xbf16, #tpu.memory_space<vmem>>, vector<512x128xbf16>
      tpu.vector_store %arg5[%c0_9, %c0_10], %24 {strides = array<i32>} : memref<512x128xbf16, #tpu.memory_space<vmem>>, vector<512x128xbf16>,
    } else {
    }
    return
  }
  func.func @transform_0(%arg0: i32, %arg1: i32) -> (i32, i32) {
    %c1_i32 = arith.constant 1 : i32
    %0 = arith.subi %c1_i32, %arg0 : i32
    %1 = arith.muli %arg1, %0 : i32
    %c0_i32 = arith.constant 0 : i32
    %c0_i32_0 = arith.constant 0 : i32
    return %1, %c0_i32 : i32, i32
  }
  func.func @transform_1(%arg0: i32, %arg1: i32) -> (i32, i32) {
    %c0_i32 = arith.constant 0 : i32
    %c0_i32_0 = arith.constant 0 : i32
    %c0_i32_1 = arith.constant 0 : i32
    return %c0_i32, %c0_i32_0 : i32, i32
  }
  func.func @transform_2(%arg0: i32, %arg1: i32) -> (i32, i32) {
    %c0_i32 = arith.constant 0 : i32
    %c0_i32_0 = arith.constant 0 : i32
    %c0_i32_1 = arith.constant 0 : i32
    return %c0_i32, %c0_i32_0 : i32, i32
  }
  func.func @transform_3(%arg0: i32, %arg1: i32) -> (i32, i32) {
    %0 = arith.muli %arg1, %arg0 : i32
    %c0_i32 = arith.constant 0 : i32
    %c0_i32_0 = arith.constant 0 : i32
    return %0, %c0_i32 : i32, i32
  }
}

module attributes {stable_mosaic.version = 11 : i64} {
  func.func @_conv_bn_lrelu_kernel(%arg0: i32, %arg1: i32, %arg2: memref<128x256xbf16, #tpu.memory_space<vmem>>, %arg3: memref<256x128xbf16, #tpu.memory_space<vmem>>, %arg4: memref<2x128xf32, #tpu.memory_space<vmem>>, %arg5: memref<128x128xbf16, #tpu.memory_space<vmem>>, %arg6: memref<128x128xf32, #tpu.memory_space<vmem>>, %arg7: memref<1x128xf32, #tpu.memory_space<vmem>>, %arg8: memref<1x128xf32, #tpu.memory_space<vmem>>, %arg9: memref<1x128xf32, #tpu.memory_space<vmem>>, %arg10: memref<1x128xf32, #tpu.memory_space<vmem>>) attributes {dimension_semantics = [#tpu.dimension_semantics<arbitrary>, #tpu.dimension_semantics<arbitrary>], iteration_bounds = array<i64: 2, 1>, scalar_prefetch = 0 : i64, scratch_operands = 5 : i64, tpu.core_type = #tpu.core_type<tc>, window_params = [{transform_indices = @transform_0, window_bounds = array<i64: 128, 256>}, {pipeline_mode = #tpu.pipeline_mode<synchronous>, transform_indices = @transform_1, window_bounds = array<i64: 256, 128>}, {pipeline_mode = #tpu.pipeline_mode<synchronous>, transform_indices = @transform_2, window_bounds = array<i64: 2, 128>}, {transform_indices = @transform_3, window_bounds = array<i64: 128, 128>}]} {
    %c128_i32 = arith.constant 128 : i32
    %0 = arith.muli %arg1, %c128_i32 : i32
    %1 = tpu.assume_multiple %0, 128 : i32
    %c0_i32 = arith.constant 0 : i32
    %2 = arith.cmpi eq, %arg0, %c0_i32 : i32
    %3 = arith.extui %2 : i1 to i32
    %c0_i32_0 = arith.constant 0 : i32
    %4 = arith.cmpi ne, %3, %c0_i32_0 : i32
    scf.if %4 {
      %c0_i32_2 = arith.constant 0 : i32
      %8 = arith.cmpi eq, %arg1, %c0_i32_2 : i32
      %9 = arith.extui %8 : i1 to i32
      %c0_i32_3 = arith.constant 0 : i32
      %10 = arith.cmpi ne, %9, %c0_i32_3 : i32
      scf.if %10 {
        %cst_18 = arith.constant 0.000000e+00 : f32
        %27 = vector.broadcast %cst_18 : f32 to vector<1x128xf32>
        %c0_19 = arith.constant 0 : index
        %c0_20 = arith.constant 0 : index
        %28 = vector.load %arg7[%c0_19, %c0_20] : memref<1x128xf32, #tpu.memory_space<vmem>>, vector<1x128xf32>
        tpu.vector_store %arg7[%c0_19, %c0_20], %27 {strides = array<i32>} : memref<1x128xf32, #tpu.memory_space<vmem>>, vector<1x128xf32>,
        %cst_21 = arith.constant 0.000000e+00 : f32
        %29 = vector.broadcast %cst_21 : f32 to vector<1x128xf32>
        %c0_22 = arith.constant 0 : index
        %c0_23 = arith.constant 0 : index
        %30 = vector.load %arg8[%c0_22, %c0_23] : memref<1x128xf32, #tpu.memory_space<vmem>>, vector<1x128xf32>
        tpu.vector_store %arg8[%c0_22, %c0_23], %29 {strides = array<i32>} : memref<1x128xf32, #tpu.memory_space<vmem>>, vector<1x128xf32>,
      } else {
      }
      %c0 = arith.constant 0 : index
      %c0_4 = arith.constant 0 : index
      %11 = vector.load %arg2[%c0, %c0_4] : memref<128x256xbf16, #tpu.memory_space<vmem>>, vector<128x256xbf16>
      %c0_5 = arith.constant 0 : index
      %c0_6 = arith.constant 0 : index
      %12 = vector.load %arg3[%c0_5, %c0_6] : memref<256x128xbf16, #tpu.memory_space<vmem>>, vector<256x128xbf16>
      %cst = arith.constant dense<0.000000e+00> : vector<128x128xf32>
      %13 = tpu.matmul %11, %12, %cst {dimension_numbers = #tpu.dot_dimension_numbers<[1], [0], [0], [1], [0, 0, 1, 1], [], []>} : vector<128x256xbf16>, vector<256x128xbf16>, vector<128x128xf32> -> vector<128x128xf32>
      %14 = arith.index_cast %1 : i32 to index
      %c0_7 = arith.constant 0 : index
      %15 = vector.load %arg6[%14, %c0_7] : memref<128x128xf32, #tpu.memory_space<vmem>>, vector<128x128xf32>
      tpu.vector_store %arg6[%14, %c0_7], %13 {strides = array<i32>} : memref<128x128xf32, #tpu.memory_space<vmem>>, vector<128x128xf32>,
      %c0_8 = arith.constant 0 : index
      %c0_9 = arith.constant 0 : index
      %16 = vector.load %arg7[%c0_8, %c0_9] : memref<1x128xf32, #tpu.memory_space<vmem>>, vector<1x128xf32>
      %cst_10 = arith.constant dense<0.000000e+00> : vector<128xf32>
      %17 = vector.multi_reduction <add>, %13, %cst_10 [0] : vector<128x128xf32> to vector<128xf32>
      %18 = vector.shape_cast %17 : vector<128xf32> to vector<1x128xf32>
      %19 = arith.addf %16, %18 : vector<1x128xf32>
      %c0_11 = arith.constant 0 : index
      %c0_12 = arith.constant 0 : index
      %20 = vector.load %arg7[%c0_11, %c0_12] : memref<1x128xf32, #tpu.memory_space<vmem>>, vector<1x128xf32>
      tpu.vector_store %arg7[%c0_11, %c0_12], %19 {strides = array<i32>} : memref<1x128xf32, #tpu.memory_space<vmem>>, vector<1x128xf32>,
      %c0_13 = arith.constant 0 : index
      %c0_14 = arith.constant 0 : index
      %21 = vector.load %arg8[%c0_13, %c0_14] : memref<1x128xf32, #tpu.memory_space<vmem>>, vector<1x128xf32>
      %22 = arith.mulf %13, %13 : vector<128x128xf32>
      %cst_15 = arith.constant dense<0.000000e+00> : vector<128xf32>
      %23 = vector.multi_reduction <add>, %22, %cst_15 [0] : vector<128x128xf32> to vector<128xf32>
      %24 = vector.shape_cast %23 : vector<128xf32> to vector<1x128xf32>
      %25 = arith.addf %21, %24 : vector<1x128xf32>
      %c0_16 = arith.constant 0 : index
      %c0_17 = arith.constant 0 : index
      %26 = vector.load %arg8[%c0_16, %c0_17] : memref<1x128xf32, #tpu.memory_space<vmem>>, vector<1x128xf32>
      tpu.vector_store %arg8[%c0_16, %c0_17], %25 {strides = array<i32>} : memref<1x128xf32, #tpu.memory_space<vmem>>, vector<1x128xf32>,
    } else {
    }
    %c1_i32 = arith.constant 1 : i32
    %5 = arith.cmpi eq, %arg0, %c1_i32 : i32
    %6 = arith.extui %5 : i1 to i32
    %c0_i32_1 = arith.constant 0 : i32
    %7 = arith.cmpi ne, %6, %c0_i32_1 : i32
    scf.if %7 {
      %c0_i32_2 = arith.constant 0 : i32
      %8 = arith.cmpi eq, %arg1, %c0_i32_2 : i32
      %9 = arith.extui %8 : i1 to i32
      %c0_i32_3 = arith.constant 0 : i32
      %10 = arith.cmpi ne, %9, %c0_i32_3 : i32
      scf.if %10 {
        %c0_11 = arith.constant 0 : index
        %c0_12 = arith.constant 0 : index
        %26 = vector.load %arg7[%c0_11, %c0_12] : memref<1x128xf32, #tpu.memory_space<vmem>>, vector<1x128xf32>
        %cst_13 = arith.constant 7.812500e-03 : f32
        %27 = vector.broadcast %cst_13 : f32 to vector<1x128xf32>
        %28 = arith.mulf %26, %27 : vector<1x128xf32>
        %c0_14 = arith.constant 0 : index
        %c0_15 = arith.constant 0 : index
        %29 = vector.load %arg8[%c0_14, %c0_15] : memref<1x128xf32, #tpu.memory_space<vmem>>, vector<1x128xf32>
        %cst_16 = arith.constant 7.812500e-03 : f32
        %30 = vector.broadcast %cst_16 : f32 to vector<1x128xf32>
        %31 = arith.mulf %29, %30 : vector<1x128xf32>
        %32 = arith.mulf %28, %28 : vector<1x128xf32>
        %33 = arith.subf %31, %32 : vector<1x128xf32>
        %cst_17 = arith.constant 0.000000e+00 : f32
        %34 = vector.broadcast %cst_17 : f32 to vector<1x128xf32>
        %35 = arith.maximumf %33, %34 : vector<1x128xf32>
        %c0_18 = arith.constant 0 : index
        %c0_19 = arith.constant 0 : index
        %36 = vector.load %arg4[%c0_18, %c0_19] : memref<2x128xf32, #tpu.memory_space<vmem>>, vector<1x128xf32>
        %cst_20 = arith.constant 9.99999974E-6 : f32
        %37 = vector.broadcast %cst_20 : f32 to vector<1x128xf32>
        %38 = arith.addf %35, %37 : vector<1x128xf32>
        %39 = math.rsqrt %38 : vector<1x128xf32>
        %40 = arith.mulf %36, %39 : vector<1x128xf32>
        %c0_21 = arith.constant 0 : index
        %c0_22 = arith.constant 0 : index
        %41 = vector.load %arg9[%c0_21, %c0_22] : memref<1x128xf32, #tpu.memory_space<vmem>>, vector<1x128xf32>
        tpu.vector_store %arg9[%c0_21, %c0_22], %40 {strides = array<i32>} : memref<1x128xf32, #tpu.memory_space<vmem>>, vector<1x128xf32>,
        %c1 = arith.constant 1 : index
        %c0_23 = arith.constant 0 : index
        %42 = vector.load %arg4[%c1, %c0_23] : memref<2x128xf32, #tpu.memory_space<vmem>>, vector<1x128xf32>
        %43 = arith.mulf %28, %40 : vector<1x128xf32>
        %44 = arith.subf %42, %43 : vector<1x128xf32>
        %c0_24 = arith.constant 0 : index
        %c0_25 = arith.constant 0 : index
        %45 = vector.load %arg10[%c0_24, %c0_25] : memref<1x128xf32, #tpu.memory_space<vmem>>, vector<1x128xf32>
        tpu.vector_store %arg10[%c0_24, %c0_25], %44 {strides = array<i32>} : memref<1x128xf32, #tpu.memory_space<vmem>>, vector<1x128xf32>,
      } else {
      }
      %11 = arith.index_cast %1 : i32 to index
      %c0 = arith.constant 0 : index
      %12 = vector.load %arg6[%11, %c0] : memref<128x128xf32, #tpu.memory_space<vmem>>, vector<128x128xf32>
      %c0_4 = arith.constant 0 : index
      %c0_5 = arith.constant 0 : index
      %13 = vector.load %arg9[%c0_4, %c0_5] : memref<1x128xf32, #tpu.memory_space<vmem>>, vector<1x128xf32>
      %14 = vector.broadcast %13 : vector<1x128xf32> to vector<128x128xf32>
      %15 = arith.mulf %12, %14 : vector<128x128xf32>
      %c0_6 = arith.constant 0 : index
      %c0_7 = arith.constant 0 : index
      %16 = vector.load %arg10[%c0_6, %c0_7] : memref<1x128xf32, #tpu.memory_space<vmem>>, vector<1x128xf32>
      %17 = vector.broadcast %16 : vector<1x128xf32> to vector<128x128xf32>
      %18 = arith.addf %15, %17 : vector<128x128xf32>
      %cst = arith.constant 0.000000e+00 : f32
      %19 = vector.broadcast %cst : f32 to vector<128x128xf32>
      %20 = arith.cmpf ogt, %18, %19 : vector<128x128xf32>
      %cst_8 = arith.constant 2.000000e-01 : f32
      %21 = vector.broadcast %cst_8 : f32 to vector<128x128xf32>
      %22 = arith.mulf %21, %18 : vector<128x128xf32>
      %23 = arith.select %20, %18, %22 : vector<128x128xi1>, vector<128x128xf32>
      %24 = arith.truncf %23 : vector<128x128xf32> to vector<128x128xbf16>
      %c0_9 = arith.constant 0 : index
      %c0_10 = arith.constant 0 : index
      %25 = vector.load %arg5[%c0_9, %c0_10] : memref<128x128xbf16, #tpu.memory_space<vmem>>, vector<128x128xbf16>
      tpu.vector_store %arg5[%c0_9, %c0_10], %24 {strides = array<i32>} : memref<128x128xbf16, #tpu.memory_space<vmem>>, vector<128x128xbf16>,
    } else {
    }
    return
  }
  func.func @transform_0(%arg0: i32, %arg1: i32) -> (i32, i32) {
    %c1_i32 = arith.constant 1 : i32
    %0 = arith.subi %c1_i32, %arg0 : i32
    %1 = arith.muli %arg1, %0 : i32
    %c0_i32 = arith.constant 0 : i32
    %c0_i32_0 = arith.constant 0 : i32
    return %1, %c0_i32 : i32, i32
  }
  func.func @transform_1(%arg0: i32, %arg1: i32) -> (i32, i32) {
    %c0_i32 = arith.constant 0 : i32
    %c0_i32_0 = arith.constant 0 : i32
    %c0_i32_1 = arith.constant 0 : i32
    return %c0_i32, %c0_i32_0 : i32, i32
  }
  func.func @transform_2(%arg0: i32, %arg1: i32) -> (i32, i32) {
    %c0_i32 = arith.constant 0 : i32
    %c0_i32_0 = arith.constant 0 : i32
    %c0_i32_1 = arith.constant 0 : i32
    return %c0_i32, %c0_i32_0 : i32, i32
  }
  func.func @transform_3(%arg0: i32, %arg1: i32) -> (i32, i32) {
    %0 = arith.muli %arg1, %arg0 : i32
    %c0_i32 = arith.constant 0 : i32
    %c0_i32_0 = arith.constant 0 : i32
    return %0, %c0_i32 : i32, i32
  }
}

module attributes {stable_mosaic.version = 11 : i64} {
  func.func @_conv_bn_lrelu_kernel(%arg0: i32, %arg1: i32, %arg2: memref<32x512xbf16, #tpu.memory_space<vmem>>, %arg3: memref<512x128xbf16, #tpu.memory_space<vmem>>, %arg4: memref<2x128xf32, #tpu.memory_space<vmem>>, %arg5: memref<32x128xbf16, #tpu.memory_space<vmem>>, %arg6: memref<32x128xf32, #tpu.memory_space<vmem>>, %arg7: memref<1x128xf32, #tpu.memory_space<vmem>>, %arg8: memref<1x128xf32, #tpu.memory_space<vmem>>, %arg9: memref<1x128xf32, #tpu.memory_space<vmem>>, %arg10: memref<1x128xf32, #tpu.memory_space<vmem>>) attributes {dimension_semantics = [#tpu.dimension_semantics<arbitrary>, #tpu.dimension_semantics<arbitrary>], iteration_bounds = array<i64: 2, 1>, scalar_prefetch = 0 : i64, scratch_operands = 5 : i64, tpu.core_type = #tpu.core_type<tc>, window_params = [{transform_indices = @transform_0, window_bounds = array<i64: 32, 512>}, {pipeline_mode = #tpu.pipeline_mode<synchronous>, transform_indices = @transform_1, window_bounds = array<i64: 512, 128>}, {pipeline_mode = #tpu.pipeline_mode<synchronous>, transform_indices = @transform_2, window_bounds = array<i64: 2, 128>}, {transform_indices = @transform_3, window_bounds = array<i64: 32, 128>}]} {
    %c32_i32 = arith.constant 32 : i32
    %0 = arith.muli %arg1, %c32_i32 : i32
    %1 = tpu.assume_multiple %0, 32 : i32
    %c0_i32 = arith.constant 0 : i32
    %2 = arith.cmpi eq, %arg0, %c0_i32 : i32
    %3 = arith.extui %2 : i1 to i32
    %c0_i32_0 = arith.constant 0 : i32
    %4 = arith.cmpi ne, %3, %c0_i32_0 : i32
    scf.if %4 {
      %c0_i32_2 = arith.constant 0 : i32
      %8 = arith.cmpi eq, %arg1, %c0_i32_2 : i32
      %9 = arith.extui %8 : i1 to i32
      %c0_i32_3 = arith.constant 0 : i32
      %10 = arith.cmpi ne, %9, %c0_i32_3 : i32
      scf.if %10 {
        %cst_18 = arith.constant 0.000000e+00 : f32
        %27 = vector.broadcast %cst_18 : f32 to vector<1x128xf32>
        %c0_19 = arith.constant 0 : index
        %c0_20 = arith.constant 0 : index
        %28 = vector.load %arg7[%c0_19, %c0_20] : memref<1x128xf32, #tpu.memory_space<vmem>>, vector<1x128xf32>
        tpu.vector_store %arg7[%c0_19, %c0_20], %27 {strides = array<i32>} : memref<1x128xf32, #tpu.memory_space<vmem>>, vector<1x128xf32>,
        %cst_21 = arith.constant 0.000000e+00 : f32
        %29 = vector.broadcast %cst_21 : f32 to vector<1x128xf32>
        %c0_22 = arith.constant 0 : index
        %c0_23 = arith.constant 0 : index
        %30 = vector.load %arg8[%c0_22, %c0_23] : memref<1x128xf32, #tpu.memory_space<vmem>>, vector<1x128xf32>
        tpu.vector_store %arg8[%c0_22, %c0_23], %29 {strides = array<i32>} : memref<1x128xf32, #tpu.memory_space<vmem>>, vector<1x128xf32>,
      } else {
      }
      %c0 = arith.constant 0 : index
      %c0_4 = arith.constant 0 : index
      %11 = vector.load %arg2[%c0, %c0_4] : memref<32x512xbf16, #tpu.memory_space<vmem>>, vector<32x512xbf16>
      %c0_5 = arith.constant 0 : index
      %c0_6 = arith.constant 0 : index
      %12 = vector.load %arg3[%c0_5, %c0_6] : memref<512x128xbf16, #tpu.memory_space<vmem>>, vector<512x128xbf16>
      %cst = arith.constant dense<0.000000e+00> : vector<32x128xf32>
      %13 = tpu.matmul %11, %12, %cst {dimension_numbers = #tpu.dot_dimension_numbers<[1], [0], [0], [1], [0, 0, 1, 1], [], []>} : vector<32x512xbf16>, vector<512x128xbf16>, vector<32x128xf32> -> vector<32x128xf32>
      %14 = arith.index_cast %1 : i32 to index
      %c0_7 = arith.constant 0 : index
      %15 = vector.load %arg6[%14, %c0_7] : memref<32x128xf32, #tpu.memory_space<vmem>>, vector<32x128xf32>
      tpu.vector_store %arg6[%14, %c0_7], %13 {strides = array<i32>} : memref<32x128xf32, #tpu.memory_space<vmem>>, vector<32x128xf32>,
      %c0_8 = arith.constant 0 : index
      %c0_9 = arith.constant 0 : index
      %16 = vector.load %arg7[%c0_8, %c0_9] : memref<1x128xf32, #tpu.memory_space<vmem>>, vector<1x128xf32>
      %cst_10 = arith.constant dense<0.000000e+00> : vector<128xf32>
      %17 = vector.multi_reduction <add>, %13, %cst_10 [0] : vector<32x128xf32> to vector<128xf32>
      %18 = vector.shape_cast %17 : vector<128xf32> to vector<1x128xf32>
      %19 = arith.addf %16, %18 : vector<1x128xf32>
      %c0_11 = arith.constant 0 : index
      %c0_12 = arith.constant 0 : index
      %20 = vector.load %arg7[%c0_11, %c0_12] : memref<1x128xf32, #tpu.memory_space<vmem>>, vector<1x128xf32>
      tpu.vector_store %arg7[%c0_11, %c0_12], %19 {strides = array<i32>} : memref<1x128xf32, #tpu.memory_space<vmem>>, vector<1x128xf32>,
      %c0_13 = arith.constant 0 : index
      %c0_14 = arith.constant 0 : index
      %21 = vector.load %arg8[%c0_13, %c0_14] : memref<1x128xf32, #tpu.memory_space<vmem>>, vector<1x128xf32>
      %22 = arith.mulf %13, %13 : vector<32x128xf32>
      %cst_15 = arith.constant dense<0.000000e+00> : vector<128xf32>
      %23 = vector.multi_reduction <add>, %22, %cst_15 [0] : vector<32x128xf32> to vector<128xf32>
      %24 = vector.shape_cast %23 : vector<128xf32> to vector<1x128xf32>
      %25 = arith.addf %21, %24 : vector<1x128xf32>
      %c0_16 = arith.constant 0 : index
      %c0_17 = arith.constant 0 : index
      %26 = vector.load %arg8[%c0_16, %c0_17] : memref<1x128xf32, #tpu.memory_space<vmem>>, vector<1x128xf32>
      tpu.vector_store %arg8[%c0_16, %c0_17], %25 {strides = array<i32>} : memref<1x128xf32, #tpu.memory_space<vmem>>, vector<1x128xf32>,
    } else {
    }
    %c1_i32 = arith.constant 1 : i32
    %5 = arith.cmpi eq, %arg0, %c1_i32 : i32
    %6 = arith.extui %5 : i1 to i32
    %c0_i32_1 = arith.constant 0 : i32
    %7 = arith.cmpi ne, %6, %c0_i32_1 : i32
    scf.if %7 {
      %c0_i32_2 = arith.constant 0 : i32
      %8 = arith.cmpi eq, %arg1, %c0_i32_2 : i32
      %9 = arith.extui %8 : i1 to i32
      %c0_i32_3 = arith.constant 0 : i32
      %10 = arith.cmpi ne, %9, %c0_i32_3 : i32
      scf.if %10 {
        %c0_11 = arith.constant 0 : index
        %c0_12 = arith.constant 0 : index
        %26 = vector.load %arg7[%c0_11, %c0_12] : memref<1x128xf32, #tpu.memory_space<vmem>>, vector<1x128xf32>
        %cst_13 = arith.constant 3.125000e-02 : f32
        %27 = vector.broadcast %cst_13 : f32 to vector<1x128xf32>
        %28 = arith.mulf %26, %27 : vector<1x128xf32>
        %c0_14 = arith.constant 0 : index
        %c0_15 = arith.constant 0 : index
        %29 = vector.load %arg8[%c0_14, %c0_15] : memref<1x128xf32, #tpu.memory_space<vmem>>, vector<1x128xf32>
        %cst_16 = arith.constant 3.125000e-02 : f32
        %30 = vector.broadcast %cst_16 : f32 to vector<1x128xf32>
        %31 = arith.mulf %29, %30 : vector<1x128xf32>
        %32 = arith.mulf %28, %28 : vector<1x128xf32>
        %33 = arith.subf %31, %32 : vector<1x128xf32>
        %cst_17 = arith.constant 0.000000e+00 : f32
        %34 = vector.broadcast %cst_17 : f32 to vector<1x128xf32>
        %35 = arith.maximumf %33, %34 : vector<1x128xf32>
        %c0_18 = arith.constant 0 : index
        %c0_19 = arith.constant 0 : index
        %36 = vector.load %arg4[%c0_18, %c0_19] : memref<2x128xf32, #tpu.memory_space<vmem>>, vector<1x128xf32>
        %cst_20 = arith.constant 9.99999974E-6 : f32
        %37 = vector.broadcast %cst_20 : f32 to vector<1x128xf32>
        %38 = arith.addf %35, %37 : vector<1x128xf32>
        %39 = math.rsqrt %38 : vector<1x128xf32>
        %40 = arith.mulf %36, %39 : vector<1x128xf32>
        %c0_21 = arith.constant 0 : index
        %c0_22 = arith.constant 0 : index
        %41 = vector.load %arg9[%c0_21, %c0_22] : memref<1x128xf32, #tpu.memory_space<vmem>>, vector<1x128xf32>
        tpu.vector_store %arg9[%c0_21, %c0_22], %40 {strides = array<i32>} : memref<1x128xf32, #tpu.memory_space<vmem>>, vector<1x128xf32>,
        %c1 = arith.constant 1 : index
        %c0_23 = arith.constant 0 : index
        %42 = vector.load %arg4[%c1, %c0_23] : memref<2x128xf32, #tpu.memory_space<vmem>>, vector<1x128xf32>
        %43 = arith.mulf %28, %40 : vector<1x128xf32>
        %44 = arith.subf %42, %43 : vector<1x128xf32>
        %c0_24 = arith.constant 0 : index
        %c0_25 = arith.constant 0 : index
        %45 = vector.load %arg10[%c0_24, %c0_25] : memref<1x128xf32, #tpu.memory_space<vmem>>, vector<1x128xf32>
        tpu.vector_store %arg10[%c0_24, %c0_25], %44 {strides = array<i32>} : memref<1x128xf32, #tpu.memory_space<vmem>>, vector<1x128xf32>,
      } else {
      }
      %11 = arith.index_cast %1 : i32 to index
      %c0 = arith.constant 0 : index
      %12 = vector.load %arg6[%11, %c0] : memref<32x128xf32, #tpu.memory_space<vmem>>, vector<32x128xf32>
      %c0_4 = arith.constant 0 : index
      %c0_5 = arith.constant 0 : index
      %13 = vector.load %arg9[%c0_4, %c0_5] : memref<1x128xf32, #tpu.memory_space<vmem>>, vector<1x128xf32>
      %14 = vector.broadcast %13 : vector<1x128xf32> to vector<32x128xf32>
      %15 = arith.mulf %12, %14 : vector<32x128xf32>
      %c0_6 = arith.constant 0 : index
      %c0_7 = arith.constant 0 : index
      %16 = vector.load %arg10[%c0_6, %c0_7] : memref<1x128xf32, #tpu.memory_space<vmem>>, vector<1x128xf32>
      %17 = vector.broadcast %16 : vector<1x128xf32> to vector<32x128xf32>
      %18 = arith.addf %15, %17 : vector<32x128xf32>
      %cst = arith.constant 0.000000e+00 : f32
      %19 = vector.broadcast %cst : f32 to vector<32x128xf32>
      %20 = arith.cmpf ogt, %18, %19 : vector<32x128xf32>
      %cst_8 = arith.constant 2.000000e-01 : f32
      %21 = vector.broadcast %cst_8 : f32 to vector<32x128xf32>
      %22 = arith.mulf %21, %18 : vector<32x128xf32>
      %23 = arith.select %20, %18, %22 : vector<32x128xi1>, vector<32x128xf32>
      %24 = arith.truncf %23 : vector<32x128xf32> to vector<32x128xbf16>
      %c0_9 = arith.constant 0 : index
      %c0_10 = arith.constant 0 : index
      %25 = vector.load %arg5[%c0_9, %c0_10] : memref<32x128xbf16, #tpu.memory_space<vmem>>, vector<32x128xbf16>
      tpu.vector_store %arg5[%c0_9, %c0_10], %24 {strides = array<i32>} : memref<32x128xbf16, #tpu.memory_space<vmem>>, vector<32x128xbf16>,
    } else {
    }
    return
  }
  func.func @transform_0(%arg0: i32, %arg1: i32) -> (i32, i32) {
    %c1_i32 = arith.constant 1 : i32
    %0 = arith.subi %c1_i32, %arg0 : i32
    %1 = arith.muli %arg1, %0 : i32
    %c0_i32 = arith.constant 0 : i32
    %c0_i32_0 = arith.constant 0 : i32
    return %1, %c0_i32 : i32, i32
  }
  func.func @transform_1(%arg0: i32, %arg1: i32) -> (i32, i32) {
    %c0_i32 = arith.constant 0 : i32
    %c0_i32_0 = arith.constant 0 : i32
    %c0_i32_1 = arith.constant 0 : i32
    return %c0_i32, %c0_i32_0 : i32, i32
  }
  func.func @transform_2(%arg0: i32, %arg1: i32) -> (i32, i32) {
    %c0_i32 = arith.constant 0 : i32
    %c0_i32_0 = arith.constant 0 : i32
    %c0_i32_1 = arith.constant 0 : i32
    return %c0_i32, %c0_i32_0 : i32, i32
  }
  func.func @transform_3(%arg0: i32, %arg1: i32) -> (i32, i32) {
    %0 = arith.muli %arg1, %arg0 : i32
    %c0_i32 = arith.constant 0 : i32
    %c0_i32_0 = arith.constant 0 : i32
    return %0, %c0_i32 : i32, i32
  }
}

module attributes {stable_mosaic.version = 11 : i64} {
  func.func @_matmul_act_kernel(%arg0: i32, %arg1: memref<8x1024xbf16, #tpu.memory_space<vmem>>, %arg2: memref<1024x128xbf16, #tpu.memory_space<vmem>>, %arg3: memref<8x128xf32, #tpu.memory_space<vmem>>) attributes {dimension_semantics = [#tpu.dimension_semantics<parallel>], iteration_bounds = array<i64: 1>, scalar_prefetch = 0 : i64, scratch_operands = 0 : i64, tpu.core_type = #tpu.core_type<tc>, window_params = [{transform_indices = @transform_0, window_bounds = array<i64: 8, 1024>}, {pipeline_mode = #tpu.pipeline_mode<synchronous>, transform_indices = @transform_1, window_bounds = array<i64: 1024, 128>}, {transform_indices = @transform_2, window_bounds = array<i64: 8, 128>}]} {
    %c0 = arith.constant 0 : index
    %c0_0 = arith.constant 0 : index
    %0 = vector.load %arg1[%c0, %c0_0] : memref<8x1024xbf16, #tpu.memory_space<vmem>>, vector<8x1024xbf16>
    %c0_1 = arith.constant 0 : index
    %c0_2 = arith.constant 0 : index
    %1 = vector.load %arg2[%c0_1, %c0_2] : memref<1024x128xbf16, #tpu.memory_space<vmem>>, vector<1024x128xbf16>
    %cst = arith.constant dense<0.000000e+00> : vector<8x128xf32>
    %2 = tpu.matmul %0, %1, %cst {dimension_numbers = #tpu.dot_dimension_numbers<[1], [0], [0], [1], [0, 0, 1, 1], [], []>} : vector<8x1024xbf16>, vector<1024x128xbf16>, vector<8x128xf32> -> vector<8x128xf32>
    %3 = math.absf %2 : vector<8x128xf32>
    %cst_3 = arith.constant 0.000000e+00 : f32
    %4 = vector.broadcast %cst_3 : f32 to vector<8x128xf32>
    %5 = arith.subf %4, %3 : vector<8x128xf32>
    %6 = math.exp %5 : vector<8x128xf32>
    %cst_4 = arith.constant 0.000000e+00 : f32
    %7 = vector.broadcast %cst_4 : f32 to vector<8x128xf32>
    %8 = arith.cmpf oge, %2, %7 : vector<8x128xf32>
    %cst_5 = arith.constant 1.000000e+00 : f32
    %9 = vector.broadcast %cst_5 : f32 to vector<8x128xf32>
    %10 = arith.addf %9, %6 : vector<8x128xf32>
    %cst_6 = arith.constant 1.000000e+00 : f32
    %11 = vector.broadcast %cst_6 : f32 to vector<8x128xf32>
    %12 = arith.divf %11, %10 : vector<8x128xf32>
    %cst_7 = arith.constant 1.000000e+00 : f32
    %13 = vector.broadcast %cst_7 : f32 to vector<8x128xf32>
    %14 = arith.addf %13, %6 : vector<8x128xf32>
    %15 = arith.divf %6, %14 : vector<8x128xf32>
    %16 = arith.select %8, %12, %15 : vector<8x128xi1>, vector<8x128xf32>
    %c0_8 = arith.constant 0 : index
    %c0_9 = arith.constant 0 : index
    %17 = vector.load %arg3[%c0_8, %c0_9] : memref<8x128xf32, #tpu.memory_space<vmem>>, vector<8x128xf32>
    tpu.vector_store %arg3[%c0_8, %c0_9], %16 {strides = array<i32>} : memref<8x128xf32, #tpu.memory_space<vmem>>, vector<8x128xf32>,
    return
  }
  func.func @transform_0(%arg0: i32) -> (i32, i32) {
    %c0_i32 = arith.constant 0 : i32
    %c0_i32_0 = arith.constant 0 : i32
    return %arg0, %c0_i32 : i32, i32
  }
  func.func @transform_1(%arg0: i32) -> (i32, i32) {
    %c0_i32 = arith.constant 0 : i32
    %c0_i32_0 = arith.constant 0 : i32
    %c0_i32_1 = arith.constant 0 : i32
    return %c0_i32, %c0_i32_0 : i32, i32
  }
  func.func @transform_2(%arg0: i32) -> (i32, i32) {
    %c0_i32 = arith.constant 0 : i32
    %c0_i32_0 = arith.constant 0 : i32
    return %arg0, %c0_i32 : i32, i32
  }
}

</mosaic_0001>

<bundles_post_ra>
// kernel: forward.5
= control target key start
LH: loop header
LB: loop body
LE: loop exit
PB: predicated region body
PF: predicated region fallthrough
CT: control target
= control target key end

     0   :  { %s3406_s9 = smov 0   ;;  %s3601_s0 = inlined_call_operand.vmem [shape: bf16[2048,128], index: 0, kind: input, shape index: {}]   ;;  %s3602_s1 = inlined_call_operand.vmem [shape: bf16[128,128], index: 1, kind: input, shape index: {}]   ;;  %s3603_s2 = inlined_call_operand.vmem [shape: bf16[2048,128], index: 2, kind: output, shape index: {}]  }
   0x1 LB: > { %s2349_s10 = sadd.s32 4294967295, %s3389_s9   ;;  %p2353_p0 = scmp.ge.s32.totalorder %s3389_s9, 1  ;;  %s3389_s9 = sphi %s3406_s9, %s12_s9  }
   0x2   : > { %p113_p1 = scmp.lt.s32.totalorder %s3389_s9, 3 }
   0x4   : > { %p114_p2 = pnand %p2353_p0, %p113_p1 }
   0x5   : > { %v3311_v0 = vld [vmem:[%s3602_s1] sm:$0xff] (!%p114_p2)   ;;  %s2354_s13 = sshll.u32 (!%p114_p2), %s2349_s10, 7  ;;  %v3312_v1 = vld [vmem:[%s3602_s1 + $0x8] sm:$0xff] (!%p114_p2)   ;;  %v3313_v2 = vld [vmem:[%s3602_s1 + $0x10] sm:$0xff] (!%p114_p2)  }
   0x6   : > { %117 = sbr.rel (%p114_p2) target bundleno = 381 (0x17d), region = 28  ;;  %p136_p3 = scmp.lt.s32.totalorder (!%p114_p2), %s2354_s13, 255  ;;  %3143 = vmatprep.subr.bf16.mxu0 (!%p114_p2), %v3311_v0  ;;  %3287 = vmatprep.subr.bf16.mxu1 (!%p114_p2), %v3311_v0  ;;  %v3314_v3 = vld [vmem:[%s3602_s1 + $0x18] sm:$0xff] (!%p114_p2)   ;;  %v3315_v6 = vld [vmem:[%s3602_s1 + $0x20] sm:$0xff] (!%p114_p2)   ;;  %v3316_v7 = vld [vmem:[%s3602_s1 + $0x28] sm:$0xff] (!%p114_p2)  }
   0x7   : > { %3144 = vmatpush3.bf16.msra.mxu0 (!%p114_p2), %v3311_v0  ;;  %3295 = vmatpush3.bf16.msra.mxu1 (!%p114_p2), %v3311_v0  ;;  %v3317_v8 = vld [vmem:[%s3602_s1 + $0x30] sm:$0xff] (!%p114_p2)   ;;  %v3318_v9 = vld [vmem:[%s3602_s1 + $0x38] sm:$0xff] (!%p114_p2)  }
   0x8   : > { %3145 = vmatprep.subr.bf16.mxu0 (!%p114_p2), %v3312_v1  ;;  %3288 = vmatprep.subr.bf16.mxu1 (!%p114_p2), %v3312_v1 }
   0xb   : > { %3146 = vmatpush3.bf16.msra.mxu0 (!%p114_p2), %v3312_v1  ;;  %3296 = vmatpush3.bf16.msra.mxu1 (!%p114_p2), %v3312_v1 }
   0xc   : > { %3147 = vmatprep.subr.bf16.mxu0 (!%p114_p2), %v3313_v2  ;;  %3289 = vmatprep.subr.bf16.mxu1 (!%p114_p2), %v3313_v2 }
   0xd   : > { %s3605_s13 = smov (!%p136_p3, %s2354_s13), 255 }
   0xe   : > { %s2355_s18 = sshll.u32 %s3605_s13, 2 }
   0xf   : > { %s3431_s21 = scalar_lea.vmem %s3601_s0, %s2355_s18  ;;  %3148 = vmatpush3.bf16.msra.mxu0 %v3313_v2  ;;  %3297 = vmatpush3.bf16.msra.mxu1 %v3313_v2  ;;  %s3517_s6 = scalar_lea.vmem %s3603_s2, %s2355_s18 }
  0x10   : > { %v3319_v4 = vld [vmem:[%s3431_s21] sm:$0xff]   ;;  %3149 = vmatprep.subr.bf16.mxu0 %v3314_v3  ;;  %3290 = vmatprep.subr.bf16.mxu1 %v3314_v3  ;;  %v3321_v10 = vld [vmem:[%s3431_s21 + $0x8] sm:$0xff]   ;;  %v3323_v12 = vld [vmem:[%s3431_s21 + $0x10] sm:$0xff]  }
  0x11   : > { %v3320_v5 = vld [vmem:[%s3431_s21 + $0x100] sm:$0xff]   ;;  %3159 = vmatprep.mubr.bf16.mxu0 %v3319_v4  ;;  %v3322_v11 = vld [vmem:[%s3431_s21 + $0x108] sm:$0xff]   ;;  %v3324_v13 = vld [vmem:[%s3431_s21 + $0x110] sm:$0xff]  }
  0x12   : > { %3223 = vmatprep.mubr.bf16.mxu1 %v3320_v5  ;;  %v3325_v14 = vld [vmem:[%s3431_s21 + $0x18] sm:$0xff]   ;;  %v3327_v16 = vld [vmem:[%s3431_s21 + $0x20] sm:$0xff]   ;;  %v3329_v18 = vld [vmem:[%s3431_s21 + $0x28] sm:$0xff]  }
  0x13   : > { %3150 = vmatpush3.bf16.msra.mxu0 %v3314_v3  ;;  %3298 = vmatpush3.bf16.msra.mxu1 %v3314_v3  ;;  %v3326_v15 = vld [vmem:[%s3431_s21 + $0x118] sm:$0xff]   ;;  %v3328_v17 = vld [vmem:[%s3431_s21 + $0x120] sm:$0xff]   ;;  %v3330_v19 = vld [vmem:[%s3431_s21 + $0x128] sm:$0xff]  }
  0x14   : > { %3151 = vmatprep.subr.bf16.mxu0 %v3315_v6  ;;  %3291 = vmatprep.subr.bf16.mxu1 %v3315_v6  ;;  %v3331_v20 = vld [vmem:[%s3431_s21 + $0x30] sm:$0xff]   ;;  %v3333_v22 = vld [vmem:[%s3431_s21 + $0x38] sm:$0xff]   ;;  %v3335_v24 = vld [vmem:[%s3431_s21 + $0x40] sm:$0xff]  }
  0x15   : > { %v3332_v21 = vld [vmem:[%s3431_s21 + $0x130] sm:$0xff]   ;;  %v3334_v23 = vld [vmem:[%s3431_s21 + $0x138] sm:$0xff]   ;;  %v3336_v25 = vld [vmem:[%s3431_s21 + $0x140] sm:$0xff]  }
  0x16   : > { %v3337_v26 = vld [vmem:[%s3431_s21 + $0x48] sm:$0xff]   ;;  %v3339_v28 = vld [vmem:[%s3431_s21 + $0x50] sm:$0xff]   ;;  %v3341_v30 = vld [vmem:[%s3431_s21 + $0x58] sm:$0xff]  }
  0x17   : > { %3152 = vmatpush3.bf16.msra.mxu0 %v3315_v6  ;;  %3299 = vmatpush3.bf16.msra.mxu1 %v3315_v6  ;;  %v3338_v27 = vld [vmem:[%s3431_s21 + $0x148] sm:$0xff]   ;;  %v3340_v29 = vld [vmem:[%s3431_s21 + $0x150] sm:$0xff]   ;;  %v3342_v31 = vld [vmem:[%s3431_s21 + $0x158] sm:$0xff]  }
  0x18   : > { %3153 = vmatprep.subr.bf16.mxu0 %v3316_v7  ;;  %3292 = vmatprep.subr.bf16.mxu1 %v3316_v7  ;;  %v3343_v32 = vld [vmem:[%s3431_s21 + $0x60] sm:$0xff]   ;;  %v3345_v34 = vld [vmem:[%s3431_s21 + $0x68] sm:$0xff]   ;;  %v3347_v36 = vld [vmem:[%s3431_s21 + $0x70] sm:$0xff]  }
  0x19   : > { %v3344_v33 = vld [vmem:[%s3431_s21 + $0x160] sm:$0xff]   ;;  %v3346_v35 = vld [vmem:[%s3431_s21 + $0x168] sm:$0xff]   ;;  %v3348_v37 = vld [vmem:[%s3431_s21 + $0x170] sm:$0xff]  }
  0x1a   : > { %v3349_v38 = vld [vmem:[%s3431_s21 + $0x78] sm:$0xff]   ;;  %v3351_v40 = vld [vmem:[%s3431_s21 + $0x80] sm:$0xff]   ;;  %v3353_v42 = vld [vmem:[%s3431_s21 + $0x88] sm:$0xff]  }
  0x1b   : > { %3154 = vmatpush3.bf16.msra.mxu0 %v3316_v7  ;;  %3300 = vmatpush3.bf16.msra.mxu1 %v3316_v7  ;;  %v3350_v39 = vld [vmem:[%s3431_s21 + $0x178] sm:$0xff]   ;;  %v3352_v41 = vld [vmem:[%s3431_s21 + $0x180] sm:$0xff]   ;;  %v3354_v43 = vld [vmem:[%s3431_s21 + $0x188] sm:$0xff]  }
  0x1c   : > { %3155 = vmatprep.subr.bf16.mxu0 %v3317_v8  ;;  %3293 = vmatprep.subr.bf16.mxu1 %v3317_v8  ;;  %v3355_v44 = vld [vmem:[%s3431_s21 + $0x90] sm:$0xff]   ;;  %v3357_v46 = vld [vmem:[%s3431_s21 + $0x98] sm:$0xff]   ;;  %v3359_v48 = vld [vmem:[%s3431_s21 + $0xa0] sm:$0xff]  }
  0x1d   : > { %v3356_v45 = vld [vmem:[%s3431_s21 + $0x190] sm:$0xff]   ;;  %v3358_v47 = vld [vmem:[%s3431_s21 + $0x198] sm:$0xff]   ;;  %v3360_v49 = vld [vmem:[%s3431_s21 + $0x1a0] sm:$0xff]  }
  0x1e   : > { %v3361_v50 = vld [vmem:[%s3431_s21 + $0xa8] sm:$0xff]   ;;  %v3363_v52 = vld [vmem:[%s3431_s21 + $0xb0] sm:$0xff]   ;;  %v3365_v54 = vld [vmem:[%s3431_s21 + $0xb8] sm:$0xff]  }
  0x1f   : > { %3156 = vmatpush3.bf16.msra.mxu0 %v3317_v8  ;;  %3301 = vmatpush3.bf16.msra.mxu1 %v3317_v8  ;;  %v3362_v51 = vld [vmem:[%s3431_s21 + $0x1a8] sm:$0xff]   ;;  %v3364_v53 = vld [vmem:[%s3431_s21 + $0x1b0] sm:$0xff]   ;;  %v3366_v55 = vld [vmem:[%s3431_s21 + $0x1b8] sm:$0xff]  }
  0x20   : > { %3157 = vmatprep.subr.bf16.mxu0 %v3318_v9  ;;  %3294 = vmatprep.subr.bf16.mxu1 %v3318_v9  ;;  %v3367_v56 = vld [vmem:[%s3431_s21 + $0xc0] sm:$0xff]   ;;  %v3369_v58 = vld [vmem:[%s3431_s21 + $0xc8] sm:$0xff]   ;;  %v3371_v60 = vld [vmem:[%s3431_s21 + $0xd0] sm:$0xff]  }
  0x21   : > { %v3368_v57 = vld [vmem:[%s3431_s21 + $0x1c0] sm:$0xff]   ;;  %v3370_v59 = vld [vmem:[%s3431_s21 + $0x1c8] sm:$0xff]   ;;  %v3372_v61 = vld [vmem:[%s3431_s21 + $0x1d0] sm:$0xff]  }
  0x22   : > { %v3373_v62 = vld [vmem:[%s3431_s21 + $0xd8] sm:$0xff]   ;;  %v3375_v0 = vld [vmem:[%s3431_s21 + $0xe0] sm:$0xff]   ;;  %v3377_v2 = vld [vmem:[%s3431_s21 + $0xe8] sm:$0xff]  }
  0x23   : > { %3158 = vmatpush3.bf16.msra.mxu0 %v3318_v9  ;;  %3302 = vmatpush3.bf16.msra.mxu1 %v3318_v9  ;;  %v3374_v63 = vld [vmem:[%s3431_s21 + $0x1d8] sm:$0xff]   ;;  %v3376_v1 = vld [vmem:[%s3431_s21 + $0x1e0] sm:$0xff]   ;;  %v3378_v3 = vld [vmem:[%s3431_s21 + $0x1e8] sm:$0xff]  }
  0x24   : > { %v3379_v4 = vld [vmem:[%s3431_s21 + $0xf0] sm:$0xff]   ;;  %v3381_v6 = vld [vmem:[%s3431_s21 + $0xf8] sm:$0xff]  }
  0x25   : > { %v3380_v5 = vld [vmem:[%s3431_s21 + $0x1f0] sm:$0xff]   ;;  %v3382_v7 = vld [vmem:[%s3431_s21 + $0x1f8] sm:$0xff]  }
  0x26   : > { %3160 = vmatmul.mubr.bf16.vlgmr.msra.gmra.mrb[0].mxu0 %v3321_v10  ;;  %3224 = vmatmul.mubr.bf16.vlgmr.msra.gmra.mrb[0].mxu1 %v3322_v11 }
  0x27   : > { %3163 = vmatprep.mubr.bf16.mxu0 %v3323_v12  ;;  %3227 = vmatprep.mubr.bf16.mxu1 %v3324_v13 }
  0x2e   : > { %3164 = vmatmul.mubr.bf16.gmra.mrb[4].mxu0 %v3325_v14  ;;  %3228 = vmatmul.mubr.bf16.gmra.mrb[4].mxu1 %v3326_v15 }
  0x2f   : > { %3167 = vmatprep.mubr.bf16.mxu0 %v3327_v16  ;;  %3231 = vmatprep.mubr.bf16.mxu1 %v3328_v17 }
  0x36   : > { %3168 = vmatmul.mubr.bf16.gmra.mrb[8].mxu0 %v3329_v18  ;;  %3232 = vmatmul.mubr.bf16.gmra.mrb[8].mxu1 %v3330_v19 }
  0x37   : > { %3171 = vmatprep.mubr.bf16.mxu0 %v3331_v20  ;;  %3235 = vmatprep.mubr.bf16.mxu1 %v3332_v21 }
  0x3e   : > { %3172 = vmatmul.mubr.bf16.gmra.mrb[12].mxu0 %v3333_v22  ;;  %3236 = vmatmul.mubr.bf16.gmra.mrb[12].mxu1 %v3334_v23 }
  0x3f   : > { %3175 = vmatprep.mubr.bf16.mxu0 %v3335_v24  ;;  %3239 = vmatprep.mubr.bf16.mxu1 %v3336_v25 }
  0x46   : > { %3176 = vmatmul.mubr.bf16.gmra.mrb[16].mxu0 %v3337_v26  ;;  %3240 = vmatmul.mubr.bf16.gmra.mrb[16].mxu1 %v3338_v27 }
  0x47   : > { %3179 = vmatprep.mubr.bf16.mxu0 %v3339_v28  ;;  %3243 = vmatprep.mubr.bf16.mxu1 %v3340_v29 }
  0x4e   : > { %3180 = vmatmul.mubr.bf16.gmra.mrb[20].mxu0 %v3341_v30  ;;  %3244 = vmatmul.mubr.bf16.gmra.mrb[20].mxu1 %v3342_v31 }
  0x4f   : > { %3183 = vmatprep.mubr.bf16.mxu0 %v3343_v32  ;;  %3247 = vmatprep.mubr.bf16.mxu1 %v3344_v33 }
  0x56   : > { %3184 = vmatmul.mubr.bf16.gmra.mrb[24].mxu0 %v3345_v34  ;;  %3248 = vmatmul.mubr.bf16.gmra.mrb[24].mxu1 %v3346_v35 }
  0x57   : > { %3187 = vmatprep.mubr.bf16.mxu0 %v3347_v36  ;;  %3251 = vmatprep.mubr.bf16.mxu1 %v3348_v37 }
  0x5e   : > { %3188 = vmatmul.mubr.bf16.gmra.mrb[28].mxu0 %v3349_v38  ;;  %3252 = vmatmul.mubr.bf16.gmra.mrb[28].mxu1 %v3350_v39 }
  0x5f   : > { %3191 = vmatprep.mubr.bf16.mxu0 %v3351_v40  ;;  %3255 = vmatprep.mubr.bf16.mxu1 %v3352_v41 }
  0x66   : > { %3192 = vmatmul.mubr.bf16.gmra.mrb[32].mxu0 %v3353_v42  ;;  %3256 = vmatmul.mubr.bf16.gmra.mrb[32].mxu1 %v3354_v43 }
  0x67   : > { %3195 = vmatprep.mubr.bf16.mxu0 %v3355_v44  ;;  %3259 = vmatprep.mubr.bf16.mxu1 %v3356_v45 }
  0x6e   : > { %3196 = vmatmul.mubr.bf16.gmra.mrb[36].mxu0 %v3357_v46  ;;  %3260 = vmatmul.mubr.bf16.gmra.mrb[36].mxu1 %v3358_v47 }
  0x6f   : > { %3199 = vmatprep.mubr.bf16.mxu0 %v3359_v48  ;;  %3263 = vmatprep.mubr.bf16.mxu1 %v3360_v49 }
  0x76   : > { %3200 = vmatmul.mubr.bf16.gmra.mrb[40].mxu0 %v3361_v50  ;;  %3264 = vmatmul.mubr.bf16.gmra.mrb[40].mxu1 %v3362_v51 }
  0x77   : > { %3203 = vmatprep.mubr.bf16.mxu0 %v3363_v52  ;;  %3267 = vmatprep.mubr.bf16.mxu1 %v3364_v53 }
  0x7e   : > { %3204 = vmatmul.mubr.bf16.gmra.mrb[44].mxu0 %v3365_v54  ;;  %3268 = vmatmul.mubr.bf16.gmra.mrb[44].mxu1 %v3366_v55 }
  0x7f   : > { %3207 = vmatprep.mubr.bf16.mxu0 %v3367_v56  ;;  %3271 = vmatprep.mubr.bf16.mxu1 %v3368_v57 }
  0x86   : > { %3208 = vmatmul.mubr.bf16.gmra.mrb[48].mxu0 %v3369_v58  ;;  %3272 = vmatmul.mubr.bf16.gmra.mrb[48].mxu1 %v3370_v59 }
  0x87   : > { %3211 = vmatprep.mubr.bf16.mxu0 %v3371_v60  ;;  %3275 = vmatprep.mubr.bf16.mxu1 %v3372_v61 }
  0x8e   : > { %3212 = vmatmul.mubr.bf16.gmra.mrb[52].mxu0 %v3373_v62  ;;  %3276 = vmatmul.mubr.bf16.gmra.mrb[52].mxu1 %v3374_v63 }
  0x8f   : > { %3215 = vmatprep.mubr.bf16.mxu0 %v3375_v0  ;;  %3279 = vmatprep.mubr.bf16.mxu1 %v3376_v1 }
  0x96   : > { %3216 = vmatmul.mubr.bf16.gmra.mrb[56].mxu0 %v3377_v2  ;;  %3280 = vmatmul.mubr.bf16.gmra.mrb[56].mxu1 %v3378_v3 }
  0x97   : > { %3219 = vmatprep.mubr.bf16.mxu0 %v3379_v4  ;;  %3283 = vmatprep.mubr.bf16.mxu1 %v3380_v5 }
  0x9e   : > { %3220 = vmatmul.mubr.bf16.gmra.mrb[60].mxu0 %v3381_v6  ;;  %3284 = vmatmul.mubr.bf16.gmra.mrb[60].mxu1 %v3382_v7 }
  0xf9   : > { %v3161_v8 = vpop.f32.mrb[0].mxu0  ;;  %v3225_v9 = vpop.f32.mrb[0].mxu1 }
  0xfa   : > { %vm1271_vm0 = vcmp.gt.f32.partialorder %v3161_v8, 0.0  ;;  %v1399_v10 = vmul.f32 0.2, %v3161_v8  ;;  %v1463_v11 = vmul.f32 0.2, %v3225_v9  ;;  %vm1335_vm1 = vcmp.gt.f32.partialorder %v3225_v9, 0.0 }
  0xfb   : > { %v758_v12 = vpop.f32.mrb[1].mxu0  ;;  %v1014_v13 = vpop.f32.mrb[1].mxu1 }
  0xfc   : > { %v1397_v14 = vmul.f32 0.2, %v758_v12  ;;  %v3162_v15 = vpop.f32.mrb[2].mxu0  ;;  %v3226_v16 = vpop.f32.mrb[2].mxu1  ;;  %v1527_v17 = vsel %vm1271_vm0, %v3161_v8, %v1399_v10  ;;  %v1461_v18 = vmul.f32 0.2, %v1014_v13  ;;  %v1591_v20 = vsel %vm1335_vm1, %v3225_v9, %v1463_v11 }
  0xfd   : > { %vm1272_vm2 = vcmp.gt.f32.partialorder %v3162_v15, 0.0  ;;  %v1400_v19 = vmul.f32 0.2, %v3162_v15  ;;  %vm1269_vm3 = vcmp.gt.f32.partialorder %v758_v12, 0.0  ;;  %vm1336_vm4 = vcmp.gt.f32.partialorder %v3226_v16, 0.0  ;;  %v761_v22 = vpop.f32.mrb[3].mxu0 }
  0xfe   : > { %v1464_v21 = vmul.f32 0.2, %v3226_v16  ;;  %v1017_v23 = vpop.f32.mrb[3].mxu1  ;;  %vm1333_vm5 = vcmp.gt.f32.partialorder %v1014_v13, 0.0  ;;  %vm1270_vm6 = vcmp.gt.f32.partialorder %v761_v22, 0.0  ;;  %v1525_v29 = vsel %vm1269_vm3, %v758_v12, %v1397_v14 }
  0xff   : > { %v1528_v24 = vsel %vm1272_vm2, %v3162_v15, %v1400_v19  ;;  %v1398_v25 = vmul.f32 0.2, %v761_v22  ;;  %vm1334_vm7 = vcmp.gt.f32.partialorder %v1017_v23, 0.0  ;;  %v1462_v28 = vmul.f32 0.2, %v1017_v23 }
 0x100   : > { %v2696_v26 = vpack.c.bf16 %v1528_v24, %v1527_v17  ;;  %v1592_v27 = vsel %vm1336_vm4, %v3226_v16, %v1464_v21  ;;  %v1589_v34 = vsel %vm1333_vm5, %v1014_v13, %v1461_v18 }
 0x101   : > { %v2856_v30 = vpack.c.bf16 %v1592_v27, %v1591_v20  ;;  %v1526_v31 = vsel %vm1270_vm6, %v761_v22, %v1398_v25  ;;  %v3165_v32 = vpop.f32.mrb[4].mxu0  ;;  %v3229_v33 = vpop.f32.mrb[4].mxu1  ;;  %v1590_v36 = vsel %vm1334_vm7, %v1017_v23, %v1462_v28 }
 0x102   : > { %3008 = vst [vmem:[%s3517_s6 + $0x8] sm:$0xff] %v2696_v26   ;;  %v2691_v35 = vpack.c.bf16 %v1526_v31, %v1525_v29  ;;  %v1403_v37 = vmul.f32 0.2, %v3165_v32  ;;  %v774_v38 = vpop.f32.mrb[5].mxu0  ;;  %v1030_v39 = vpop.f32.mrb[5].mxu1  ;;  %v2851_v40 = vpack.c.bf16 %v1590_v36, %v1589_v34  ;;  %vm1275_vm8 = vcmp.gt.f32.partialorder %v3165_v32, 0.0 }
 0x103   : > { %3040 = vst [vmem:[%s3517_s6 + $0x108] sm:$0xff] %v2856_v30   ;;  %v1467_v41 = vmul.f32 0.2, %v3229_v33  ;;  %v3166_v42 = vpop.f32.mrb[6].mxu0  ;;  %v3230_v43 = vpop.f32.mrb[6].mxu1  ;;  %vm1339_vm9 = vcmp.gt.f32.partialorder %v3229_v33, 0.0 }
 0x104   : > { %2692 = vst [vmem:[%s3517_s6] sm:$0xff] %v2691_v35   ;;  %v1401_v44 = vmul.f32 0.2, %v774_v38  ;;  %v1465_v45 = vmul.f32 0.2, %v1030_v39  ;;  %v777_v46 = vpop.f32.mrb[7].mxu0  ;;  %3039 = vst [vmem:[%s3517_s6 + $0x100] sm:$0xff] %v2851_v40   ;;  %v1531_v49 = vsel %vm1275_vm8, %v3165_v32, %v1403_v37 }
 0x105   : > { %vm1273_vm10 = vcmp.gt.f32.partialorder %v774_v38, 0.0  ;;  %vm1276_vm11 = vcmp.gt.f32.partialorder %v3166_v42, 0.0  ;;  %v1404_v47 = vmul.f32 0.2, %v3166_v42  ;;  %vm1340_vm12 = vcmp.gt.f32.partialorder %v3230_v43, 0.0  ;;  %v1033_v48 = vpop.f32.mrb[7].mxu1 }
 0x106   : > { %vm1337_vm13 = vcmp.gt.f32.partialorder %v1030_v39, 0.0  ;;  %v1468_v50 = vmul.f32 0.2, %v3230_v43  ;;  %vm1274_vm14 = vcmp.gt.f32.partialorder %v777_v46, 0.0  ;;  %v1402_v52 = vmul.f32 0.2, %v777_v46 }
 0x107   : > { %v1532_v51 = vsel %vm1276_vm11, %v3166_v42, %v1404_v47  ;;  %vm1338_vm15 = vcmp.gt.f32.partialorder %v1033_v48, 0.0  ;;  %v1466_v53 = vmul.f32 0.2, %v1033_v48  ;;  %v1595_v54 = vsel %vm1339_vm9, %v3229_v33, %v1467_v41 }
 0x108   : > { %v1529_v55 = vsel %vm1273_vm10, %v774_v38, %v1401_v44  ;;  %v2706_v56 = vpack.c.bf16 %v1532_v51, %v1531_v49  ;;  %v1596_v57 = vsel %vm1340_vm12, %v3230_v43, %v1468_v50  ;;  %v1593_v58 = vsel %vm1337_vm13, %v1030_v39, %v1465_v45 }
 0x109   : > { %v2866_v59 = vpack.c.bf16 %v1596_v57, %v1595_v54  ;;  %v1530_v60 = vsel %vm1274_vm14, %v777_v46, %v1402_v52  ;;  %v1594_v61 = vsel %vm1338_vm15, %v1033_v48, %v1466_v53  ;;  %v3169_v62 = vpop.f32.mrb[8].mxu0  ;;  %v3233_v63 = vpop.f32.mrb[8].mxu1 }
 0x10a   : > { %3010 = vst [vmem:[%s3517_s6 + $0x18] sm:$0xff] %v2706_v56   ;;  %v2701_v0 = vpack.c.bf16 %v1530_v60, %v1529_v55  ;;  %v2861_v1 = vpack.c.bf16 %v1594_v61, %v1593_v58  ;;  %vm1279_vm0 = vcmp.gt.f32.partialorder %v3169_v62, 0.0  ;;  %v1407_v2 = vmul.f32 0.2, %v3169_v62  ;;  %v790_v3 = vpop.f32.mrb[9].mxu0  ;;  %v1046_v4 = vpop.f32.mrb[9].mxu1 }
 0x10b   : > { %3042 = vst [vmem:[%s3517_s6 + $0x118] sm:$0xff] %v2866_v59   ;;  %vm1343_vm1 = vcmp.gt.f32.partialorder %v3233_v63, 0.0  ;;  %v1471_v5 = vmul.f32 0.2, %v3233_v63  ;;  %v1405_v6 = vmul.f32 0.2, %v790_v3 }
 0x10c   : > { %3009 = vst [vmem:[%s3517_s6 + $0x10] sm:$0xff] %v2701_v0   ;;  %3041 = vst [vmem:[%s3517_s6 + $0x110] sm:$0xff] %v2861_v1   ;;  %v1469_v7 = vmul.f32 0.2, %v1046_v4  ;;  %v3170_v8 = vpop.f32.mrb[10].mxu0  ;;  %v3234_v9 = vpop.f32.mrb[10].mxu1  ;;  %v1535_v10 = vsel %vm1279_vm0, %v3169_v62, %v1407_v2 }
 0x10d   : > { %vm1277_vm2 = vcmp.gt.f32.partialorder %v790_v3, 0.0  ;;  %vm1280_vm3 = vcmp.gt.f32.partialorder %v3170_v8, 0.0  ;;  %v1408_v11 = vmul.f32 0.2, %v3170_v8  ;;  %v793_v12 = vpop.f32.mrb[11].mxu0  ;;  %v1049_v13 = vpop.f32.mrb[11].mxu1  ;;  %v1599_v18 = vsel %vm1343_vm1, %v3233_v63, %v1471_v5 }
 0x10e   : > { %vm1341_vm4 = vcmp.gt.f32.partialorder %v1046_v4, 0.0  ;;  %vm1344_vm5 = vcmp.gt.f32.partialorder %v3234_v9, 0.0  ;;  %v1472_v14 = vmul.f32 0.2, %v3234_v9  ;;  %vm1278_vm6 = vcmp.gt.f32.partialorder %v793_v12, 0.0 }
 0x10f   : > { %v1536_v15 = vsel %vm1280_vm3, %v3170_v8, %v1408_v11  ;;  %v1406_v16 = vmul.f32 0.2, %v793_v12  ;;  %vm1342_vm7 = vcmp.gt.f32.partialorder %v1049_v13, 0.0  ;;  %v1470_v17 = vmul.f32 0.2, %v1049_v13 }
 0x110   : > { %v1533_v19 = vsel %vm1277_vm2, %v790_v3, %v1405_v6  ;;  %v2716_v20 = vpack.c.bf16 %v1536_v15, %v1535_v10  ;;  %v1600_v21 = vsel %vm1344_vm5, %v3234_v9, %v1472_v14  ;;  %v1597_v22 = vsel %vm1341_vm4, %v1046_v4, %v1469_v7 }
 0x111   : > { %v2876_v23 = vpack.c.bf16 %v1600_v21, %v1599_v18  ;;  %v1534_v24 = vsel %vm1278_vm6, %v793_v12, %v1406_v16  ;;  %v1598_v25 = vsel %vm1342_vm7, %v1049_v13, %v1470_v17  ;;  %v3173_v26 = vpop.f32.mrb[12].mxu0  ;;  %v3237_v27 = vpop.f32.mrb[12].mxu1 }
 0x112   : > { %3012 = vst [vmem:[%s3517_s6 + $0x28] sm:$0xff] %v2716_v20   ;;  %v2711_v28 = vpack.c.bf16 %v1534_v24, %v1533_v19  ;;  %v2871_v29 = vpack.c.bf16 %v1598_v25, %v1597_v22  ;;  %vm1283_vm8 = vcmp.gt.f32.partialorder %v3173_v26, 0.0  ;;  %v1411_v30 = vmul.f32 0.2, %v3173_v26  ;;  %v806_v31 = vpop.f32.mrb[13].mxu0  ;;  %v1062_v32 = vpop.f32.mrb[13].mxu1 }
 0x113   : > { %3044 = vst [vmem:[%s3517_s6 + $0x128] sm:$0xff] %v2876_v23   ;;  %vm1347_vm9 = vcmp.gt.f32.partialorder %v3237_v27, 0.0  ;;  %v1475_v33 = vmul.f32 0.2, %v3237_v27  ;;  %v1409_v34 = vmul.f32 0.2, %v806_v31 }
 0x114   : > { %3011 = vst [vmem:[%s3517_s6 + $0x20] sm:$0xff] %v2711_v28   ;;  %3043 = vst [vmem:[%s3517_s6 + $0x120] sm:$0xff] %v2871_v29   ;;  %v1473_v35 = vmul.f32 0.2, %v1062_v32  ;;  %v3174_v36 = vpop.f32.mrb[14].mxu0  ;;  %v3238_v37 = vpop.f32.mrb[14].mxu1  ;;  %v1539_v38 = vsel %vm1283_vm8, %v3173_v26, %v1411_v30 }
 0x115   : > { %vm1281_vm10 = vcmp.gt.f32.partialorder %v806_v31, 0.0  ;;  %vm1284_vm11 = vcmp.gt.f32.partialorder %v3174_v36, 0.0  ;;  %v1412_v39 = vmul.f32 0.2, %v3174_v36  ;;  %v809_v40 = vpop.f32.mrb[15].mxu0  ;;  %v1065_v41 = vpop.f32.mrb[15].mxu1  ;;  %v1603_v46 = vsel %vm1347_vm9, %v3237_v27, %v1475_v33 }
 0x116   : > { %vm1345_vm12 = vcmp.gt.f32.partialorder %v1062_v32, 0.0  ;;  %vm1348_vm13 = vcmp.gt.f32.partialorder %v3238_v37, 0.0  ;;  %v1476_v42 = vmul.f32 0.2, %v3238_v37  ;;  %vm1282_vm14 = vcmp.gt.f32.partialorder %v809_v40, 0.0 }
 0x117   : > { %v1540_v43 = vsel %vm1284_vm11, %v3174_v36, %v1412_v39  ;;  %v1410_v44 = vmul.f32 0.2, %v809_v40  ;;  %vm1346_vm15 = vcmp.gt.f32.partialorder %v1065_v41, 0.0  ;;  %v1474_v45 = vmul.f32 0.2, %v1065_v41 }
 0x118   : > { %v1537_v47 = vsel %vm1281_vm10, %v806_v31, %v1409_v34  ;;  %v2726_v48 = vpack.c.bf16 %v1540_v43, %v1539_v38  ;;  %v1604_v49 = vsel %vm1348_vm13, %v3238_v37, %v1476_v42  ;;  %v1601_v50 = vsel %vm1345_vm12, %v1062_v32, %v1473_v35 }
 0x119   : > { %v2886_v51 = vpack.c.bf16 %v1604_v49, %v1603_v46  ;;  %v1538_v52 = vsel %vm1282_vm14, %v809_v40, %v1410_v44  ;;  %v1602_v53 = vsel %vm1346_vm15, %v1065_v41, %v1474_v45  ;;  %v3177_v54 = vpop.f32.mrb[16].mxu0  ;;  %v3241_v55 = vpop.f32.mrb[16].mxu1 }
 0x11a   : > { %3014 = vst [vmem:[%s3517_s6 + $0x38] sm:$0xff] %v2726_v48   ;;  %v2721_v56 = vpack.c.bf16 %v1538_v52, %v1537_v47  ;;  %v2881_v57 = vpack.c.bf16 %v1602_v53, %v1601_v50  ;;  %vm1287_vm0 = vcmp.gt.f32.partialorder %v3177_v54, 0.0  ;;  %v1415_v58 = vmul.f32 0.2, %v3177_v54  ;;  %v822_v59 = vpop.f32.mrb[17].mxu0  ;;  %v1078_v60 = vpop.f32.mrb[17].mxu1 }
 0x11b   : > { %3046 = vst [vmem:[%s3517_s6 + $0x138] sm:$0xff] %v2886_v51   ;;  %vm1351_vm1 = vcmp.gt.f32.partialorder %v3241_v55, 0.0  ;;  %v1479_v61 = vmul.f32 0.2, %v3241_v55  ;;  %v1413_v62 = vmul.f32 0.2, %v822_v59 }
 0x11c   : > { %3013 = vst [vmem:[%s3517_s6 + $0x30] sm:$0xff] %v2721_v56   ;;  %3045 = vst [vmem:[%s3517_s6 + $0x130] sm:$0xff] %v2881_v57   ;;  %v1477_v63 = vmul.f32 0.2, %v1078_v60  ;;  %v3178_v0 = vpop.f32.mrb[18].mxu0  ;;  %v3242_v1 = vpop.f32.mrb[18].mxu1  ;;  %v1543_v2 = vsel %vm1287_vm0, %v3177_v54, %v1415_v58 }
 0x11d   : > { %vm1285_vm2 = vcmp.gt.f32.partialorder %v822_v59, 0.0  ;;  %vm1288_vm3 = vcmp.gt.f32.partialorder %v3178_v0, 0.0  ;;  %v1416_v3 = vmul.f32 0.2, %v3178_v0  ;;  %v825_v4 = vpop.f32.mrb[19].mxu0  ;;  %v1081_v5 = vpop.f32.mrb[19].mxu1  ;;  %v1607_v10 = vsel %vm1351_vm1, %v3241_v55, %v1479_v61 }
 0x11e   : > { %vm1349_vm4 = vcmp.gt.f32.partialorder %v1078_v60, 0.0  ;;  %vm1352_vm5 = vcmp.gt.f32.partialorder %v3242_v1, 0.0  ;;  %v1480_v6 = vmul.f32 0.2, %v3242_v1  ;;  %vm1286_vm6 = vcmp.gt.f32.partialorder %v825_v4, 0.0 }
 0x11f   : > { %v1544_v7 = vsel %vm1288_vm3, %v3178_v0, %v1416_v3  ;;  %v1414_v8 = vmul.f32 0.2, %v825_v4  ;;  %vm1350_vm7 = vcmp.gt.f32.partialorder %v1081_v5, 0.0  ;;  %v1478_v9 = vmul.f32 0.2, %v1081_v5 }
 0x120   : > { %v1541_v11 = vsel %vm1285_vm2, %v822_v59, %v1413_v62  ;;  %v2736_v12 = vpack.c.bf16 %v1544_v7, %v1543_v2  ;;  %v1608_v13 = vsel %vm1352_vm5, %v3242_v1, %v1480_v6  ;;  %v1605_v14 = vsel %vm1349_vm4, %v1078_v60, %v1477_v63 }
 0x121   : > { %v2896_v15 = vpack.c.bf16 %v1608_v13, %v1607_v10  ;;  %v1542_v16 = vsel %vm1286_vm6, %v825_v4, %v1414_v8  ;;  %v1606_v17 = vsel %vm1350_vm7, %v1081_v5, %v1478_v9  ;;  %v3181_v18 = vpop.f32.mrb[20].mxu0  ;;  %v3245_v19 = vpop.f32.mrb[20].mxu1 }
 0x122   : > { %3016 = vst [vmem:[%s3517_s6 + $0x48] sm:$0xff] %v2736_v12   ;;  %v2731_v20 = vpack.c.bf16 %v1542_v16, %v1541_v11  ;;  %v2891_v21 = vpack.c.bf16 %v1606_v17, %v1605_v14  ;;  %vm1291_vm8 = vcmp.gt.f32.partialorder %v3181_v18, 0.0  ;;  %v1419_v22 = vmul.f32 0.2, %v3181_v18  ;;  %v838_v23 = vpop.f32.mrb[21].mxu0  ;;  %v1094_v24 = vpop.f32.mrb[21].mxu1 }
 0x123   : > { %3048 = vst [vmem:[%s3517_s6 + $0x148] sm:$0xff] %v2896_v15   ;;  %vm1355_vm9 = vcmp.gt.f32.partialorder %v3245_v19, 0.0  ;;  %v1483_v25 = vmul.f32 0.2, %v3245_v19  ;;  %v1417_v26 = vmul.f32 0.2, %v838_v23 }
 0x124   : > { %3015 = vst [vmem:[%s3517_s6 + $0x40] sm:$0xff] %v2731_v20   ;;  %3047 = vst [vmem:[%s3517_s6 + $0x140] sm:$0xff] %v2891_v21   ;;  %v1481_v27 = vmul.f32 0.2, %v1094_v24  ;;  %v3182_v28 = vpop.f32.mrb[22].mxu0  ;;  %v3246_v29 = vpop.f32.mrb[22].mxu1  ;;  %v1547_v30 = vsel %vm1291_vm8, %v3181_v18, %v1419_v22 }
 0x125   : > { %vm1289_vm10 = vcmp.gt.f32.partialorder %v838_v23, 0.0  ;;  %vm1292_vm11 = vcmp.gt.f32.partialorder %v3182_v28, 0.0  ;;  %v1420_v31 = vmul.f32 0.2, %v3182_v28  ;;  %v841_v32 = vpop.f32.mrb[23].mxu0  ;;  %v1097_v33 = vpop.f32.mrb[23].mxu1  ;;  %v1611_v38 = vsel %vm1355_vm9, %v3245_v19, %v1483_v25 }
 0x126   : > { %vm1353_vm12 = vcmp.gt.f32.partialorder %v1094_v24, 0.0  ;;  %vm1356_vm13 = vcmp.gt.f32.partialorder %v3246_v29, 0.0  ;;  %v1484_v34 = vmul.f32 0.2, %v3246_v29  ;;  %vm1290_vm14 = vcmp.gt.f32.partialorder %v841_v32, 0.0 }
 0x127   : > { %v1548_v35 = vsel %vm1292_vm11, %v3182_v28, %v1420_v31  ;;  %v1418_v36 = vmul.f32 0.2, %v841_v32  ;;  %vm1354_vm15 = vcmp.gt.f32.partialorder %v1097_v33, 0.0  ;;  %v1482_v37 = vmul.f32 0.2, %v1097_v33 }
 0x128   : > { %v1545_v39 = vsel %vm1289_vm10, %v838_v23, %v1417_v26  ;;  %v2746_v40 = vpack.c.bf16 %v1548_v35, %v1547_v30  ;;  %v1612_v41 = vsel %vm1356_vm13, %v3246_v29, %v1484_v34  ;;  %v1609_v42 = vsel %vm1353_vm12, %v1094_v24, %v1481_v27 }
 0x129   : > { %v2906_v43 = vpack.c.bf16 %v1612_v41, %v1611_v38  ;;  %v1546_v44 = vsel %vm1290_vm14, %v841_v32, %v1418_v36  ;;  %v1610_v45 = vsel %vm1354_vm15, %v1097_v33, %v1482_v37  ;;  %v3185_v46 = vpop.f32.mrb[24].mxu0  ;;  %v3249_v47 = vpop.f32.mrb[24].mxu1 }
 0x12a   : > { %3018 = vst [vmem:[%s3517_s6 + $0x58] sm:$0xff] %v2746_v40   ;;  %v2741_v48 = vpack.c.bf16 %v1546_v44, %v1545_v39  ;;  %v2901_v49 = vpack.c.bf16 %v1610_v45, %v1609_v42  ;;  %vm1295_vm0 = vcmp.gt.f32.partialorder %v3185_v46, 0.0  ;;  %v1423_v50 = vmul.f32 0.2, %v3185_v46  ;;  %v854_v51 = vpop.f32.mrb[25].mxu0  ;;  %v1110_v52 = vpop.f32.mrb[25].mxu1 }
 0x12b   : > { %3050 = vst [vmem:[%s3517_s6 + $0x158] sm:$0xff] %v2906_v43   ;;  %vm1359_vm1 = vcmp.gt.f32.partialorder %v3249_v47, 0.0  ;;  %v1487_v53 = vmul.f32 0.2, %v3249_v47  ;;  %v1421_v54 = vmul.f32 0.2, %v854_v51 }
 0x12c   : > { %3017 = vst [vmem:[%s3517_s6 + $0x50] sm:$0xff] %v2741_v48   ;;  %3049 = vst [vmem:[%s3517_s6 + $0x150] sm:$0xff] %v2901_v49   ;;  %v1485_v55 = vmul.f32 0.2, %v1110_v52  ;;  %v3186_v56 = vpop.f32.mrb[26].mxu0  ;;  %v3250_v57 = vpop.f32.mrb[26].mxu1  ;;  %v1551_v58 = vsel %vm1295_vm0, %v3185_v46, %v1423_v50 }
 0x12d   : > { %vm1293_vm2 = vcmp.gt.f32.partialorder %v854_v51, 0.0  ;;  %vm1296_vm3 = vcmp.gt.f32.partialorder %v3186_v56, 0.0  ;;  %v1424_v59 = vmul.f32 0.2, %v3186_v56  ;;  %v857_v60 = vpop.f32.mrb[27].mxu0  ;;  %v1113_v61 = vpop.f32.mrb[27].mxu1  ;;  %v1615_v2 = vsel %vm1359_vm1, %v3249_v47, %v1487_v53 }
 0x12e   : > { %vm1357_vm4 = vcmp.gt.f32.partialorder %v1110_v52, 0.0  ;;  %vm1360_vm5 = vcmp.gt.f32.partialorder %v3250_v57, 0.0  ;;  %v1488_v62 = vmul.f32 0.2, %v3250_v57  ;;  %vm1294_vm6 = vcmp.gt.f32.partialorder %v857_v60, 0.0 }
 0x12f   : > { %v1552_v63 = vsel %vm1296_vm3, %v3186_v56, %v1424_v59  ;;  %v1422_v0 = vmul.f32 0.2, %v857_v60  ;;  %vm1358_vm7 = vcmp.gt.f32.partialorder %v1113_v61, 0.0  ;;  %v1486_v1 = vmul.f32 0.2, %v1113_v61 }
 0x130   : > { %v1549_v3 = vsel %vm1293_vm2, %v854_v51, %v1421_v54  ;;  %v2756_v4 = vpack.c.bf16 %v1552_v63, %v1551_v58  ;;  %v1616_v5 = vsel %vm1360_vm5, %v3250_v57, %v1488_v62  ;;  %v1613_v6 = vsel %vm1357_vm4, %v1110_v52, %v1485_v55 }
 0x131   : > { %v2916_v7 = vpack.c.bf16 %v1616_v5, %v1615_v2  ;;  %v1550_v8 = vsel %vm1294_vm6, %v857_v60, %v1422_v0  ;;  %v1614_v9 = vsel %vm1358_vm7, %v1113_v61, %v1486_v1  ;;  %v3189_v10 = vpop.f32.mrb[28].mxu0  ;;  %v3253_v11 = vpop.f32.mrb[28].mxu1 }
 0x132   : > { %3020 = vst [vmem:[%s3517_s6 + $0x68] sm:$0xff] %v2756_v4   ;;  %v2751_v12 = vpack.c.bf16 %v1550_v8, %v1549_v3  ;;  %v2911_v13 = vpack.c.bf16 %v1614_v9, %v1613_v6  ;;  %vm1299_vm8 = vcmp.gt.f32.partialorder %v3189_v10, 0.0  ;;  %v1427_v14 = vmul.f32 0.2, %v3189_v10  ;;  %v870_v15 = vpop.f32.mrb[29].mxu0  ;;  %v1126_v16 = vpop.f32.mrb[29].mxu1 }
 0x133   : > { %3052 = vst [vmem:[%s3517_s6 + $0x168] sm:$0xff] %v2916_v7   ;;  %vm1363_vm9 = vcmp.gt.f32.partialorder %v3253_v11, 0.0  ;;  %v1491_v17 = vmul.f32 0.2, %v3253_v11  ;;  %v1425_v18 = vmul.f32 0.2, %v870_v15 }
 0x134   : > { %3019 = vst [vmem:[%s3517_s6 + $0x60] sm:$0xff] %v2751_v12   ;;  %3051 = vst [vmem:[%s3517_s6 + $0x160] sm:$0xff] %v2911_v13   ;;  %v1489_v19 = vmul.f32 0.2, %v1126_v16  ;;  %v3190_v20 = vpop.f32.mrb[30].mxu0  ;;  %v3254_v21 = vpop.f32.mrb[30].mxu1  ;;  %v1555_v22 = vsel %vm1299_vm8, %v3189_v10, %v1427_v14 }
 0x135   : > { %vm1297_vm10 = vcmp.gt.f32.partialorder %v870_v15, 0.0  ;;  %vm1300_vm11 = vcmp.gt.f32.partialorder %v3190_v20, 0.0  ;;  %v1428_v23 = vmul.f32 0.2, %v3190_v20  ;;  %v873_v24 = vpop.f32.mrb[31].mxu0  ;;  %v1129_v25 = vpop.f32.mrb[31].mxu1  ;;  %v1619_v30 = vsel %vm1363_vm9, %v3253_v11, %v1491_v17 }
 0x136   : > { %vm1361_vm12 = vcmp.gt.f32.partialorder %v1126_v16, 0.0  ;;  %vm1364_vm13 = vcmp.gt.f32.partialorder %v3254_v21, 0.0  ;;  %v1492_v26 = vmul.f32 0.2, %v3254_v21  ;;  %vm1298_vm14 = vcmp.gt.f32.partialorder %v873_v24, 0.0 }
 0x137   : > { %v1556_v27 = vsel %vm1300_vm11, %v3190_v20, %v1428_v23  ;;  %v1426_v28 = vmul.f32 0.2, %v873_v24  ;;  %vm1362_vm15 = vcmp.gt.f32.partialorder %v1129_v25, 0.0  ;;  %v1490_v29 = vmul.f32 0.2, %v1129_v25 }
 0x138   : > { %v1553_v31 = vsel %vm1297_vm10, %v870_v15, %v1425_v18  ;;  %v2766_v32 = vpack.c.bf16 %v1556_v27, %v1555_v22  ;;  %v1620_v33 = vsel %vm1364_vm13, %v3254_v21, %v1492_v26  ;;  %v1617_v34 = vsel %vm1361_vm12, %v1126_v16, %v1489_v19 }
 0x139   : > { %v2926_v35 = vpack.c.bf16 %v1620_v33, %v1619_v30  ;;  %v1554_v36 = vsel %vm1298_vm14, %v873_v24, %v1426_v28  ;;  %v1618_v37 = vsel %vm1362_vm15, %v1129_v25, %v1490_v29  ;;  %v3193_v38 = vpop.f32.mrb[32].mxu0  ;;  %v3257_v39 = vpop.f32.mrb[32].mxu1 }
 0x13a   : > { %3022 = vst [vmem:[%s3517_s6 + $0x78] sm:$0xff] %v2766_v32   ;;  %v2761_v40 = vpack.c.bf16 %v1554_v36, %v1553_v31  ;;  %v2921_v41 = vpack.c.bf16 %v1618_v37, %v1617_v34  ;;  %vm1303_vm0 = vcmp.gt.f32.partialorder %v3193_v38, 0.0  ;;  %v1431_v42 = vmul.f32 0.2, %v3193_v38  ;;  %v886_v43 = vpop.f32.mrb[33].mxu0  ;;  %v1142_v44 = vpop.f32.mrb[33].mxu1 }
 0x13b   : > { %3054 = vst [vmem:[%s3517_s6 + $0x178] sm:$0xff] %v2926_v35   ;;  %vm1367_vm1 = vcmp.gt.f32.partialorder %v3257_v39, 0.0  ;;  %v1495_v45 = vmul.f32 0.2, %v3257_v39  ;;  %v1429_v46 = vmul.f32 0.2, %v886_v43 }
 0x13c   : > { %3021 = vst [vmem:[%s3517_s6 + $0x70] sm:$0xff] %v2761_v40   ;;  %3053 = vst [vmem:[%s3517_s6 + $0x170] sm:$0xff] %v2921_v41   ;;  %v1493_v47 = vmul.f32 0.2, %v1142_v44  ;;  %v3194_v48 = vpop.f32.mrb[34].mxu0  ;;  %v3258_v49 = vpop.f32.mrb[34].mxu1  ;;  %v1559_v50 = vsel %vm1303_vm0, %v3193_v38, %v1431_v42 }
 0x13d   : > { %vm1301_vm2 = vcmp.gt.f32.partialorder %v886_v43, 0.0  ;;  %vm1304_vm3 = vcmp.gt.f32.partialorder %v3194_v48, 0.0  ;;  %v1432_v51 = vmul.f32 0.2, %v3194_v48  ;;  %v889_v52 = vpop.f32.mrb[35].mxu0  ;;  %v1145_v53 = vpop.f32.mrb[35].mxu1  ;;  %v1623_v58 = vsel %vm1367_vm1, %v3257_v39, %v1495_v45 }
 0x13e   : > { %vm1365_vm4 = vcmp.gt.f32.partialorder %v1142_v44, 0.0  ;;  %vm1368_vm5 = vcmp.gt.f32.partialorder %v3258_v49, 0.0  ;;  %v1496_v54 = vmul.f32 0.2, %v3258_v49  ;;  %vm1302_vm6 = vcmp.gt.f32.partialorder %v889_v52, 0.0 }
 0x13f   : > { %v1560_v55 = vsel %vm1304_vm3, %v3194_v48, %v1432_v51  ;;  %v1430_v56 = vmul.f32 0.2, %v889_v52  ;;  %vm1366_vm7 = vcmp.gt.f32.partialorder %v1145_v53, 0.0  ;;  %v1494_v57 = vmul.f32 0.2, %v1145_v53 }
 0x140   : > { %v1557_v59 = vsel %vm1301_vm2, %v886_v43, %v1429_v46  ;;  %v2776_v60 = vpack.c.bf16 %v1560_v55, %v1559_v50  ;;  %v1624_v61 = vsel %vm1368_vm5, %v3258_v49, %v1496_v54  ;;  %v1621_v62 = vsel %vm1365_vm4, %v1142_v44, %v1493_v47 }
 0x141   : > { %v2936_v63 = vpack.c.bf16 %v1624_v61, %v1623_v58  ;;  %v1558_v0 = vsel %vm1302_vm6, %v889_v52, %v1430_v56  ;;  %v1622_v1 = vsel %vm1366_vm7, %v1145_v53, %v1494_v57  ;;  %v3197_v2 = vpop.f32.mrb[36].mxu0  ;;  %v3261_v3 = vpop.f32.mrb[36].mxu1 }
 0x142   : > { %3024 = vst [vmem:[%s3517_s6 + $0x88] sm:$0xff] %v2776_v60   ;;  %v2771_v4 = vpack.c.bf16 %v1558_v0, %v1557_v59  ;;  %v2931_v5 = vpack.c.bf16 %v1622_v1, %v1621_v62  ;;  %vm1307_vm8 = vcmp.gt.f32.partialorder %v3197_v2, 0.0  ;;  %v1435_v6 = vmul.f32 0.2, %v3197_v2  ;;  %v902_v7 = vpop.f32.mrb[37].mxu0  ;;  %v1158_v8 = vpop.f32.mrb[37].mxu1 }
 0x143   : > { %3056 = vst [vmem:[%s3517_s6 + $0x188] sm:$0xff] %v2936_v63   ;;  %vm1371_vm9 = vcmp.gt.f32.partialorder %v3261_v3, 0.0  ;;  %v1499_v9 = vmul.f32 0.2, %v3261_v3  ;;  %v1433_v10 = vmul.f32 0.2, %v902_v7 }
 0x144   : > { %3023 = vst [vmem:[%s3517_s6 + $0x80] sm:$0xff] %v2771_v4   ;;  %3055 = vst [vmem:[%s3517_s6 + $0x180] sm:$0xff] %v2931_v5   ;;  %v1497_v11 = vmul.f32 0.2, %v1158_v8  ;;  %v3198_v12 = vpop.f32.mrb[38].mxu0  ;;  %v3262_v13 = vpop.f32.mrb[38].mxu1  ;;  %v1563_v14 = vsel %vm1307_vm8, %v3197_v2, %v1435_v6 }
 0x145   : > { %vm1305_vm10 = vcmp.gt.f32.partialorder %v902_v7, 0.0  ;;  %vm1308_vm11 = vcmp.gt.f32.partialorder %v3198_v12, 0.0  ;;  %v1436_v15 = vmul.f32 0.2, %v3198_v12  ;;  %v905_v16 = vpop.f32.mrb[39].mxu0  ;;  %v1161_v17 = vpop.f32.mrb[39].mxu1  ;;  %v1627_v22 = vsel %vm1371_vm9, %v3261_v3, %v1499_v9 }
 0x146   : > { %vm1369_vm12 = vcmp.gt.f32.partialorder %v1158_v8, 0.0  ;;  %vm1372_vm13 = vcmp.gt.f32.partialorder %v3262_v13, 0.0  ;;  %v1500_v18 = vmul.f32 0.2, %v3262_v13  ;;  %vm1306_vm14 = vcmp.gt.f32.partialorder %v905_v16, 0.0 }
 0x147   : > { %v1564_v19 = vsel %vm1308_vm11, %v3198_v12, %v1436_v15  ;;  %v1434_v20 = vmul.f32 0.2, %v905_v16  ;;  %vm1370_vm15 = vcmp.gt.f32.partialorder %v1161_v17, 0.0  ;;  %v1498_v21 = vmul.f32 0.2, %v1161_v17 }
 0x148   : > { %v1561_v23 = vsel %vm1305_vm10, %v902_v7, %v1433_v10  ;;  %v2786_v24 = vpack.c.bf16 %v1564_v19, %v1563_v14  ;;  %v1628_v25 = vsel %vm1372_vm13, %v3262_v13, %v1500_v18  ;;  %v1625_v26 = vsel %vm1369_vm12, %v1158_v8, %v1497_v11 }
 0x149   : > { %v2946_v27 = vpack.c.bf16 %v1628_v25, %v1627_v22  ;;  %v1562_v28 = vsel %vm1306_vm14, %v905_v16, %v1434_v20  ;;  %v1626_v29 = vsel %vm1370_vm15, %v1161_v17, %v1498_v21  ;;  %v3201_v30 = vpop.f32.mrb[40].mxu0  ;;  %v3265_v31 = vpop.f32.mrb[40].mxu1 }
 0x14a   : > { %3026 = vst [vmem:[%s3517_s6 + $0x98] sm:$0xff] %v2786_v24   ;;  %v2781_v32 = vpack.c.bf16 %v1562_v28, %v1561_v23  ;;  %v2941_v33 = vpack.c.bf16 %v1626_v29, %v1625_v26  ;;  %vm1311_vm0 = vcmp.gt.f32.partialorder %v3201_v30, 0.0  ;;  %v1439_v34 = vmul.f32 0.2, %v3201_v30  ;;  %v918_v35 = vpop.f32.mrb[41].mxu0  ;;  %v1174_v36 = vpop.f32.mrb[41].mxu1 }
 0x14b   : > { %3058 = vst [vmem:[%s3517_s6 + $0x198] sm:$0xff] %v2946_v27   ;;  %vm1375_vm1 = vcmp.gt.f32.partialorder %v3265_v31, 0.0  ;;  %v1503_v37 = vmul.f32 0.2, %v3265_v31  ;;  %v1437_v38 = vmul.f32 0.2, %v918_v35 }
 0x14c   : > { %3025 = vst [vmem:[%s3517_s6 + $0x90] sm:$0xff] %v2781_v32   ;;  %3057 = vst [vmem:[%s3517_s6 + $0x190] sm:$0xff] %v2941_v33   ;;  %v1501_v39 = vmul.f32 0.2, %v1174_v36  ;;  %v3202_v40 = vpop.f32.mrb[42].mxu0  ;;  %v3266_v41 = vpop.f32.mrb[42].mxu1  ;;  %v1567_v42 = vsel %vm1311_vm0, %v3201_v30, %v1439_v34 }
 0x14d   : > { %vm1309_vm2 = vcmp.gt.f32.partialorder %v918_v35, 0.0  ;;  %vm1312_vm3 = vcmp.gt.f32.partialorder %v3202_v40, 0.0  ;;  %v1440_v43 = vmul.f32 0.2, %v3202_v40  ;;  %v921_v44 = vpop.f32.mrb[43].mxu0  ;;  %v1177_v45 = vpop.f32.mrb[43].mxu1  ;;  %v1631_v50 = vsel %vm1375_vm1, %v3265_v31, %v1503_v37 }
 0x14e   : > { %vm1373_vm4 = vcmp.gt.f32.partialorder %v1174_v36, 0.0  ;;  %vm1376_vm5 = vcmp.gt.f32.partialorder %v3266_v41, 0.0  ;;  %v1504_v46 = vmul.f32 0.2, %v3266_v41  ;;  %vm1310_vm6 = vcmp.gt.f32.partialorder %v921_v44, 0.0 }
 0x14f   : > { %v1568_v47 = vsel %vm1312_vm3, %v3202_v40, %v1440_v43  ;;  %v1438_v48 = vmul.f32 0.2, %v921_v44  ;;  %vm1374_vm7 = vcmp.gt.f32.partialorder %v1177_v45, 0.0  ;;  %v1502_v49 = vmul.f32 0.2, %v1177_v45 }
 0x150   : > { %v1565_v51 = vsel %vm1309_vm2, %v918_v35, %v1437_v38  ;;  %v2796_v52 = vpack.c.bf16 %v1568_v47, %v1567_v42  ;;  %v1632_v53 = vsel %vm1376_vm5, %v3266_v41, %v1504_v46  ;;  %v1629_v54 = vsel %vm1373_vm4, %v1174_v36, %v1501_v39 }
 0x151   : > { %v2956_v55 = vpack.c.bf16 %v1632_v53, %v1631_v50  ;;  %v1566_v56 = vsel %vm1310_vm6, %v921_v44, %v1438_v48  ;;  %v1630_v57 = vsel %vm1374_vm7, %v1177_v45, %v1502_v49  ;;  %v3205_v58 = vpop.f32.mrb[44].mxu0  ;;  %v3269_v59 = vpop.f32.mrb[44].mxu1 }
 0x152   : > { %3028 = vst [vmem:[%s3517_s6 + $0xa8] sm:$0xff] %v2796_v52   ;;  %v2791_v60 = vpack.c.bf16 %v1566_v56, %v1565_v51  ;;  %v2951_v61 = vpack.c.bf16 %v1630_v57, %v1629_v54  ;;  %vm1315_vm8 = vcmp.gt.f32.partialorder %v3205_v58, 0.0  ;;  %v1443_v62 = vmul.f32 0.2, %v3205_v58  ;;  %v934_v63 = vpop.f32.mrb[45].mxu0  ;;  %v1190_v0 = vpop.f32.mrb[45].mxu1 }
 0x153   : > { %3060 = vst [vmem:[%s3517_s6 + $0x1a8] sm:$0xff] %v2956_v55   ;;  %vm1379_vm9 = vcmp.gt.f32.partialorder %v3269_v59, 0.0  ;;  %v1507_v1 = vmul.f32 0.2, %v3269_v59  ;;  %v1441_v2 = vmul.f32 0.2, %v934_v63 }
 0x154   : > { %3027 = vst [vmem:[%s3517_s6 + $0xa0] sm:$0xff] %v2791_v60   ;;  %3059 = vst [vmem:[%s3517_s6 + $0x1a0] sm:$0xff] %v2951_v61   ;;  %v1505_v3 = vmul.f32 0.2, %v1190_v0  ;;  %v3206_v4 = vpop.f32.mrb[46].mxu0  ;;  %v3270_v5 = vpop.f32.mrb[46].mxu1  ;;  %v1571_v6 = vsel %vm1315_vm8, %v3205_v58, %v1443_v62 }
 0x155   : > { %vm1313_vm10 = vcmp.gt.f32.partialorder %v934_v63, 0.0  ;;  %vm1316_vm11 = vcmp.gt.f32.partialorder %v3206_v4, 0.0  ;;  %v1444_v7 = vmul.f32 0.2, %v3206_v4  ;;  %v937_v8 = vpop.f32.mrb[47].mxu0  ;;  %v1193_v9 = vpop.f32.mrb[47].mxu1  ;;  %v1635_v14 = vsel %vm1379_vm9, %v3269_v59, %v1507_v1 }
 0x156   : > { %vm1377_vm12 = vcmp.gt.f32.partialorder %v1190_v0, 0.0  ;;  %vm1380_vm13 = vcmp.gt.f32.partialorder %v3270_v5, 0.0  ;;  %v1508_v10 = vmul.f32 0.2, %v3270_v5  ;;  %vm1314_vm14 = vcmp.gt.f32.partialorder %v937_v8, 0.0 }
 0x157   : > { %v1572_v11 = vsel %vm1316_vm11, %v3206_v4, %v1444_v7  ;;  %v1442_v12 = vmul.f32 0.2, %v937_v8  ;;  %vm1378_vm15 = vcmp.gt.f32.partialorder %v1193_v9, 0.0  ;;  %v1506_v13 = vmul.f32 0.2, %v1193_v9 }
 0x158   : > { %v1569_v15 = vsel %vm1313_vm10, %v934_v63, %v1441_v2  ;;  %v2806_v16 = vpack.c.bf16 %v1572_v11, %v1571_v6  ;;  %v1636_v17 = vsel %vm1380_vm13, %v3270_v5, %v1508_v10  ;;  %v1633_v18 = vsel %vm1377_vm12, %v1190_v0, %v1505_v3 }
 0x159   : > { %v2966_v19 = vpack.c.bf16 %v1636_v17, %v1635_v14  ;;  %v1570_v20 = vsel %vm1314_vm14, %v937_v8, %v1442_v12  ;;  %v1634_v21 = vsel %vm1378_vm15, %v1193_v9, %v1506_v13  ;;  %v3209_v22 = vpop.f32.mrb[48].mxu0  ;;  %v3273_v23 = vpop.f32.mrb[48].mxu1 }
 0x15a   : > { %3030 = vst [vmem:[%s3517_s6 + $0xb8] sm:$0xff] %v2806_v16   ;;  %v2801_v24 = vpack.c.bf16 %v1570_v20, %v1569_v15  ;;  %v2961_v25 = vpack.c.bf16 %v1634_v21, %v1633_v18  ;;  %vm1319_vm0 = vcmp.gt.f32.partialorder %v3209_v22, 0.0  ;;  %v1447_v26 = vmul.f32 0.2, %v3209_v22  ;;  %v950_v27 = vpop.f32.mrb[49].mxu0  ;;  %v1206_v28 = vpop.f32.mrb[49].mxu1 }
 0x15b   : > { %3062 = vst [vmem:[%s3517_s6 + $0x1b8] sm:$0xff] %v2966_v19   ;;  %vm1383_vm1 = vcmp.gt.f32.partialorder %v3273_v23, 0.0  ;;  %v1511_v29 = vmul.f32 0.2, %v3273_v23  ;;  %v1445_v30 = vmul.f32 0.2, %v950_v27 }
 0x15c   : > { %3029 = vst [vmem:[%s3517_s6 + $0xb0] sm:$0xff] %v2801_v24   ;;  %3061 = vst [vmem:[%s3517_s6 + $0x1b0] sm:$0xff] %v2961_v25   ;;  %v1509_v31 = vmul.f32 0.2, %v1206_v28  ;;  %v3210_v32 = vpop.f32.mrb[50].mxu0  ;;  %v3274_v33 = vpop.f32.mrb[50].mxu1  ;;  %v1575_v34 = vsel %vm1319_vm0, %v3209_v22, %v1447_v26 }
 0x15d   : > { %vm1317_vm2 = vcmp.gt.f32.partialorder %v950_v27, 0.0  ;;  %vm1320_vm3 = vcmp.gt.f32.partialorder %v3210_v32, 0.0  ;;  %v1448_v35 = vmul.f32 0.2, %v3210_v32  ;;  %v953_v36 = vpop.f32.mrb[51].mxu0  ;;  %v1209_v37 = vpop.f32.mrb[51].mxu1  ;;  %v1639_v42 = vsel %vm1383_vm1, %v3273_v23, %v1511_v29 }
 0x15e   : > { %vm1381_vm4 = vcmp.gt.f32.partialorder %v1206_v28, 0.0  ;;  %vm1384_vm5 = vcmp.gt.f32.partialorder %v3274_v33, 0.0  ;;  %v1512_v38 = vmul.f32 0.2, %v3274_v33  ;;  %vm1318_vm6 = vcmp.gt.f32.partialorder %v953_v36, 0.0 }
 0x15f   : > { %v1576_v39 = vsel %vm1320_vm3, %v3210_v32, %v1448_v35  ;;  %v1446_v40 = vmul.f32 0.2, %v953_v36  ;;  %vm1382_vm7 = vcmp.gt.f32.partialorder %v1209_v37, 0.0  ;;  %v1510_v41 = vmul.f32 0.2, %v1209_v37 }
 0x160   : > { %v1573_v43 = vsel %vm1317_vm2, %v950_v27, %v1445_v30  ;;  %v2816_v44 = vpack.c.bf16 %v1576_v39, %v1575_v34  ;;  %v1640_v45 = vsel %vm1384_vm5, %v3274_v33, %v1512_v38  ;;  %v1637_v46 = vsel %vm1381_vm4, %v1206_v28, %v1509_v31 }
 0x161   : > { %v2976_v47 = vpack.c.bf16 %v1640_v45, %v1639_v42  ;;  %v1574_v48 = vsel %vm1318_vm6, %v953_v36, %v1446_v40  ;;  %v1638_v49 = vsel %vm1382_vm7, %v1209_v37, %v1510_v41  ;;  %v3213_v50 = vpop.f32.mrb[52].mxu0  ;;  %v3277_v51 = vpop.f32.mrb[52].mxu1 }
 0x162   : > { %3032 = vst [vmem:[%s3517_s6 + $0xc8] sm:$0xff] %v2816_v44   ;;  %v2811_v52 = vpack.c.bf16 %v1574_v48, %v1573_v43  ;;  %v2971_v53 = vpack.c.bf16 %v1638_v49, %v1637_v46  ;;  %vm1323_vm8 = vcmp.gt.f32.partialorder %v3213_v50, 0.0  ;;  %v1451_v54 = vmul.f32 0.2, %v3213_v50  ;;  %v966_v55 = vpop.f32.mrb[53].mxu0  ;;  %v1222_v56 = vpop.f32.mrb[53].mxu1 }
 0x163   : > { %3064 = vst [vmem:[%s3517_s6 + $0x1c8] sm:$0xff] %v2976_v47   ;;  %vm1387_vm9 = vcmp.gt.f32.partialorder %v3277_v51, 0.0  ;;  %v1515_v57 = vmul.f32 0.2, %v3277_v51  ;;  %v1449_v58 = vmul.f32 0.2, %v966_v55 }
 0x164   : > { %3031 = vst [vmem:[%s3517_s6 + $0xc0] sm:$0xff] %v2811_v52   ;;  %3063 = vst [vmem:[%s3517_s6 + $0x1c0] sm:$0xff] %v2971_v53   ;;  %v1513_v59 = vmul.f32 0.2, %v1222_v56  ;;  %v3214_v60 = vpop.f32.mrb[54].mxu0  ;;  %v3278_v61 = vpop.f32.mrb[54].mxu1  ;;  %v1579_v62 = vsel %vm1323_vm8, %v3213_v50, %v1451_v54 }
 0x165   : > { %vm1321_vm10 = vcmp.gt.f32.partialorder %v966_v55, 0.0  ;;  %vm1324_vm11 = vcmp.gt.f32.partialorder %v3214_v60, 0.0  ;;  %v1452_v63 = vmul.f32 0.2, %v3214_v60  ;;  %v969_v0 = vpop.f32.mrb[55].mxu0  ;;  %v1225_v1 = vpop.f32.mrb[55].mxu1  ;;  %v1643_v6 = vsel %vm1387_vm9, %v3277_v51, %v1515_v57 }
 0x166   : > { %vm1385_vm12 = vcmp.gt.f32.partialorder %v1222_v56, 0.0  ;;  %vm1388_vm13 = vcmp.gt.f32.partialorder %v3278_v61, 0.0  ;;  %v1516_v2 = vmul.f32 0.2, %v3278_v61  ;;  %vm1322_vm14 = vcmp.gt.f32.partialorder %v969_v0, 0.0 }
 0x167   : > { %v1580_v3 = vsel %vm1324_vm11, %v3214_v60, %v1452_v63  ;;  %v1450_v4 = vmul.f32 0.2, %v969_v0  ;;  %vm1386_vm15 = vcmp.gt.f32.partialorder %v1225_v1, 0.0  ;;  %v1514_v5 = vmul.f32 0.2, %v1225_v1 }
 0x168   : > { %v1577_v7 = vsel %vm1321_vm10, %v966_v55, %v1449_v58  ;;  %v2826_v8 = vpack.c.bf16 %v1580_v3, %v1579_v62  ;;  %v1644_v9 = vsel %vm1388_vm13, %v3278_v61, %v1516_v2  ;;  %v1641_v10 = vsel %vm1385_vm12, %v1222_v56, %v1513_v59 }
 0x169   : > { %v2986_v11 = vpack.c.bf16 %v1644_v9, %v1643_v6  ;;  %v1578_v12 = vsel %vm1322_vm14, %v969_v0, %v1450_v4  ;;  %v1642_v13 = vsel %vm1386_vm15, %v1225_v1, %v1514_v5  ;;  %v3217_v14 = vpop.f32.mrb[56].mxu0  ;;  %v3281_v15 = vpop.f32.mrb[56].mxu1 }
 0x16a   : > { %3034 = vst [vmem:[%s3517_s6 + $0xd8] sm:$0xff] %v2826_v8   ;;  %v2821_v16 = vpack.c.bf16 %v1578_v12, %v1577_v7  ;;  %v2981_v17 = vpack.c.bf16 %v1642_v13, %v1641_v10  ;;  %vm1327_vm0 = vcmp.gt.f32.partialorder %v3217_v14, 0.0  ;;  %v1455_v18 = vmul.f32 0.2, %v3217_v14  ;;  %v982_v19 = vpop.f32.mrb[57].mxu0  ;;  %v1238_v20 = vpop.f32.mrb[57].mxu1 }
 0x16b   : > { %3066 = vst [vmem:[%s3517_s6 + $0x1d8] sm:$0xff] %v2986_v11   ;;  %vm1391_vm1 = vcmp.gt.f32.partialorder %v3281_v15, 0.0  ;;  %v1519_v21 = vmul.f32 0.2, %v3281_v15  ;;  %v1453_v22 = vmul.f32 0.2, %v982_v19 }
 0x16c   : > { %3033 = vst [vmem:[%s3517_s6 + $0xd0] sm:$0xff] %v2821_v16   ;;  %3065 = vst [vmem:[%s3517_s6 + $0x1d0] sm:$0xff] %v2981_v17   ;;  %v1517_v23 = vmul.f32 0.2, %v1238_v20  ;;  %v3218_v24 = vpop.f32.mrb[58].mxu0  ;;  %v3282_v25 = vpop.f32.mrb[58].mxu1  ;;  %v1583_v26 = vsel %vm1327_vm0, %v3217_v14, %v1455_v18 }
 0x16d   : > { %vm1325_vm2 = vcmp.gt.f32.partialorder %v982_v19, 0.0  ;;  %vm1328_vm3 = vcmp.gt.f32.partialorder %v3218_v24, 0.0  ;;  %v1456_v27 = vmul.f32 0.2, %v3218_v24  ;;  %v985_v28 = vpop.f32.mrb[59].mxu0  ;;  %v1241_v29 = vpop.f32.mrb[59].mxu1  ;;  %v1647_v34 = vsel %vm1391_vm1, %v3281_v15, %v1519_v21 }
 0x16e   : > { %vm1389_vm4 = vcmp.gt.f32.partialorder %v1238_v20, 0.0  ;;  %vm1392_vm5 = vcmp.gt.f32.partialorder %v3282_v25, 0.0  ;;  %v1520_v30 = vmul.f32 0.2, %v3282_v25  ;;  %vm1326_vm6 = vcmp.gt.f32.partialorder %v985_v28, 0.0 }
 0x16f   : > { %v1584_v31 = vsel %vm1328_vm3, %v3218_v24, %v1456_v27  ;;  %v1454_v32 = vmul.f32 0.2, %v985_v28  ;;  %vm1390_vm7 = vcmp.gt.f32.partialorder %v1241_v29, 0.0  ;;  %v1518_v33 = vmul.f32 0.2, %v1241_v29 }
 0x170   : > { %v1581_v35 = vsel %vm1325_vm2, %v982_v19, %v1453_v22  ;;  %v2836_v36 = vpack.c.bf16 %v1584_v31, %v1583_v26  ;;  %v1648_v37 = vsel %vm1392_vm5, %v3282_v25, %v1520_v30  ;;  %v1645_v38 = vsel %vm1389_vm4, %v1238_v20, %v1517_v23 }
 0x171   : > { %v2996_v39 = vpack.c.bf16 %v1648_v37, %v1647_v34  ;;  %v1582_v40 = vsel %vm1326_vm6, %v985_v28, %v1454_v32  ;;  %v1646_v41 = vsel %vm1390_vm7, %v1241_v29, %v1518_v33  ;;  %v3221_v42 = vpop.f32.mrb[60].mxu0  ;;  %v3285_v43 = vpop.f32.mrb[60].mxu1 }
 0x172   : > { %3036 = vst [vmem:[%s3517_s6 + $0xe8] sm:$0xff] %v2836_v36   ;;  %v2831_v44 = vpack.c.bf16 %v1582_v40, %v1581_v35  ;;  %v2991_v45 = vpack.c.bf16 %v1646_v41, %v1645_v38  ;;  %vm1331_vm8 = vcmp.gt.f32.partialorder %v3221_v42, 0.0  ;;  %v1459_v46 = vmul.f32 0.2, %v3221_v42  ;;  %v998_v47 = vpop.f32.mrb[61].mxu0  ;;  %v1254_v48 = vpop.f32.mrb[61].mxu1 }
 0x173   : > { %3068 = vst [vmem:[%s3517_s6 + $0x1e8] sm:$0xff] %v2996_v39   ;;  %vm1395_vm9 = vcmp.gt.f32.partialorder %v3285_v43, 0.0  ;;  %v1523_v49 = vmul.f32 0.2, %v3285_v43  ;;  %v1457_v50 = vmul.f32 0.2, %v998_v47 }
 0x174   : > { %3035 = vst [vmem:[%s3517_s6 + $0xe0] sm:$0xff] %v2831_v44   ;;  %3067 = vst [vmem:[%s3517_s6 + $0x1e0] sm:$0xff] %v2991_v45   ;;  %v1521_v51 = vmul.f32 0.2, %v1254_v48  ;;  %v3222_v52 = vpop.f32.mrb[62].mxu0  ;;  %v3286_v53 = vpop.f32.mrb[62].mxu1  ;;  %v1587_v54 = vsel %vm1331_vm8, %v3221_v42, %v1459_v46 }
 0x175   : > { %vm1329_vm10 = vcmp.gt.f32.partialorder %v998_v47, 0.0  ;;  %vm1332_vm11 = vcmp.gt.f32.partialorder %v3222_v52, 0.0  ;;  %v1460_v55 = vmul.f32 0.2, %v3222_v52  ;;  %v1001_v56 = vpop.f32.mrb[63].mxu0  ;;  %v1257_v57 = vpop.f32.mrb[63].mxu1  ;;  %v1651_v62 = vsel %vm1395_vm9, %v3285_v43, %v1523_v49 }
 0x176   : > { %vm1393_vm12 = vcmp.gt.f32.partialorder %v1254_v48, 0.0  ;;  %vm1396_vm13 = vcmp.gt.f32.partialorder %v3286_v53, 0.0  ;;  %v1524_v58 = vmul.f32 0.2, %v3286_v53  ;;  %vm1330_vm14 = vcmp.gt.f32.partialorder %v1001_v56, 0.0 }
 0x177   : > { %v1588_v59 = vsel %vm1332_vm11, %v3222_v52, %v1460_v55  ;;  %v1458_v60 = vmul.f32 0.2, %v1001_v56  ;;  %vm1394_vm15 = vcmp.gt.f32.partialorder %v1257_v57, 0.0  ;;  %v1522_v61 = vmul.f32 0.2, %v1257_v57 }
 0x178   : > { %v1585_v63 = vsel %vm1329_vm10, %v998_v47, %v1457_v50  ;;  %v2846_v0 = vpack.c.bf16 %v1588_v59, %v1587_v54  ;;  %v1652_v1 = vsel %vm1396_vm13, %v3286_v53, %v1524_v58  ;;  %v1649_v2 = vsel %vm1393_vm12, %v1254_v48, %v1521_v51 }
 0x179   : > { %v3006_v3 = vpack.c.bf16 %v1652_v1, %v1651_v62  ;;  %v1586_v4 = vsel %vm1330_vm14, %v1001_v56, %v1458_v60  ;;  %v1650_v5 = vsel %vm1394_vm15, %v1257_v57, %v1522_v61 }
 0x17a   : > { %3038 = vst [vmem:[%s3517_s6 + $0xf8] sm:$0xff] %v2846_v0   ;;  %v2841_v6 = vpack.c.bf16 %v1586_v4, %v1585_v63  ;;  %v3001_v7 = vpack.c.bf16 %v1650_v5, %v1649_v2 }
 0x17b   : > { %3070 = vst [vmem:[%s3517_s6 + $0x1f8] sm:$0xff] %v3006_v3  }
 0x17c   : > { %3037 = vst [vmem:[%s3517_s6 + $0xf0] sm:$0xff] %v2841_v6   ;;  %3069 = vst [vmem:[%s3517_s6 + $0x1f0] sm:$0xff] %v3001_v7  }
 0x17d PF: > { %s12_s9 = sadd.s32 1, %s3389_s9  }
 0x17e   : > { %p9_p4 = scmp.ge.s32.totalorder %s12_s9, 4  }
 0x180   :  { %11 = sbr.rel (!%p9_p4) target bundleno = 1 (0x1), region = 58 }

// kernel: forward.6
= control target key start
LH: loop header
LB: loop body
LE: loop exit
PB: predicated region body
PF: predicated region fallthrough
CT: control target
= control target key end

     0   :  { %s2535_s12 = smov 0   ;;  %s2537_s13 = smov 0   ;;  %s3115_s0 = inlined_call_operand.vmem [shape: bf16[512,128], index: 0, kind: input, shape index: {}]   ;;  %s3116_s1 = inlined_call_operand.vmem [shape: bf16[128,128], index: 1, kind: input, shape index: {}]   ;;  %s3117_s2 = inlined_call_operand.vmem [shape: f32[2,128], index: 2, kind: input, shape index: {}]   ;;  %s3118_s3 = inlined_call_operand.vmem [shape: bf16[512,128], index: 3, kind: output, shape index: {}]  }
   0x1   :  { %s2539_s14 = smov 0  }
   0x2 LB: > { %s25_s15 = sadd.s32 1, %s2508_s13  ;;  %p1919_p0 = scmp.ge.s32.totalorder %s2512_s14, 1  ;;  %s2512_s14 = sphi %s2539_s14, %s13_s14   ;;  %s2508_s13 = sphi %s2537_s13, %s3120_s13   ;;  %s2504_s12 = sphi %s2535_s12, %s3119_s12  }
   0x3   : > { %p27_p1 = scmp.ge.s32.totalorder %s25_s15, 2  ;;  %p160_p2 = scmp.lt.s32.totalorder %s2512_s14, 3 }
   0x5   : > { %s3122_s15 = smov (%p27_p1, %s25_s15), 0  ;;  %p161_p3 = pnand %p1919_p0, %p160_p2 }
   0x6   : > { %p1920_p4 = scmp.ne.s32.totalorder (!%p161_p3), %s2504_s12, 0 }
   0x7   : > { %164 = sbr.rel (%p161_p3) target bundleno = 534 (0x216), region = 32 }
   0xe   : > { %210 = sbr.rel (%p1920_p4) target bundleno = 405 (0x195), region = 36  ;;  %v2448_v0 = vld [vmem:[%s3116_s1] sm:$0xff] (!%p1920_p4)   ;;  %v2449_v1 = vld [vmem:[%s3116_s1 + $0x8] sm:$0xff] (!%p1920_p4)   ;;  %v2450_v2 = vld [vmem:[%s3116_s1 + $0x10] sm:$0xff] (!%p1920_p4)   ;;  %v2514_v40 = vmov (!%p1920_p4), 0.0  }
   0xf   : > { %2327 = vmatprep.subr.bf16.mxu0 (!%p1920_p4), %v2448_v0  ;;  %2407 = vmatprep.subr.bf16.mxu1 (!%p1920_p4), %v2448_v0  ;;  %v2451_v3 = vld [vmem:[%s3116_s1 + $0x18] sm:$0xff] (!%p1920_p4)   ;;  %v2456_v4 = vld [vmem:[%s3115_s0] sm:$0xff] (!%p1920_p4)   ;;  %v2453_v6 = vld [vmem:[%s3116_s1 + $0x28] sm:$0xff] (!%p1920_p4)   ;;  %215 = vst [vmem:[#allocation3] sm:$0x1] (!%p1920_p4), %v2514_v40 }
  0x10   : > { %2328 = vmatpush3.bf16.msra.mxu0 (!%p1920_p4), %v2448_v0  ;;  %2415 = vmatpush3.bf16.msra.mxu1 (!%p1920_p4), %v2448_v0  ;;  %v2452_v5 = vld [vmem:[%s3116_s1 + $0x20] sm:$0xff] (!%p1920_p4)   ;;  %v2454_v7 = vld [vmem:[%s3116_s1 + $0x30] sm:$0xff] (!%p1920_p4)   ;;  %v2455_v8 = vld [vmem:[%s3116_s1 + $0x38] sm:$0xff] (!%p1920_p4)   ;;  %216 = vst [vmem:[#allocation4] sm:$0x1] (!%p1920_p4), %v2514_v40 }
  0x11   : > { %2329 = vmatprep.subr.bf16.mxu0 (!%p1920_p4), %v2449_v1  ;;  %2408 = vmatprep.subr.bf16.mxu1 (!%p1920_p4), %v2449_v1  ;;  %v2472_v9 = vld [vmem:[%s3115_s0 + $0x80] sm:$0xff] (!%p1920_p4)   ;;  %v2457_v10 = vld [vmem:[%s3115_s0 + $0x8] sm:$0xff] (!%p1920_p4)   ;;  %v2458_v11 = vld [vmem:[%s3115_s0 + $0x10] sm:$0xff] (!%p1920_p4)  }
  0x12   : > { %2343 = vmatprep.mubr.bf16.mxu0 (!%p1920_p4), %v2456_v4  ;;  %2375 = vmatprep.mubr.bf16.mxu1 (!%p1920_p4), %v2472_v9  ;;  %v2473_v12 = vld [vmem:[%s3115_s0 + $0x88] sm:$0xff] (!%p1920_p4)   ;;  %v2474_v13 = vld [vmem:[%s3115_s0 + $0x90] sm:$0xff] (!%p1920_p4)   ;;  %v2459_v14 = vld [vmem:[%s3115_s0 + $0x18] sm:$0xff] (!%p1920_p4)  }
  0x13   : > { %v2460_v15 = vld [vmem:[%s3115_s0 + $0x20] sm:$0xff] (!%p1920_p4)   ;;  %v2475_v16 = vld [vmem:[%s3115_s0 + $0x98] sm:$0xff] (!%p1920_p4)   ;;  %v2461_v18 = vld [vmem:[%s3115_s0 + $0x28] sm:$0xff] (!%p1920_p4)  }
  0x14   : > { %2330 = vmatpush3.bf16.msra.mxu0 (!%p1920_p4), %v2449_v1  ;;  %2416 = vmatpush3.bf16.msra.mxu1 (!%p1920_p4), %v2449_v1  ;;  %v2476_v17 = vld [vmem:[%s3115_s0 + $0xa0] sm:$0xff] (!%p1920_p4)   ;;  %v2477_v19 = vld [vmem:[%s3115_s0 + $0xa8] sm:$0xff] (!%p1920_p4)   ;;  %v2462_v20 = vld [vmem:[%s3115_s0 + $0x30] sm:$0xff] (!%p1920_p4)  }
  0x15   : > { %2331 = vmatprep.subr.bf16.mxu0 %v2450_v2  ;;  %2409 = vmatprep.subr.bf16.mxu1 %v2450_v2  ;;  %v2478_v21 = vld [vmem:[%s3115_s0 + $0xb0] sm:$0xff]   ;;  %v2463_v22 = vld [vmem:[%s3115_s0 + $0x38] sm:$0xff]   ;;  %v2464_v24 = vld [vmem:[%s3115_s0 + $0x40] sm:$0xff]  }
  0x16   : > { %v2479_v23 = vld [vmem:[%s3115_s0 + $0xb8] sm:$0xff]   ;;  %v2480_v25 = vld [vmem:[%s3115_s0 + $0xc0] sm:$0xff]   ;;  %v2465_v26 = vld [vmem:[%s3115_s0 + $0x48] sm:$0xff]  }
  0x17   : > { %v2481_v27 = vld [vmem:[%s3115_s0 + $0xc8] sm:$0xff]   ;;  %v2466_v28 = vld [vmem:[%s3115_s0 + $0x50] sm:$0xff]   ;;  %v2467_v30 = vld [vmem:[%s3115_s0 + $0x58] sm:$0xff]  }
  0x18   : > { %2332 = vmatpush3.bf16.msra.mxu0 %v2450_v2  ;;  %2417 = vmatpush3.bf16.msra.mxu1 %v2450_v2  ;;  %v2482_v29 = vld [vmem:[%s3115_s0 + $0xd0] sm:$0xff]   ;;  %v2483_v31 = vld [vmem:[%s3115_s0 + $0xd8] sm:$0xff]   ;;  %v2468_v32 = vld [vmem:[%s3115_s0 + $0x60] sm:$0xff]  }
  0x19   : > { %2333 = vmatprep.subr.bf16.mxu0 %v2451_v3  ;;  %2410 = vmatprep.subr.bf16.mxu1 %v2451_v3  ;;  %v2484_v33 = vld [vmem:[%s3115_s0 + $0xe0] sm:$0xff]   ;;  %v2469_v34 = vld [vmem:[%s3115_s0 + $0x68] sm:$0xff]   ;;  %v2470_v36 = vld [vmem:[%s3115_s0 + $0x70] sm:$0xff]  }
  0x1a   : > { %v2485_v35 = vld [vmem:[%s3115_s0 + $0xe8] sm:$0xff]   ;;  %v2486_v37 = vld [vmem:[%s3115_s0 + $0xf0] sm:$0xff]   ;;  %v2471_v38 = vld [vmem:[%s3115_s0 + $0x78] sm:$0xff]  }
  0x1b   : > { %v2487_v39 = vld [vmem:[%s3115_s0 + $0xf8] sm:$0xff]  }
  0x1c   : > { %2334 = vmatpush3.bf16.msra.mxu0 %v2451_v3  ;;  %2418 = vmatpush3.bf16.msra.mxu1 %v2451_v3 }
  0x1d   : > { %2335 = vmatprep.subr.bf16.mxu0 %v2452_v5  ;;  %2411 = vmatprep.subr.bf16.mxu1 %v2452_v5 }
  0x20   : > { %2336 = vmatpush3.bf16.msra.mxu0 %v2452_v5  ;;  %2419 = vmatpush3.bf16.msra.mxu1 %v2452_v5 }
  0x21   : > { %2337 = vmatprep.subr.bf16.mxu0 %v2453_v6  ;;  %2412 = vmatprep.subr.bf16.mxu1 %v2453_v6 }
  0x24   : > { %2338 = vmatpush3.bf16.msra.mxu0 %v2453_v6  ;;  %2420 = vmatpush3.bf16.msra.mxu1 %v2453_v6 }
  0x25   : > { %2339 = vmatprep.subr.bf16.mxu0 %v2454_v7  ;;  %2413 = vmatprep.subr.bf16.mxu1 %v2454_v7 }
  0x28   : > { %2340 = vmatpush3.bf16.msra.mxu0 %v2454_v7  ;;  %2421 = vmatpush3.bf16.msra.mxu1 %v2454_v7 }
  0x29   : > { %2341 = vmatprep.subr.bf16.mxu0 %v2455_v8  ;;  %2414 = vmatprep.subr.bf16.mxu1 %v2455_v8 }
  0x2c   : > { %2342 = vmatpush3.bf16.msra.mxu0 %v2455_v8  ;;  %2422 = vmatpush3.bf16.msra.mxu1 %v2455_v8 }
  0x2f   : > { %2344 = vmatmul.mubr.bf16.vlgmr.msra.gmra.mrb[0].mxu0 %v2457_v10  ;;  %2376 = vmatmul.mubr.bf16.vlgmr.msra.gmra.mrb[0].mxu1 %v2473_v12 }
  0x30   : > { %2347 = vmatprep.mubr.bf16.mxu0 %v2458_v11  ;;  %2379 = vmatprep.mubr.bf16.mxu1 %v2474_v13 }
  0x37   : > { %2348 = vmatmul.mubr.bf16.gmra.mrb[4].mxu0 %v2459_v14  ;;  %2380 = vmatmul.mubr.bf16.gmra.mrb[4].mxu1 %v2475_v16 }
  0x38   : > { %2351 = vmatprep.mubr.bf16.mxu0 %v2460_v15  ;;  %2383 = vmatprep.mubr.bf16.mxu1 %v2476_v17 }
  0x3f   : > { %2352 = vmatmul.mubr.bf16.gmra.mrb[8].mxu0 %v2461_v18  ;;  %2384 = vmatmul.mubr.bf16.gmra.mrb[8].mxu1 %v2477_v19 }
  0x40   : > { %2355 = vmatprep.mubr.bf16.mxu0 %v2462_v20  ;;  %2387 = vmatprep.mubr.bf16.mxu1 %v2478_v21 }
  0x47   : > { %2356 = vmatmul.mubr.bf16.gmra.mrb[12].mxu0 %v2463_v22  ;;  %2388 = vmatmul.mubr.bf16.gmra.mrb[12].mxu1 %v2479_v23 }
  0x48   : > { %2359 = vmatprep.mubr.bf16.mxu0 %v2464_v24  ;;  %2391 = vmatprep.mubr.bf16.mxu1 %v2480_v25 }
  0x4f   : > { %2360 = vmatmul.mubr.bf16.gmra.mrb[16].mxu0 %v2465_v26  ;;  %2392 = vmatmul.mubr.bf16.gmra.mrb[16].mxu1 %v2481_v27 }
  0x50   : > { %2363 = vmatprep.mubr.bf16.mxu0 %v2466_v28  ;;  %2395 = vmatprep.mubr.bf16.mxu1 %v2482_v29 }
  0x57   : > { %2364 = vmatmul.mubr.bf16.gmra.mrb[20].mxu0 %v2467_v30  ;;  %2396 = vmatmul.mubr.bf16.gmra.mrb[20].mxu1 %v2483_v31 }
  0x58   : > { %2367 = vmatprep.mubr.bf16.mxu0 %v2468_v32  ;;  %2399 = vmatprep.mubr.bf16.mxu1 %v2484_v33 }
  0x5f   : > { %2368 = vmatmul.mubr.bf16.gmra.mrb[24].mxu0 %v2469_v34  ;;  %2400 = vmatmul.mubr.bf16.gmra.mrb[24].mxu1 %v2485_v35 }
  0x60   : > { %2371 = vmatprep.mubr.bf16.mxu0 %v2470_v36  ;;  %2403 = vmatprep.mubr.bf16.mxu1 %v2486_v37 }
  0x67   : > { %2372 = vmatmul.mubr.bf16.gmra.mrb[28].mxu0 %v2471_v38  ;;  %2404 = vmatmul.mubr.bf16.gmra.mrb[28].mxu1 %v2487_v39 }
 0x102   : > { %v2345_v41 = vpop.f32.mrb[0].mxu0  ;;  %v2676_v42 = vpop.f32.mrb[0].mxu1 }
 0x103   : > { %829 = vst [vmem:[#allocation2 + $0x10] sm:$0xff] %v2345_v41  ;;  %v571_v43 = vpop.f32.mrb[1].mxu0  ;;  %861 = vst [vmem:[#allocation2 + $0x110] sm:$0xff] %v2676_v42  ;;  %v2679_v44 = vpop.f32.mrb[1].mxu1  ;;  %v966_v52 = vmul.f32 %v2345_v41, %v2345_v41 }
 0x104   : > { %827 = vst [vmem:[#allocation2] sm:$0xff] %v571_v43  ;;  %v2346_v45 = vpop.f32.mrb[2].mxu0  ;;  %859 = vst [vmem:[#allocation2 + $0x100] sm:$0xff] %v2679_v44  ;;  %v2682_v46 = vpop.f32.mrb[2].mxu1  ;;  %v964_v49 = vmul.f32 %v571_v43, %v571_v43 }
 0x105   : > { %830 = vst [vmem:[#allocation2 + $0x18] sm:$0xff] %v2346_v45  ;;  %v574_v47 = vpop.f32.mrb[3].mxu0  ;;  %862 = vst [vmem:[#allocation2 + $0x118] sm:$0xff] %v2682_v46  ;;  %v2685_v48 = vpop.f32.mrb[3].mxu1  ;;  %v967_v55 = vmul.f32 %v2346_v45, %v2346_v45 }
 0x106   : > { %828 = vst [vmem:[#allocation2 + $0x8] sm:$0xff] %v574_v47  ;;  %v892_v50 = vadd.f32 %v574_v47, %v571_v43  ;;  %v965_v51 = vmul.f32 %v574_v47, %v574_v47  ;;  %860 = vst [vmem:[#allocation2 + $0x108] sm:$0xff] %v2685_v48 }
 0x108   : > { %v893_v53 = vadd.f32 %v2345_v41, %v892_v50  ;;  %v1028_v54 = vadd.f32 %v965_v51, %v964_v49 }
 0x10a   : > { %v1029_v56 = vadd.f32 %v1028_v54, %v966_v52  ;;  %v2349_v57 = vpop.f32.mrb[4].mxu0  ;;  %v894_v58 = vadd.f32 %v2346_v45, %v893_v53  ;;  %v2688_v59 = vpop.f32.mrb[4].mxu1 }
 0x10b   : > { %833 = vst [vmem:[#allocation2 + $0x30] sm:$0xff] %v2349_v57  ;;  %v587_v60 = vpop.f32.mrb[5].mxu0  ;;  %865 = vst [vmem:[#allocation2 + $0x130] sm:$0xff] %v2688_v59  ;;  %v2691_v61 = vpop.f32.mrb[5].mxu1  ;;  %v970_v8 = vmul.f32 %v2349_v57, %v2349_v57 }
 0x10c   : > { %831 = vst [vmem:[#allocation2 + $0x20] sm:$0xff] %v587_v60  ;;  %v895_v62 = vadd.f32 %v894_v58, %v587_v60  ;;  %v968_v63 = vmul.f32 %v587_v60, %v587_v60  ;;  %v1030_v0 = vadd.f32 %v1029_v56, %v967_v55  ;;  %v2350_v1 = vpop.f32.mrb[6].mxu0  ;;  %863 = vst [vmem:[#allocation2 + $0x120] sm:$0xff] %v2691_v61  ;;  %v2694_v2 = vpop.f32.mrb[6].mxu1 }
 0x10d   : > { %834 = vst [vmem:[#allocation2 + $0x38] sm:$0xff] %v2350_v1  ;;  %v590_v3 = vpop.f32.mrb[7].mxu0  ;;  %866 = vst [vmem:[#allocation2 + $0x138] sm:$0xff] %v2694_v2  ;;  %v2697_v4 = vpop.f32.mrb[7].mxu1  ;;  %v971_v11 = vmul.f32 %v2350_v1, %v2350_v1 }
 0x10e   : > { %v1031_v5 = vadd.f32 %v1030_v0, %v968_v63  ;;  %832 = vst [vmem:[#allocation2 + $0x28] sm:$0xff] %v590_v3  ;;  %v896_v6 = vadd.f32 %v895_v62, %v590_v3  ;;  %v969_v7 = vmul.f32 %v590_v3, %v590_v3  ;;  %864 = vst [vmem:[#allocation2 + $0x128] sm:$0xff] %v2697_v4 }
 0x110   : > { %v897_v9 = vadd.f32 %v2349_v57, %v896_v6  ;;  %v1032_v10 = vadd.f32 %v1031_v5, %v969_v7 }
 0x112   : > { %v1033_v12 = vadd.f32 %v1032_v10, %v970_v8  ;;  %v2353_v13 = vpop.f32.mrb[8].mxu0  ;;  %v898_v14 = vadd.f32 %v2350_v1, %v897_v9  ;;  %v2700_v15 = vpop.f32.mrb[8].mxu1 }
 0x113   : > { %837 = vst [vmem:[#allocation2 + $0x50] sm:$0xff] %v2353_v13  ;;  %v603_v16 = vpop.f32.mrb[9].mxu0  ;;  %869 = vst [vmem:[#allocation2 + $0x150] sm:$0xff] %v2700_v15  ;;  %v2703_v17 = vpop.f32.mrb[9].mxu1  ;;  %v974_v28 = vmul.f32 %v2353_v13, %v2353_v13 }
 0x114   : > { %835 = vst [vmem:[#allocation2 + $0x40] sm:$0xff] %v603_v16  ;;  %v899_v18 = vadd.f32 %v898_v14, %v603_v16  ;;  %v972_v19 = vmul.f32 %v603_v16, %v603_v16  ;;  %v1034_v20 = vadd.f32 %v1033_v12, %v971_v11  ;;  %v2354_v21 = vpop.f32.mrb[10].mxu0  ;;  %867 = vst [vmem:[#allocation2 + $0x140] sm:$0xff] %v2703_v17  ;;  %v2706_v22 = vpop.f32.mrb[10].mxu1 }
 0x115   : > { %838 = vst [vmem:[#allocation2 + $0x58] sm:$0xff] %v2354_v21  ;;  %v606_v23 = vpop.f32.mrb[11].mxu0  ;;  %870 = vst [vmem:[#allocation2 + $0x158] sm:$0xff] %v2706_v22  ;;  %v2709_v24 = vpop.f32.mrb[11].mxu1  ;;  %v975_v31 = vmul.f32 %v2354_v21, %v2354_v21 }
 0x116   : > { %v1035_v25 = vadd.f32 %v1034_v20, %v972_v19  ;;  %836 = vst [vmem:[#allocation2 + $0x48] sm:$0xff] %v606_v23  ;;  %v900_v26 = vadd.f32 %v899_v18, %v606_v23  ;;  %v973_v27 = vmul.f32 %v606_v23, %v606_v23  ;;  %868 = vst [vmem:[#allocation2 + $0x148] sm:$0xff] %v2709_v24 }
 0x118   : > { %v901_v29 = vadd.f32 %v2353_v13, %v900_v26  ;;  %v1036_v30 = vadd.f32 %v1035_v25, %v973_v27 }
 0x11a   : > { %v1037_v32 = vadd.f32 %v1036_v30, %v974_v28  ;;  %v2357_v33 = vpop.f32.mrb[12].mxu0  ;;  %v902_v34 = vadd.f32 %v2354_v21, %v901_v29  ;;  %v2712_v35 = vpop.f32.mrb[12].mxu1 }
 0x11b   : > { %841 = vst [vmem:[#allocation2 + $0x70] sm:$0xff] %v2357_v33  ;;  %v619_v36 = vpop.f32.mrb[13].mxu0  ;;  %873 = vst [vmem:[#allocation2 + $0x170] sm:$0xff] %v2712_v35  ;;  %v2715_v37 = vpop.f32.mrb[13].mxu1  ;;  %v978_v52 = vmul.f32 %v2357_v33, %v2357_v33 }
 0x11c   : > { %839 = vst [vmem:[#allocation2 + $0x60] sm:$0xff] %v619_v36  ;;  %v903_v38 = vadd.f32 %v902_v34, %v619_v36  ;;  %v976_v39 = vmul.f32 %v619_v36, %v619_v36  ;;  %v1038_v40 = vadd.f32 %v1037_v32, %v975_v31  ;;  %v2358_v41 = vpop.f32.mrb[14].mxu0  ;;  %871 = vst [vmem:[#allocation2 + $0x160] sm:$0xff] %v2715_v37  ;;  %v2718_v43 = vpop.f32.mrb[14].mxu1 }
 0x11d   : > { %842 = vst [vmem:[#allocation2 + $0x78] sm:$0xff] %v2358_v41  ;;  %v622_v45 = vpop.f32.mrb[15].mxu0  ;;  %874 = vst [vmem:[#allocation2 + $0x178] sm:$0xff] %v2718_v43  ;;  %v2721_v47 = vpop.f32.mrb[15].mxu1  ;;  %v979_v55 = vmul.f32 %v2358_v41, %v2358_v41 }
 0x11e   : > { %v1039_v49 = vadd.f32 %v1038_v40, %v976_v39  ;;  %840 = vst [vmem:[#allocation2 + $0x68] sm:$0xff] %v622_v45  ;;  %v904_v50 = vadd.f32 %v903_v38, %v622_v45  ;;  %v977_v51 = vmul.f32 %v622_v45, %v622_v45  ;;  %872 = vst [vmem:[#allocation2 + $0x168] sm:$0xff] %v2721_v47 }
 0x120   : > { %v905_v53 = vadd.f32 %v2357_v33, %v904_v50  ;;  %v1040_v54 = vadd.f32 %v1039_v49, %v977_v51 }
 0x122   : > { %v1041_v56 = vadd.f32 %v1040_v54, %v978_v52  ;;  %v2361_v57 = vpop.f32.mrb[16].mxu0  ;;  %v906_v58 = vadd.f32 %v2358_v41, %v905_v53  ;;  %v2724_v60 = vpop.f32.mrb[16].mxu1 }
 0x123   : > { %845 = vst [vmem:[#allocation2 + $0x90] sm:$0xff] %v2361_v57  ;;  %v635_v62 = vpop.f32.mrb[17].mxu0  ;;  %877 = vst [vmem:[#allocation2 + $0x190] sm:$0xff] %v2724_v60  ;;  %v2727_v63 = vpop.f32.mrb[17].mxu1  ;;  %v982_v12 = vmul.f32 %v2361_v57, %v2361_v57 }
 0x124   : > { %843 = vst [vmem:[#allocation2 + $0x80] sm:$0xff] %v635_v62  ;;  %v907_v0 = vadd.f32 %v906_v58, %v635_v62  ;;  %v980_v1 = vmul.f32 %v635_v62, %v635_v62  ;;  %v1042_v3 = vadd.f32 %v1041_v56, %v979_v55  ;;  %v2362_v5 = vpop.f32.mrb[18].mxu0  ;;  %875 = vst [vmem:[#allocation2 + $0x180] sm:$0xff] %v2727_v63  ;;  %v2730_v6 = vpop.f32.mrb[18].mxu1 }
 0x125   : > { %846 = vst [vmem:[#allocation2 + $0x98] sm:$0xff] %v2362_v5  ;;  %v638_v7 = vpop.f32.mrb[19].mxu0  ;;  %878 = vst [vmem:[#allocation2 + $0x198] sm:$0xff] %v2730_v6  ;;  %v2733_v8 = vpop.f32.mrb[19].mxu1  ;;  %v983_v16 = vmul.f32 %v2362_v5, %v2362_v5 }
 0x126   : > { %v1043_v9 = vadd.f32 %v1042_v3, %v980_v1  ;;  %844 = vst [vmem:[#allocation2 + $0x88] sm:$0xff] %v638_v7  ;;  %v908_v10 = vadd.f32 %v907_v0, %v638_v7  ;;  %v981_v11 = vmul.f32 %v638_v7, %v638_v7  ;;  %876 = vst [vmem:[#allocation2 + $0x188] sm:$0xff] %v2733_v8 }
 0x128   : > { %v909_v13 = vadd.f32 %v2361_v57, %v908_v10  ;;  %v1044_v14 = vadd.f32 %v1043_v9, %v981_v11 }
 0x12a   : > { %v1045_v18 = vadd.f32 %v1044_v14, %v982_v12  ;;  %v2365_v19 = vpop.f32.mrb[20].mxu0  ;;  %v910_v20 = vadd.f32 %v2362_v5, %v909_v13  ;;  %v2736_v21 = vpop.f32.mrb[20].mxu1 }
 0x12b   : > { %849 = vst [vmem:[#allocation2 + $0xb0] sm:$0xff] %v2365_v19  ;;  %v651_v23 = vpop.f32.mrb[21].mxu0  ;;  %881 = vst [vmem:[#allocation2 + $0x1b0] sm:$0xff] %v2736_v21  ;;  %v2739_v25 = vpop.f32.mrb[21].mxu1  ;;  %v986_v38 = vmul.f32 %v2365_v19, %v2365_v19 }
 0x12c   : > { %847 = vst [vmem:[#allocation2 + $0xa0] sm:$0xff] %v651_v23  ;;  %v911_v26 = vadd.f32 %v910_v20, %v651_v23  ;;  %v984_v27 = vmul.f32 %v651_v23, %v651_v23  ;;  %v1046_v28 = vadd.f32 %v1045_v18, %v983_v16  ;;  %v2366_v29 = vpop.f32.mrb[22].mxu0  ;;  %879 = vst [vmem:[#allocation2 + $0x1a0] sm:$0xff] %v2739_v25  ;;  %v2742_v30 = vpop.f32.mrb[22].mxu1 }
 0x12d   : > { %850 = vst [vmem:[#allocation2 + $0xb8] sm:$0xff] %v2366_v29  ;;  %v654_v31 = vpop.f32.mrb[23].mxu0  ;;  %882 = vst [vmem:[#allocation2 + $0x1b8] sm:$0xff] %v2742_v30  ;;  %v2745_v32 = vpop.f32.mrb[23].mxu1  ;;  %v987_v41 = vmul.f32 %v2366_v29, %v2366_v29 }
 0x12e   : > { %v1047_v33 = vadd.f32 %v1046_v28, %v984_v27  ;;  %848 = vst [vmem:[#allocation2 + $0xa8] sm:$0xff] %v654_v31  ;;  %v912_v34 = vadd.f32 %v911_v26, %v654_v31  ;;  %v985_v36 = vmul.f32 %v654_v31, %v654_v31  ;;  %880 = vst [vmem:[#allocation2 + $0x1a8] sm:$0xff] %v2745_v32 }
 0x130   : > { %v913_v39 = vadd.f32 %v2365_v19, %v912_v34  ;;  %v1048_v40 = vadd.f32 %v1047_v33, %v985_v36 }
 0x132   : > { %v1049_v45 = vadd.f32 %v1048_v40, %v986_v38  ;;  %v2369_v49 = vpop.f32.mrb[24].mxu0  ;;  %v914_v50 = vadd.f32 %v2366_v29, %v913_v39  ;;  %v2748_v51 = vpop.f32.mrb[24].mxu1 }
 0x133   : > { %853 = vst [vmem:[#allocation2 + $0xd0] sm:$0xff] %v2369_v49  ;;  %v667_v52 = vpop.f32.mrb[25].mxu0  ;;  %885 = vst [vmem:[#allocation2 + $0x1d0] sm:$0xff] %v2748_v51  ;;  %v2751_v53 = vpop.f32.mrb[25].mxu1  ;;  %v990_v7 = vmul.f32 %v2369_v49, %v2369_v49 }
 0x134   : > { %851 = vst [vmem:[#allocation2 + $0xc0] sm:$0xff] %v667_v52  ;;  %v915_v54 = vadd.f32 %v914_v50, %v667_v52  ;;  %v988_v55 = vmul.f32 %v667_v52, %v667_v52  ;;  %v1050_v56 = vadd.f32 %v1049_v45, %v987_v41  ;;  %v2370_v57 = vpop.f32.mrb[26].mxu0  ;;  %883 = vst [vmem:[#allocation2 + $0x1c0] sm:$0xff] %v2751_v53  ;;  %v2754_v58 = vpop.f32.mrb[26].mxu1 }
 0x135   : > { %854 = vst [vmem:[#allocation2 + $0xd8] sm:$0xff] %v2370_v57  ;;  %v670_v62 = vpop.f32.mrb[27].mxu0  ;;  %886 = vst [vmem:[#allocation2 + $0x1d8] sm:$0xff] %v2754_v58  ;;  %v2757_v0 = vpop.f32.mrb[27].mxu1  ;;  %v991_v11 = vmul.f32 %v2370_v57, %v2370_v57  ;;  %v996_v50 = vmul.f32 %v2679_v44, %v2679_v44 }
 0x136   : > { %v1051_v1 = vadd.f32 %v1050_v56, %v988_v55  ;;  %852 = vst [vmem:[#allocation2 + $0xc8] sm:$0xff] %v670_v62  ;;  %v916_v3 = vadd.f32 %v915_v54, %v670_v62  ;;  %v989_v5 = vmul.f32 %v670_v62, %v670_v62  ;;  %884 = vst [vmem:[#allocation2 + $0x1c8] sm:$0xff] %v2757_v0 }
 0x137   : > { %v998_v62 = vmul.f32 %v2676_v42, %v2676_v42 }
 0x138   : > { %v917_v9 = vadd.f32 %v2369_v49, %v916_v3  ;;  %v1052_v10 = vadd.f32 %v1051_v1, %v989_v5  ;;  %v999_v5 = vmul.f32 %v2682_v46, %v2682_v46 }
 0x13a   : > { %v1053_v12 = vadd.f32 %v1052_v10, %v990_v7  ;;  %v2373_v13 = vpop.f32.mrb[28].mxu0  ;;  %v918_v14 = vadd.f32 %v2370_v57, %v917_v9  ;;  %v2760_v16 = vpop.f32.mrb[28].mxu1  ;;  %v997_v57 = vmul.f32 %v2685_v48, %v2685_v48 }
 0x13b   : > { %857 = vst [vmem:[#allocation2 + $0xf0] sm:$0xff] %v2373_v13  ;;  %v683_v18 = vpop.f32.mrb[29].mxu0  ;;  %889 = vst [vmem:[#allocation2 + $0x1f0] sm:$0xff] %v2760_v16  ;;  %v2763_v19 = vpop.f32.mrb[29].mxu1  ;;  %v994_v38 = vmul.f32 %v2373_v13, %v2373_v13 }
 0x13c   : > { %855 = vst [vmem:[#allocation2 + $0xe0] sm:$0xff] %v683_v18  ;;  %v919_v20 = vadd.f32 %v918_v14, %v683_v18  ;;  %v992_v23 = vmul.f32 %v683_v18, %v683_v18  ;;  %v1054_v26 = vadd.f32 %v1053_v12, %v991_v11  ;;  %v2374_v27 = vpop.f32.mrb[30].mxu0  ;;  %887 = vst [vmem:[#allocation2 + $0x1e0] sm:$0xff] %v2763_v19  ;;  %v2766_v28 = vpop.f32.mrb[30].mxu1 }
 0x13d   : > { %858 = vst [vmem:[#allocation2 + $0xf8] sm:$0xff] %v2374_v27  ;;  %v686_v29 = vpop.f32.mrb[31].mxu0  ;;  %890 = vst [vmem:[#allocation2 + $0x1f8] sm:$0xff] %v2766_v28  ;;  %v2769_v31 = vpop.f32.mrb[31].mxu1  ;;  %v995_v41 = vmul.f32 %v2374_v27, %v2374_v27 }
 0x13e   : > { %v1055_v33 = vadd.f32 %v1054_v26, %v992_v23  ;;  %856 = vst [vmem:[#allocation2 + $0xe8] sm:$0xff] %v686_v29  ;;  %v920_v34 = vadd.f32 %v919_v20, %v686_v29  ;;  %v993_v36 = vmul.f32 %v686_v29, %v686_v29  ;;  %888 = vst [vmem:[#allocation2 + $0x1e8] sm:$0xff] %v2769_v31 }
 0x140   : > { %v921_v39 = vadd.f32 %v2373_v13, %v920_v34  ;;  %v1056_v40 = vadd.f32 %v1055_v33, %v993_v36  ;;  %v1001_v13 = vmul.f32 %v2697_v4, %v2697_v4  ;;  %v1005_v33 = vmul.f32 %v2709_v24, %v2709_v24 }
 0x142   : > { %v1057_v45 = vadd.f32 %v1056_v40, %v994_v38  ;;  %v922_v49 = vadd.f32 %v2374_v27, %v921_v39 }
 0x144   : > { %v923_v52 = vadd.f32 %v922_v49, %v2679_v44  ;;  %v1058_v54 = vadd.f32 %v1057_v45, %v995_v41  ;;  %v1000_v44 = vmul.f32 %v2691_v61, %v2691_v61  ;;  %v1009_v49 = vmul.f32 %v2721_v47, %v2721_v47 }
 0x146   : > { %v1059_v55 = vadd.f32 %v1058_v54, %v996_v50  ;;  %v924_v56 = vadd.f32 %v923_v52, %v2685_v48 }
 0x148   : > { %v925_v1 = vadd.f32 %v2676_v42, %v924_v56  ;;  %v1060_v3 = vadd.f32 %v1059_v55, %v997_v57  ;;  %v1002_v42 = vmul.f32 %v2688_v59, %v2688_v59 }
 0x14a   : > { %v1061_v7 = vadd.f32 %v1060_v3, %v998_v62  ;;  %v926_v9 = vadd.f32 %v2682_v46, %v925_v1  ;;  %v1003_v46 = vmul.f32 %v2694_v2, %v2694_v2  ;;  %v1013_v1 = vmul.f32 %v2733_v8, %v2733_v8 }
 0x14c   : > { %v927_v10 = vadd.f32 %v926_v9, %v2691_v61  ;;  %v1062_v11 = vadd.f32 %v1061_v7, %v999_v5  ;;  %v1004_v61 = vmul.f32 %v2703_v17, %v2703_v17 }
 0x14e   : > { %v1063_v12 = vadd.f32 %v1062_v11, %v1000_v44  ;;  %v928_v48 = vadd.f32 %v927_v10, %v2697_v4 }
 0x150   : > { %v929_v14 = vadd.f32 %v2688_v59, %v928_v48  ;;  %v1064_v18 = vadd.f32 %v1063_v12, %v1001_v13  ;;  %v1006_v59 = vmul.f32 %v2700_v15, %v2700_v15  ;;  %v1017_v12 = vmul.f32 %v2745_v32, %v2745_v32 }
 0x152   : > { %v1065_v20 = vadd.f32 %v1064_v18, %v1002_v42  ;;  %v930_v23 = vadd.f32 %v2694_v2, %v929_v14  ;;  %v1007_v2 = vmul.f32 %v2706_v22, %v2706_v22 }
 0x154   : > { %v931_v26 = vadd.f32 %v930_v23, %v2703_v17  ;;  %v1066_v27 = vadd.f32 %v1065_v20, %v1003_v46  ;;  %v1008_v17 = vmul.f32 %v2715_v37, %v2715_v37  ;;  %v1021_v23 = vmul.f32 %v2757_v0, %v2757_v0 }
 0x156   : > { %v1067_v29 = vadd.f32 %v1066_v27, %v1004_v61  ;;  %v932_v4 = vadd.f32 %v931_v26, %v2709_v24 }
 0x158   : > { %v933_v34 = vadd.f32 %v2700_v15, %v932_v4  ;;  %v1068_v36 = vadd.f32 %v1067_v29, %v1005_v33  ;;  %v1010_v15 = vmul.f32 %v2712_v35, %v2712_v35 }
 0x15a   : > { %v1069_v38 = vadd.f32 %v1068_v36, %v1006_v59  ;;  %v934_v39 = vadd.f32 %v2706_v22, %v933_v34  ;;  %v1011_v22 = vmul.f32 %v2718_v43, %v2718_v43  ;;  %v1025_v34 = vmul.f32 %v2769_v31, %v2769_v31 }
 0x15c   : > { %v935_v40 = vadd.f32 %v934_v39, %v2715_v37  ;;  %v1070_v41 = vadd.f32 %v1069_v38, %v1007_v2  ;;  %v1012_v37 = vmul.f32 %v2727_v63, %v2727_v63 }
 0x15e   : > { %v1071_v45 = vadd.f32 %v1070_v41, %v1008_v17  ;;  %v936_v24 = vadd.f32 %v935_v40, %v2721_v47 }
 0x160   : > { %v937_v50 = vadd.f32 %v2712_v35, %v936_v24  ;;  %v1072_v52 = vadd.f32 %v1071_v45, %v1009_v49  ;;  %v1014_v35 = vmul.f32 %v2724_v60, %v2724_v60 }
 0x162   : > { %v1073_v54 = vadd.f32 %v1072_v52, %v1010_v15  ;;  %v938_v55 = vadd.f32 %v2718_v43, %v937_v50  ;;  %v1015_v43 = vmul.f32 %v2730_v6, %v2730_v6  ;;  %v891_v52 = vld [vmem:[#allocation3] sm:$0x1] }
 0x164   : > { %v939_v56 = vadd.f32 %v938_v55, %v2727_v63  ;;  %v1074_v57 = vadd.f32 %v1073_v54, %v1011_v22  ;;  %v1016_v63 = vmul.f32 %v2739_v25, %v2739_v25  ;;  %v963_v54 = vld [vmem:[#allocation4] sm:$0x1] }
 0x166   : > { %v1075_v62 = vadd.f32 %v1074_v57, %v1012_v37  ;;  %v940_v47 = vadd.f32 %v939_v56, %v2733_v8 }
 0x168   : > { %v941_v3 = vadd.f32 %v2724_v60, %v940_v47  ;;  %v1076_v5 = vadd.f32 %v1075_v62, %v1013_v1  ;;  %v1018_v60 = vmul.f32 %v2736_v21, %v2736_v21 }
 0x16a   : > { %v1077_v7 = vadd.f32 %v1076_v5, %v1014_v35  ;;  %v942_v9 = vadd.f32 %v2730_v6, %v941_v3  ;;  %v1019_v6 = vmul.f32 %v2742_v30, %v2742_v30 }
 0x16c   : > { %v943_v44 = vadd.f32 %v942_v9, %v2739_v25  ;;  %v1078_v10 = vadd.f32 %v1077_v7, %v1015_v43  ;;  %v1020_v25 = vmul.f32 %v2751_v53, %v2751_v53 }
 0x16e   : > { %v1079_v11 = vadd.f32 %v1078_v10, %v1016_v63  ;;  %v944_v8 = vadd.f32 %v943_v44, %v2745_v32 }
 0x170   : > { %v945_v48 = vadd.f32 %v2736_v21, %v944_v8  ;;  %v1080_v13 = vadd.f32 %v1079_v11, %v1017_v12  ;;  %v1022_v21 = vmul.f32 %v2748_v51, %v2748_v51 }
 0x172   : > { %v1081_v42 = vadd.f32 %v1080_v13, %v1018_v60  ;;  %v946_v14 = vadd.f32 %v2742_v30, %v945_v48  ;;  %v1023_v30 = vmul.f32 %v2754_v58, %v2754_v58 }
 0x174   : > { %v947_v18 = vadd.f32 %v946_v14, %v2751_v53  ;;  %v1082_v46 = vadd.f32 %v1081_v42, %v1019_v6  ;;  %v1024_v53 = vmul.f32 %v2763_v19, %v2763_v19 }
 0x176   : > { %v1083_v20 = vadd.f32 %v1082_v46, %v1020_v25  ;;  %v948_v32 = vadd.f32 %v947_v18, %v2757_v0 }
 0x178   : > { %v949_v61 = vadd.f32 %v2748_v51, %v948_v32  ;;  %v1084_v26 = vadd.f32 %v1083_v20, %v1021_v23  ;;  %v1026_v51 = vmul.f32 %v2760_v16, %v2760_v16 }
 0x17a   : > { %v1085_v27 = vadd.f32 %v1084_v26, %v1022_v21  ;;  %v950_v29 = vadd.f32 %v2754_v58, %v949_v61  ;;  %v1027_v58 = vmul.f32 %v2766_v28, %v2766_v28 }
 0x17c   : > { %v951_v4 = vadd.f32 %v950_v29, %v2763_v19  ;;  %v1086_v33 = vadd.f32 %v1085_v27, %v1023_v30 }
 0x17e   : > { %v1087_v59 = vadd.f32 %v1086_v33, %v1024_v53  ;;  %v952_v0 = vadd.f32 %v951_v4, %v2769_v31 }
 0x180   : > { %v953_v36 = vadd.f32 %v2760_v16, %v952_v0  ;;  %v1088_v2 = vadd.f32 %v1087_v59, %v1025_v34 }
 0x182   : > { %v954_v38 = vadd.f32 %v2766_v28, %v953_v36  ;;  %v1089_v39 = vadd.f32 %v1088_v2, %v1026_v51 }
 0x184   : > { %v955_v19 = vrot.slane %v954_v38, 4  ;;  %v1090_v17 = vadd.f32 %v1089_v39, %v1027_v58 }
 0x186   : > { %v956_v40 = vadd.f32 %v955_v19, %v954_v38  ;;  %v1091_v41 = vrot.slane %v1090_v17, 4 }
 0x188   : > { %v957_v45 = vrot.slane %v956_v40, 2  ;;  %v1092_v24 = vadd.f32 %v1091_v41, %v1090_v17 }
 0x18a   : > { %v958_v49 = vadd.f32 %v957_v45, %v956_v40  ;;  %v1093_v31 = vrot.slane %v1092_v24, 2 }
 0x18c   : > { %v959_v15 = vrot.slane %v958_v49, 1  ;;  %v1094_v50 = vadd.f32 %v1093_v31, %v1092_v24 }
 0x18e   : > { %v960_v22 = vadd.f32 %v959_v15, %v958_v49  ;;  %v1095_v16 = vrot.slane %v1094_v50, 1 }
 0x190   : > { %v961_v55 = vadd.f32 %v960_v22, %v891_v52  ;;  %v1096_v37 = vadd.f32 %v1095_v16, %v1094_v50 }
 0x192   : > { %962 = vst [vmem:[#allocation3] sm:$0x1] %v961_v55  ;;  %v1097_v56 = vadd.f32 %v1096_v37, %v963_v54 }
 0x194   : > { %1098 = vst [vmem:[#allocation4] sm:$0x1] %v1097_v56 }
 0x195 PF: > { %p1961_p5 = scmp.ne.s32.totalorder %s2504_s12, 1 }
 0x196   : > { %v1114_v43 = vld [vmem:[%s3117_s2] sm:$0x1] (!%p1961_p5)  ;;  %v1119_v63 = vld [vmem:[%s3117_s2 + $0x1] sm:$0x1] (!%p1961_p5)  ;;  %v1125_v8 = vld [vmem:[#allocation2 + $0x8] sm:$0xff] (!%p1961_p5) }
 0x197   : > { %1102 = sbr.rel (%p1961_p5) target bundleno = 534 (0x216), region = 44  ;;  %v1124_v11 = vld [vmem:[#allocation2] sm:$0xff] (!%p1961_p5)  ;;  %v1126_v12 = vld [vmem:[#allocation2 + $0x10] sm:$0xff] (!%p1961_p5)  ;;  %v1127_v60 = vld [vmem:[#allocation2 + $0x18] sm:$0xff] (!%p1961_p5) }
 0x198   : > { %v1128_v48 = vld [vmem:[#allocation2 + $0x20] sm:$0xff] (!%p1961_p5)  ;;  %v1129_v13 = vld [vmem:[#allocation2 + $0x28] sm:$0xff] (!%p1961_p5)  ;;  %v1130_v6 = vld [vmem:[#allocation2 + $0x30] sm:$0xff] (!%p1961_p5) }
 0x199   : > { %v1107_v28 = vld [vmem:[#allocation3] sm:$0x1] (!%p1961_p5)  ;;  %v1131_v42 = vld [vmem:[#allocation2 + $0x38] sm:$0xff] (!%p1961_p5)  ;;  %v1133_v25 = vld [vmem:[#allocation2 + $0x48] sm:$0xff] (!%p1961_p5) }
 0x19a   : > { %v1108_v62 = vmul.f32 (!%p1961_p5), 0.001953125, %v1107_v28  ;;  %v1132_v14 = vld [vmem:[#allocation2 + $0x40] sm:$0xff] (!%p1961_p5)  ;;  %v1134_v18 = vld [vmem:[#allocation2 + $0x50] sm:$0xff] (!%p1961_p5)  ;;  %v1135_v20 = vld [vmem:[#allocation2 + $0x58] sm:$0xff] (!%p1961_p5) }
 0x19b   : > { %v1109_v57 = vld [vmem:[#allocation4] sm:$0x1] (!%p1961_p5)  ;;  %v1137_v30 = vld [vmem:[#allocation2 + $0x68] sm:$0xff] (!%p1961_p5)  ;;  %v1138_v27 = vld [vmem:[#allocation2 + $0x70] sm:$0xff] (!%p1961_p5) }
 0x19c   : > { %v1110_v47 = vmul.f32 (!%p1961_p5), 0.001953125, %v1109_v57  ;;  %v1111_v1 = vmul.f32 (!%p1961_p5), %v1108_v62, %v1108_v62  ;;  %v1136_v32 = vld [vmem:[#allocation2 + $0x60] sm:$0xff] (!%p1961_p5)  ;;  %v1139_v29 = vld [vmem:[#allocation2 + $0x78] sm:$0xff] (!%p1961_p5) }
 0x19e   : > { %v1112_v35 = vsub.f32 %v1110_v47, %v1111_v1 }
 0x1a0   : > { %v1113_v3 = vmax.f32 %v1112_v35, 0.0 }
 0x1a2   : > { %v1115_v5 = vadd.f32 1e-05, %v1113_v3 }
 0x1a4   : > { %2488 = vrsqrt.f32 %v1115_v5 }
 0x1ae   : > { %v2489_v7 = vpop.eup %2488 }
 0x1af   : > { %v1117_v9 = vmul.f32 %v2489_v7, %v1114_v43 }
 0x1b1   : > { %1118 = vst [vmem:[#allocation5] sm:$0x1] %v1117_v9  ;;  %v1120_v44 = vmul.f32 %v1117_v9, %v1108_v62 }
 0x1b3   : > { %v1121_v10 = vsub.f32 %v1119_v63, %v1120_v44 }
 0x1b5   : > { %1122 = vst [vmem:[#allocation6] sm:$0x1] %v1121_v10 }
 0x1b8   : > { %v2875_v46 = vld [vmem:[#allocation5] ss:$0 sm:$0xff] }
 0x1b9   : > { %v1195_v23 = vmul.f32 %v2875_v46, %v1124_v11  ;;  %v1196_v21 = vmul.f32 %v2875_v46, %v1125_v8  ;;  %v1197_v61 = vmul.f32 %v2875_v46, %v1126_v12  ;;  %v1198_v26 = vmul.f32 %v2875_v46, %v1127_v60 }
 0x1ba   : > { %v1199_v53 = vmul.f32 %v2875_v46, %v1128_v48  ;;  %v1200_v4 = vmul.f32 %v2875_v46, %v1129_v13  ;;  %v1201_v33 = vmul.f32 %v2875_v46, %v1130_v6  ;;  %v1202_v59 = vmul.f32 %v2875_v46, %v1131_v42 }
 0x1bb   : > { %v1203_v0 = vmul.f32 %v2875_v46, %v1132_v14  ;;  %v1204_v34 = vmul.f32 %v2875_v46, %v1133_v25  ;;  %v1205_v51 = vmul.f32 %v2875_v46, %v1134_v18  ;;  %v1206_v36 = vmul.f32 %v2875_v46, %v1135_v20 }
 0x1bc   : > { %v2889_v2 = vld [vmem:[#allocation6] ss:$0 sm:$0xff]  ;;  %v1207_v58 = vmul.f32 %v2875_v46, %v1136_v32  ;;  %v1208_v38 = vmul.f32 %v2875_v46, %v1137_v30  ;;  %v1209_v39 = vmul.f32 %v2875_v46, %v1138_v27  ;;  %v2895_v19 = vmul.f32 %v2875_v46, %v1139_v29 }
 0x1bd   : > { %v1266_v17 = vadd.f32 %v2889_v2, %v1195_v23  ;;  %v1267_v40 = vadd.f32 %v2889_v2, %v1196_v21  ;;  %v1268_v41 = vadd.f32 %v2889_v2, %v1197_v61  ;;  %v1269_v45 = vadd.f32 %v2889_v2, %v1198_v26  ;;  %v1140_v21 = vld [vmem:[#allocation2 + $0x80] sm:$0xff]  ;;  %v1141_v61 = vld [vmem:[#allocation2 + $0x88] sm:$0xff]  ;;  %v1142_v26 = vld [vmem:[#allocation2 + $0x90] sm:$0xff] }
 0x1be   : > { %v1270_v24 = vadd.f32 %v2889_v2, %v1199_v53  ;;  %v1271_v49 = vadd.f32 %v2889_v2, %v1200_v4  ;;  %v1272_v31 = vadd.f32 %v2889_v2, %v1201_v33  ;;  %v1273_v15 = vadd.f32 %v2889_v2, %v1202_v59  ;;  %v1143_v33 = vld [vmem:[#allocation2 + $0x98] sm:$0xff] }
 0x1bf   : > { %vm1330_vm0 = vcmp.gt.f32.partialorder %v1266_v17, 0.0  ;;  %vm1331_vm1 = vcmp.gt.f32.partialorder %v1267_v40, 0.0  ;;  %v1394_v50 = vmul.f32 0.2, %v1266_v17  ;;  %v1395_v52 = vmul.f32 0.2, %v1267_v40 }
 0x1c0   : > { %vm1332_vm2 = vcmp.gt.f32.partialorder %v1268_v41, 0.0  ;;  %vm1333_vm3 = vcmp.gt.f32.partialorder %v1269_v45, 0.0  ;;  %v1396_v22 = vmul.f32 0.2, %v1268_v41  ;;  %v1397_v16 = vmul.f32 0.2, %v1269_v45 }
 0x1c1   : > { %v1458_v54 = vsel %vm1330_vm0, %v1266_v17, %v1394_v50  ;;  %v1459_v55 = vsel %vm1331_vm1, %v1267_v40, %v1395_v52  ;;  %vm1334_vm4 = vcmp.gt.f32.partialorder %v1270_v24, 0.0  ;;  %vm1335_vm5 = vcmp.gt.f32.partialorder %v1271_v49, 0.0  ;;  %v1146_v50 = vld [vmem:[#allocation2 + $0xb0] sm:$0xff] }
 0x1c2   : > { %v2099_v37 = vpack.c.bf16 %v1459_v55, %v1458_v54  ;;  %v1460_v56 = vsel %vm1332_vm2, %v1268_v41, %v1396_v22  ;;  %v1461_v28 = vsel %vm1333_vm3, %v1269_v45, %v1397_v16  ;;  %v1398_v57 = vmul.f32 0.2, %v1270_v24 }
 0x1c3   : > { %v2104_v62 = vpack.c.bf16 %v1461_v28, %v1460_v56  ;;  %v1399_v47 = vmul.f32 0.2, %v1271_v49  ;;  %vm1336_vm6 = vcmp.gt.f32.partialorder %v1272_v31, 0.0  ;;  %vm1337_vm7 = vcmp.gt.f32.partialorder %v1273_v15, 0.0 }
 0x1c4   : > { %2100 = vst [vmem:[%s3118_s3] sm:$0xff] %v2099_v37   ;;  %v1462_v1 = vsel %vm1334_vm4, %v1270_v24, %v1398_v57  ;;  %v1400_v35 = vmul.f32 0.2, %v1272_v31  ;;  %v1401_v3 = vmul.f32 0.2, %v1273_v15  ;;  %v1274_v5 = vadd.f32 %v2889_v2, %v1203_v0  ;;  %v1147_v57 = vld [vmem:[#allocation2 + $0xb8] sm:$0xff] }
 0x1c5   : > { %2256 = vst [vmem:[%s3118_s3 + $0x8] sm:$0xff] %v2104_v62   ;;  %v1463_v43 = vsel %vm1335_vm5, %v1271_v49, %v1399_v47  ;;  %v1275_v7 = vadd.f32 %v2889_v2, %v1204_v34  ;;  %v1276_v9 = vadd.f32 %v2889_v2, %v1205_v51  ;;  %v1277_v63 = vadd.f32 %v2889_v2, %v1206_v36  ;;  %v1144_v36 = vld [vmem:[#allocation2 + $0xa0] sm:$0xff] }
 0x1c6   : > { %v2109_v44 = vpack.c.bf16 %v1463_v43, %v1462_v1  ;;  %v1464_v10 = vsel %vm1336_vm6, %v1272_v31, %v1400_v35  ;;  %v1465_v11 = vsel %vm1337_vm7, %v1273_v15, %v1401_v3  ;;  %vm1338_vm8 = vcmp.gt.f32.partialorder %v1274_v5, 0.0  ;;  %v1148_v3 = vld [vmem:[#allocation2 + $0xc0] sm:$0xff] }
 0x1c7   : > { %v2114_v8 = vpack.c.bf16 %v1465_v11, %v1464_v10  ;;  %vm1339_vm9 = vcmp.gt.f32.partialorder %v1275_v7, 0.0  ;;  %v1402_v12 = vmul.f32 0.2, %v1274_v5  ;;  %v1403_v60 = vmul.f32 0.2, %v1275_v7  ;;  %v1150_v11 = vld [vmem:[#allocation2 + $0xd0] sm:$0xff] }
 0x1c8   : > { %2257 = vst [vmem:[%s3118_s3 + $0x10] sm:$0xff] %v2109_v44   ;;  %vm1340_vm10 = vcmp.gt.f32.partialorder %v1276_v9, 0.0  ;;  %vm1341_vm11 = vcmp.gt.f32.partialorder %v1277_v63, 0.0  ;;  %v1404_v48 = vmul.f32 0.2, %v1276_v9  ;;  %v1278_v14 = vadd.f32 %v2889_v2, %v1207_v58  ;;  %v1145_v58 = vld [vmem:[#allocation2 + $0xa8] sm:$0xff] }
 0x1c9   : > { %v1405_v13 = vmul.f32 0.2, %v1277_v63  ;;  %2258 = vst [vmem:[%s3118_s3 + $0x18] sm:$0xff] %v2114_v8   ;;  %v1466_v6 = vsel %vm1338_vm8, %v1274_v5, %v1402_v12  ;;  %v1467_v42 = vsel %vm1339_vm9, %v1275_v7, %v1403_v60  ;;  %v1279_v25 = vadd.f32 %v2889_v2, %v1208_v38  ;;  %v1149_v5 = vld [vmem:[#allocation2 + $0xc8] sm:$0xff] }
 0x1ca   : > { %v2119_v18 = vpack.c.bf16 %v1467_v42, %v1466_v6  ;;  %v1468_v20 = vsel %vm1340_vm10, %v1276_v9, %v1404_v48  ;;  %v1280_v23 = vadd.f32 %v2889_v2, %v1209_v39  ;;  %vm1342_vm12 = vcmp.gt.f32.partialorder %v1278_v14, 0.0 }
 0x1cb   : > { %v1469_v32 = vsel %vm1341_vm11, %v1277_v63, %v1405_v13  ;;  %vm1343_vm13 = vcmp.gt.f32.partialorder %v1279_v25, 0.0  ;;  %v1406_v27 = vmul.f32 0.2, %v1278_v14  ;;  %v1407_v29 = vmul.f32 0.2, %v1279_v25  ;;  %v1151_v13 = vld [vmem:[#allocation2 + $0xd8] sm:$0xff] }
 0x1cc   : > { %v2124_v30 = vpack.c.bf16 %v1469_v32, %v1468_v20  ;;  %2259 = vst [vmem:[%s3118_s3 + $0x20] sm:$0xff] %v2119_v18   ;;  %v1281_v53 = vadd.f32 %v2889_v2, %v2895_v19  ;;  %vm1344_vm14 = vcmp.gt.f32.partialorder %v1280_v23, 0.0  ;;  %v1408_v4 = vmul.f32 0.2, %v1280_v23 }
 0x1cd   : > { %v1470_v59 = vsel %vm1342_vm12, %v1278_v14, %v1406_v27  ;;  %v1211_v0 = vmul.f32 %v2875_v46, %v1140_v21  ;;  %v1212_v34 = vmul.f32 %v2875_v46, %v1141_v61  ;;  %v1213_v51 = vmul.f32 %v2875_v46, %v1142_v26 }
 0x1ce   : > { %2260 = vst [vmem:[%s3118_s3 + $0x28] sm:$0xff] %v2124_v30   ;;  %v1471_v38 = vsel %vm1343_vm13, %v1279_v25, %v1407_v29  ;;  %vm1345_vm15 = vcmp.gt.f32.partialorder %v1281_v53, 0.0  ;;  %v1409_v39 = vmul.f32 0.2, %v1281_v53  ;;  %v1472_v19 = vsel %vm1344_vm14, %v1280_v23, %v1408_v4  ;;  %v1152_v23 = vld [vmem:[#allocation2 + $0xe0] sm:$0xff]  ;;  %v1153_v30 = vld [vmem:[#allocation2 + $0xe8] sm:$0xff] }
 0x1cf   : > { %v2129_v17 = vpack.c.bf16 %v1471_v38, %v1470_v59  ;;  %v1282_v40 = vadd.f32 %v2889_v2, %v1211_v0  ;;  %v1283_v41 = vadd.f32 %v2889_v2, %v1212_v34  ;;  %v1214_v45 = vmul.f32 %v2875_v46, %v1143_v33  ;;  %v1154_v0 = vld [vmem:[#allocation2 + $0xf0] sm:$0xff]  ;;  %v1155_v38 = vld [vmem:[#allocation2 + $0xf8] sm:$0xff] }
 0x1d0   : > { %v1473_v24 = vsel %vm1345_vm15, %v1281_v53, %v1409_v39  ;;  %v1284_v49 = vadd.f32 %v2889_v2, %v1213_v51  ;;  %v1215_v31 = vmul.f32 %v2875_v46, %v1144_v36  ;;  %v1216_v15 = vmul.f32 %v2875_v46, %v1145_v58  ;;  %v1156_v39 = vld [vmem:[#allocation2 + $0x100] sm:$0xff] }
 0x1d1   : > { %2261 = vst [vmem:[%s3118_s3 + $0x30] sm:$0xff] %v2129_v17   ;;  %v2134_v52 = vpack.c.bf16 %v1473_v24, %v1472_v19  ;;  %vm1346_vm0 = vcmp.gt.f32.partialorder %v1282_v40, 0.0  ;;  %vm1347_vm1 = vcmp.gt.f32.partialorder %v1283_v41, 0.0  ;;  %v1410_v22 = vmul.f32 0.2, %v1282_v40  ;;  %v1157_v19 = vld [vmem:[#allocation2 + $0x108] sm:$0xff] }
 0x1d2   : > { %v1411_v16 = vmul.f32 0.2, %v1283_v41  ;;  %v1285_v54 = vadd.f32 %v2889_v2, %v1214_v45  ;;  %vm1348_vm2 = vcmp.gt.f32.partialorder %v1284_v49, 0.0  ;;  %v1412_v55 = vmul.f32 0.2, %v1284_v49 }
 0x1d3   : > { %2262 = vst [vmem:[%s3118_s3 + $0x38] sm:$0xff] %v2134_v52   ;;  %v1474_v37 = vsel %vm1346_vm0, %v1282_v40, %v1410_v22  ;;  %v1286_v56 = vadd.f32 %v2889_v2, %v1215_v31  ;;  %v1287_v28 = vadd.f32 %v2889_v2, %v1216_v15  ;;  %v1217_v62 = vmul.f32 %v2875_v46, %v1146_v50  ;;  %v1158_v22 = vld [vmem:[#allocation2 + $0x110] sm:$0xff] }
 0x1d4   : > { %v1475_v47 = vsel %vm1347_vm1, %v1283_v41, %v1411_v16  ;;  %vm1349_vm3 = vcmp.gt.f32.partialorder %v1285_v54, 0.0  ;;  %v1413_v1 = vmul.f32 0.2, %v1285_v54  ;;  %v1476_v35 = vsel %vm1348_vm2, %v1284_v49, %v1412_v55 }
 0x1d5   : > { %v2139_v43 = vpack.c.bf16 %v1475_v47, %v1474_v37  ;;  %vm1350_vm4 = vcmp.gt.f32.partialorder %v1286_v56, 0.0  ;;  %vm1351_vm5 = vcmp.gt.f32.partialorder %v1287_v28, 0.0  ;;  %v1414_v7 = vmul.f32 0.2, %v1286_v56 }
 0x1d6   : > { %v1477_v9 = vsel %vm1349_vm3, %v1285_v54, %v1413_v1  ;;  %v1415_v63 = vmul.f32 0.2, %v1287_v28  ;;  %v1218_v44 = vmul.f32 %v2875_v46, %v1147_v57  ;;  %v1288_v10 = vadd.f32 %v2889_v2, %v1217_v62  ;;  %v1159_v1 = vld [vmem:[#allocation2 + $0x118] sm:$0xff] }
 0x1d7   : > { %2263 = vst [vmem:[%s3118_s3 + $0x40] sm:$0xff] %v2139_v43   ;;  %v2144_v8 = vpack.c.bf16 %v1477_v9, %v1476_v35  ;;  %v1478_v12 = vsel %vm1350_vm4, %v1286_v56, %v1414_v7  ;;  %v1219_v60 = vmul.f32 %v2875_v46, %v1148_v3  ;;  %v1220_v48 = vmul.f32 %v2875_v46, %v1149_v5  ;;  %v1160_v43 = vld [vmem:[#allocation2 + $0x120] sm:$0xff]  ;;  %v1161_v7 = vld [vmem:[#allocation2 + $0x128] sm:$0xff] }
 0x1d8   : > { %v1479_v6 = vsel %vm1351_vm5, %v1287_v28, %v1415_v63  ;;  %v1289_v42 = vadd.f32 %v2889_v2, %v1218_v44  ;;  %vm1352_vm6 = vcmp.gt.f32.partialorder %v1288_v10, 0.0  ;;  %v1416_v14 = vmul.f32 0.2, %v1288_v10 }
 0x1d9   : > { %2264 = vst [vmem:[%s3118_s3 + $0x48] sm:$0xff] %v2144_v8   ;;  %v2149_v25 = vpack.c.bf16 %v1479_v6, %v1478_v12  ;;  %v1290_v18 = vadd.f32 %v2889_v2, %v1219_v60  ;;  %v1291_v20 = vadd.f32 %v2889_v2, %v1220_v48  ;;  %v1221_v32 = vmul.f32 %v2875_v46, %v1150_v11  ;;  %v1162_v6 = vld [vmem:[#allocation2 + $0x130] sm:$0xff] }
 0x1da   : > { %vm1353_vm7 = vcmp.gt.f32.partialorder %v1289_v42, 0.0  ;;  %v1417_v21 = vmul.f32 0.2, %v1289_v42  ;;  %v1480_v61 = vsel %vm1352_vm6, %v1288_v10, %v1416_v14  ;;  %v1222_v26 = vmul.f32 %v2875_v46, %v1151_v13 }
 0x1db   : > { %2265 = vst [vmem:[%s3118_s3 + $0x50] sm:$0xff] %v2149_v25   ;;  %vm1354_vm8 = vcmp.gt.f32.partialorder %v1290_v18, 0.0  ;;  %vm1355_vm9 = vcmp.gt.f32.partialorder %v1291_v20, 0.0  ;;  %v1418_v27 = vmul.f32 0.2, %v1290_v18  ;;  %v1292_v4 = vadd.f32 %v2889_v2, %v1221_v32 }
 0x1dc   : > { %v1419_v29 = vmul.f32 0.2, %v1291_v20  ;;  %v1481_v53 = vsel %vm1353_vm7, %v1289_v42, %v1417_v21  ;;  %v1293_v33 = vadd.f32 %v2889_v2, %v1222_v26  ;;  %v1223_v59 = vmul.f32 %v2875_v46, %v1152_v23 }
 0x1dd   : > { %v2154_v34 = vpack.c.bf16 %v1481_v53, %v1480_v61  ;;  %v1482_v51 = vsel %vm1354_vm8, %v1290_v18, %v1418_v27  ;;  %v1224_v58 = vmul.f32 %v2875_v46, %v1153_v30  ;;  %vm1356_vm10 = vcmp.gt.f32.partialorder %v1292_v4, 0.0  ;;  %v1164_v27 = vld [vmem:[#allocation2 + $0x140] sm:$0xff] }
 0x1de   : > { %v1483_v36 = vsel %vm1355_vm9, %v1291_v20, %v1419_v29  ;;  %vm1357_vm11 = vcmp.gt.f32.partialorder %v1293_v33, 0.0  ;;  %v1420_v40 = vmul.f32 0.2, %v1292_v4  ;;  %v1421_v41 = vmul.f32 0.2, %v1293_v33  ;;  %v1163_v20 = vld [vmem:[#allocation2 + $0x138] sm:$0xff] }
 0x1df   : > { %v2159_v17 = vpack.c.bf16 %v1483_v36, %v1482_v51  ;;  %2266 = vst [vmem:[%s3118_s3 + $0x58] sm:$0xff] %v2154_v34   ;;  %v1294_v45 = vadd.f32 %v2889_v2, %v1223_v59  ;;  %v1295_v24 = vadd.f32 %v2889_v2, %v1224_v58  ;;  %v1225_v49 = vmul.f32 %v2875_v46, %v1154_v0 }
 0x1e0   : > { %v1484_v31 = vsel %vm1356_vm10, %v1292_v4, %v1420_v40  ;;  %v1226_v15 = vmul.f32 %v2875_v46, %v1155_v38  ;;  %v1227_v50 = vmul.f32 %v2875_v46, %v1156_v39  ;;  %v1228_v52 = vmul.f32 %v2875_v46, %v1157_v19  ;;  %v1166_v39 = vld [vmem:[#allocation2 + $0x150] sm:$0xff]  ;;  %v1167_v19 = vld [vmem:[#allocation2 + $0x158] sm:$0xff] }
 0x1e1   : > { %2267 = vst [vmem:[%s3118_s3 + $0x60] sm:$0xff] %v2159_v17   ;;  %v1485_v16 = vsel %vm1357_vm11, %v1293_v33, %v1421_v41  ;;  %vm1358_vm12 = vcmp.gt.f32.partialorder %v1294_v45, 0.0  ;;  %vm1359_vm13 = vcmp.gt.f32.partialorder %v1295_v24, 0.0  ;;  %v1422_v54 = vmul.f32 0.2, %v1294_v45  ;;  %v1165_v33 = vld [vmem:[#allocation2 + $0x148] sm:$0xff] }
 0x1e2   : > { %v2164_v55 = vpack.c.bf16 %v1485_v16, %v1484_v31  ;;  %v1423_v37 = vmul.f32 0.2, %v1295_v24  ;;  %v1296_v56 = vadd.f32 %v2889_v2, %v1225_v49  ;;  %v1297_v28 = vadd.f32 %v2889_v2, %v1226_v15  ;;  %v1169_v16 = vld [vmem:[#allocation2 + $0x168] sm:$0xff] }
 0x1e3   : > { %v1486_v57 = vsel %vm1358_vm12, %v1294_v45, %v1422_v54  ;;  %v1298_v62 = vadd.f32 %v2889_v2, %v1227_v50  ;;  %v1299_v47 = vadd.f32 %v2889_v2, %v1228_v52  ;;  %v1229_v35 = vmul.f32 %v2875_v46, %v1158_v22  ;;  %v1168_v45 = vld [vmem:[#allocation2 + $0x160] sm:$0xff] }
 0x1e4   : > { %2268 = vst [vmem:[%s3118_s3 + $0x68] sm:$0xff] %v2164_v55   ;;  %v1487_v3 = vsel %vm1359_vm13, %v1295_v24, %v1423_v37  ;;  %vm1360_vm14 = vcmp.gt.f32.partialorder %v1296_v56, 0.0  ;;  %vm1361_vm15 = vcmp.gt.f32.partialorder %v1297_v28, 0.0  ;;  %v1424_v5 = vmul.f32 0.2, %v1296_v56 }
 0x1e5   : > { %v2169_v9 = vpack.c.bf16 %v1487_v3, %v1486_v57  ;;  %v1425_v63 = vmul.f32 0.2, %v1297_v28  ;;  %vm1362_vm0 = vcmp.gt.f32.partialorder %v1298_v62, 0.0  ;;  %vm1363_vm1 = vcmp.gt.f32.partialorder %v1299_v47, 0.0 }
 0x1e6   : > { %v1488_v44 = vsel %vm1360_vm14, %v1296_v56, %v1424_v5  ;;  %v1426_v10 = vmul.f32 0.2, %v1298_v62  ;;  %v1427_v11 = vmul.f32 0.2, %v1299_v47  ;;  %v1230_v8 = vmul.f32 %v2875_v46, %v1159_v1  ;;  %v1170_v56 = vld [vmem:[#allocation2 + $0x170] sm:$0xff]  ;;  %v1171_v5 = vld [vmem:[#allocation2 + $0x178] sm:$0xff] }
 0x1e7   : > { %2269 = vst [vmem:[%s3118_s3 + $0x70] sm:$0xff] %v2169_v9   ;;  %v1489_v12 = vsel %vm1361_vm15, %v1297_v28, %v1425_v63  ;;  %v1300_v60 = vadd.f32 %v2889_v2, %v1229_v35  ;;  %v1231_v48 = vmul.f32 %v2875_v46, %v1160_v43  ;;  %v1232_v13 = vmul.f32 %v2875_v46, %v1161_v7 }
 0x1e8   : > { %v2174_v42 = vpack.c.bf16 %v1489_v12, %v1488_v44  ;;  %v1490_v14 = vsel %vm1362_vm0, %v1298_v62, %v1426_v10  ;;  %v1491_v25 = vsel %vm1363_vm1, %v1299_v47, %v1427_v11  ;;  %v1301_v18 = vadd.f32 %v2889_v2, %v1230_v8  ;;  %v1172_v11 = vld [vmem:[#allocation2 + $0x180] sm:$0xff] }
 0x1e9   : > { %v2179_v32 = vpack.c.bf16 %v1491_v25, %v1490_v14  ;;  %vm1364_vm2 = vcmp.gt.f32.partialorder %v1300_v60, 0.0  ;;  %v1428_v23 = vmul.f32 0.2, %v1300_v60  ;;  %v1302_v21 = vadd.f32 %v2889_v2, %v1231_v48  ;;  %v1173_v48 = vld [vmem:[#allocation2 + $0x188] sm:$0xff] }
 0x1ea   : > { %2270 = vst [vmem:[%s3118_s3 + $0x78] sm:$0xff] %v2174_v42   ;;  %vm1365_vm3 = vcmp.gt.f32.partialorder %v1301_v18, 0.0  ;;  %v1429_v61 = vmul.f32 0.2, %v1301_v18  ;;  %v1303_v26 = vadd.f32 %v2889_v2, %v1232_v13  ;;  %v1233_v30 = vmul.f32 %v2875_v46, %v1162_v6 }
 0x1eb   : > { %2271 = vst [vmem:[%s3118_s3 + $0x80] sm:$0xff] %v2179_v32   ;;  %v1492_v29 = vsel %vm1364_vm2, %v1300_v60, %v1428_v23  ;;  %vm1366_vm4 = vcmp.gt.f32.partialorder %v1302_v21, 0.0  ;;  %v1430_v53 = vmul.f32 0.2, %v1302_v21  ;;  %v1234_v4 = vmul.f32 %v2875_v46, %v1163_v20  ;;  %v1174_v32 = vld [vmem:[#allocation2 + $0x190] sm:$0xff]  ;;  %v1175_v23 = vld [vmem:[#allocation2 + $0x198] sm:$0xff] }
 0x1ec   : > { %v1493_v59 = vsel %vm1365_vm3, %v1301_v18, %v1429_v61  ;;  %vm1367_vm5 = vcmp.gt.f32.partialorder %v1303_v26, 0.0  ;;  %v1431_v0 = vmul.f32 0.2, %v1303_v26  ;;  %v1304_v34 = vadd.f32 %v2889_v2, %v1233_v30  ;;  %v1176_v30 = vld [vmem:[#allocation2 + $0x1a0] sm:$0xff] }
 0x1ed   : > { %v2184_v51 = vpack.c.bf16 %v1493_v59, %v1492_v29  ;;  %v1494_v36 = vsel %vm1366_vm4, %v1302_v21, %v1430_v53  ;;  %v1305_v58 = vadd.f32 %v2889_v2, %v1234_v4  ;;  %v1235_v38 = vmul.f32 %v2875_v46, %v1164_v27 }
 0x1ee   : > { %v1495_v17 = vsel %vm1367_vm5, %v1303_v26, %v1431_v0  ;;  %vm1368_vm6 = vcmp.gt.f32.partialorder %v1304_v34, 0.0  ;;  %v1432_v40 = vmul.f32 0.2, %v1304_v34  ;;  %v1236_v41 = vmul.f32 %v2875_v46, %v1165_v33 }
 0x1ef   : > { %2272 = vst [vmem:[%s3118_s3 + $0x88] sm:$0xff] %v2184_v51   ;;  %v2189_v24 = vpack.c.bf16 %v1495_v17, %v1494_v36  ;;  %vm1369_vm7 = vcmp.gt.f32.partialorder %v1305_v58, 0.0  ;;  %v1433_v49 = vmul.f32 0.2, %v1305_v58  ;;  %v1306_v31 = vadd.f32 %v2889_v2, %v1235_v38  ;;  %v1178_v38 = vld [vmem:[#allocation2 + $0x1b0] sm:$0xff] }
 0x1f0   : > { %v1496_v15 = vsel %vm1368_vm6, %v1304_v34, %v1432_v40  ;;  %v1307_v50 = vadd.f32 %v2889_v2, %v1236_v41  ;;  %v1237_v52 = vmul.f32 %v2875_v46, %v1166_v39  ;;  %v1238_v22 = vmul.f32 %v2875_v46, %v1167_v19  ;;  %v1177_v34 = vld [vmem:[#allocation2 + $0x1a8] sm:$0xff] }
 0x1f1   : > { %2273 = vst [vmem:[%s3118_s3 + $0x90] sm:$0xff] %v2189_v24   ;;  %v1497_v54 = vsel %vm1369_vm7, %v1305_v58, %v1433_v49  ;;  %vm1370_vm8 = vcmp.gt.f32.partialorder %v1306_v31, 0.0  ;;  %v1434_v55 = vmul.f32 0.2, %v1306_v31  ;;  %v1239_v37 = vmul.f32 %v2875_v46, %v1168_v45  ;;  %v1179_v49 = vld [vmem:[#allocation2 + $0x1b8] sm:$0xff] }
 0x1f2   : > { %v2194_v28 = vpack.c.bf16 %v1497_v54, %v1496_v15  ;;  %vm1371_vm9 = vcmp.gt.f32.partialorder %v1307_v50, 0.0  ;;  %v1435_v57 = vmul.f32 0.2, %v1307_v50  ;;  %v1308_v62 = vadd.f32 %v2889_v2, %v1237_v52  ;;  %v1180_v54 = vld [vmem:[#allocation2 + $0x1c0] sm:$0xff] }
 0x1f3   : > { %v1498_v47 = vsel %vm1370_vm8, %v1306_v31, %v1434_v55  ;;  %v1309_v1 = vadd.f32 %v2889_v2, %v1238_v22  ;;  %v1240_v35 = vmul.f32 %v2875_v46, %v1169_v16  ;;  %v1310_v3 = vadd.f32 %v2889_v2, %v1239_v37 }
 0x1f4   : > { %2274 = vst [vmem:[%s3118_s3 + $0x98] sm:$0xff] %v2194_v28   ;;  %v1499_v43 = vsel %vm1371_vm9, %v1307_v50, %v1435_v57  ;;  %vm1372_vm10 = vcmp.gt.f32.partialorder %v1308_v62, 0.0  ;;  %v1436_v7 = vmul.f32 0.2, %v1308_v62  ;;  %v1241_v9 = vmul.f32 %v2875_v46, %v1170_v56  ;;  %v1181_v28 = vld [vmem:[#allocation2 + $0x1c8] sm:$0xff] }
 0x1f5   : > { %v2199_v63 = vpack.c.bf16 %v1499_v43, %v1498_v47  ;;  %vm1373_vm11 = vcmp.gt.f32.partialorder %v1309_v1, 0.0  ;;  %v1437_v44 = vmul.f32 0.2, %v1309_v1  ;;  %v1311_v10 = vadd.f32 %v2889_v2, %v1240_v35  ;;  %v1182_v43 = vld [vmem:[#allocation2 + $0x1d0] sm:$0xff] }
 0x1f6   : > { %v1500_v8 = vsel %vm1372_vm10, %v1308_v62, %v1436_v7  ;;  %vm1374_vm12 = vcmp.gt.f32.partialorder %v1310_v3, 0.0  ;;  %v1438_v12 = vmul.f32 0.2, %v1310_v3  ;;  %v1242_v60 = vmul.f32 %v2875_v46, %v1171_v5  ;;  %v1183_v7 = vld [vmem:[#allocation2 + $0x1d8] sm:$0xff] }
 0x1f7   : > { %2275 = vst [vmem:[%s3118_s3 + $0xa0] sm:$0xff] %v2199_v63   ;;  %v1501_v13 = vsel %vm1373_vm11, %v1309_v1, %v1437_v44  ;;  %vm1375_vm13 = vcmp.gt.f32.partialorder %v1311_v10, 0.0  ;;  %v1439_v6 = vmul.f32 0.2, %v1311_v10  ;;  %v1312_v42 = vadd.f32 %v2889_v2, %v1241_v9 }
 0x1f8   : > { %v2204_v14 = vpack.c.bf16 %v1501_v13, %v1500_v8  ;;  %v1502_v25 = vsel %vm1374_vm12, %v1310_v3, %v1438_v12  ;;  %v1313_v18 = vadd.f32 %v2889_v2, %v1242_v60  ;;  %v1243_v20 = vmul.f32 %v2875_v46, %v1172_v11 }
 0x1f9   : > { %v1503_v21 = vsel %vm1375_vm13, %v1311_v10, %v1439_v6  ;;  %vm1376_vm14 = vcmp.gt.f32.partialorder %v1312_v42, 0.0  ;;  %v1440_v61 = vmul.f32 0.2, %v1312_v42  ;;  %v1244_v26 = vmul.f32 %v2875_v46, %v1173_v48  ;;  %v1184_v10 = vld [vmem:[#allocation2 + $0x1e0] sm:$0xff] }
 0x1fa   : > { %2276 = vst [vmem:[%s3118_s3 + $0xa8] sm:$0xff] %v2204_v14   ;;  %v2209_v27 = vpack.c.bf16 %v1503_v21, %v1502_v25  ;;  %vm1377_vm15 = vcmp.gt.f32.partialorder %v1313_v18, 0.0  ;;  %v1441_v29 = vmul.f32 0.2, %v1313_v18  ;;  %v1314_v53 = vadd.f32 %v2889_v2, %v1243_v20  ;;  %v1186_v20 = vld [vmem:[#allocation2 + $0x1f0] sm:$0xff] }
 0x1fb   : > { %v1504_v4 = vsel %vm1376_vm14, %v1312_v42, %v1440_v61  ;;  %v1315_v33 = vadd.f32 %v2889_v2, %v1244_v26  ;;  %v1245_v59 = vmul.f32 %v2875_v46, %v1174_v32  ;;  %v1246_v0 = vmul.f32 %v2875_v46, %v1175_v23  ;;  %v1185_v42 = vld [vmem:[#allocation2 + $0x1e8] sm:$0xff] }
 0x1fc   : > { %2277 = vst [vmem:[%s3118_s3 + $0xb0] sm:$0xff] %v2209_v27   ;;  %v1505_v51 = vsel %vm1377_vm15, %v1313_v18, %v1441_v29  ;;  %vm1378_vm0 = vcmp.gt.f32.partialorder %v1314_v53, 0.0  ;;  %v1442_v36 = vmul.f32 0.2, %v1314_v53  ;;  %v1247_v58 = vmul.f32 %v2875_v46, %v1176_v30  ;;  %v1187_v29 = vld [vmem:[#allocation2 + $0x1f8] sm:$0xff] }
 0x1fd   : > { %v2214_v39 = vpack.c.bf16 %v1505_v51, %v1504_v4  ;;  %vm1379_vm1 = vcmp.gt.f32.partialorder %v1315_v33, 0.0  ;;  %v1443_v19 = vmul.f32 0.2, %v1315_v33  ;;  %v1316_v17 = vadd.f32 %v2889_v2, %v1245_v59 }
 0x1fe   : > { %v1506_v40 = vsel %vm1378_vm0, %v1314_v53, %v1442_v36  ;;  %v1317_v41 = vadd.f32 %v2889_v2, %v1246_v0  ;;  %v1248_v45 = vmul.f32 %v2875_v46, %v1177_v34  ;;  %v1318_v24 = vadd.f32 %v2889_v2, %v1247_v58 }
 0x1ff   : > { %2278 = vst [vmem:[%s3118_s3 + $0xb8] sm:$0xff] %v2214_v39   ;;  %v1507_v31 = vsel %vm1379_vm1, %v1315_v33, %v1443_v19  ;;  %vm1380_vm2 = vcmp.gt.f32.partialorder %v1316_v17, 0.0  ;;  %v1444_v15 = vmul.f32 0.2, %v1316_v17  ;;  %v1249_v50 = vmul.f32 %v2875_v46, %v1178_v38 }
 0x200   : > { %v2219_v52 = vpack.c.bf16 %v1507_v31, %v1506_v40  ;;  %vm1381_vm3 = vcmp.gt.f32.partialorder %v1317_v41, 0.0  ;;  %v1445_v22 = vmul.f32 0.2, %v1317_v41  ;;  %v1319_v16 = vadd.f32 %v2889_v2, %v1248_v45 }
 0x201   : > { %v1508_v55 = vsel %vm1380_vm2, %v1316_v17, %v1444_v15  ;;  %vm1382_vm4 = vcmp.gt.f32.partialorder %v1318_v24, 0.0  ;;  %v1446_v37 = vmul.f32 0.2, %v1318_v24  ;;  %v1250_v56 = vmul.f32 %v2875_v46, %v1179_v49 }
 0x202   : > { %2279 = vst [vmem:[%s3118_s3 + $0xc0] sm:$0xff] %v2219_v52   ;;  %v1509_v57 = vsel %vm1381_vm3, %v1317_v41, %v1445_v22  ;;  %vm1383_vm5 = vcmp.gt.f32.partialorder %v1319_v16, 0.0  ;;  %v1447_v62 = vmul.f32 0.2, %v1319_v16  ;;  %v1320_v47 = vadd.f32 %v2889_v2, %v1249_v50 }
 0x203   : > { %v2224_v1 = vpack.c.bf16 %v1509_v57, %v1508_v55  ;;  %v1510_v35 = vsel %vm1382_vm4, %v1318_v24, %v1446_v37  ;;  %v1321_v3 = vadd.f32 %v2889_v2, %v1250_v56  ;;  %v1251_v5 = vmul.f32 %v2875_v46, %v1180_v54 }
 0x204   : > { %v1511_v9 = vsel %vm1383_vm5, %v1319_v16, %v1447_v62  ;;  %vm1384_vm6 = vcmp.gt.f32.partialorder %v1320_v47, 0.0  ;;  %v1448_v63 = vmul.f32 0.2, %v1320_v47  ;;  %v1252_v44 = vmul.f32 %v2875_v46, %v1181_v28 }
 0x205   : > { %2280 = vst [vmem:[%s3118_s3 + $0xc8] sm:$0xff] %v2224_v1   ;;  %v2229_v11 = vpack.c.bf16 %v1511_v9, %v1510_v35  ;;  %vm1385_vm7 = vcmp.gt.f32.partialorder %v1321_v3, 0.0  ;;  %v1449_v8 = vmul.f32 0.2, %v1321_v3  ;;  %v1322_v12 = vadd.f32 %v2889_v2, %v1251_v5 }
 0x206   : > { %v1512_v60 = vsel %vm1384_vm6, %v1320_v47, %v1448_v63  ;;  %v1323_v48 = vadd.f32 %v2889_v2, %v1252_v44  ;;  %v1253_v13 = vmul.f32 %v2875_v46, %v1182_v43  ;;  %v1254_v6 = vmul.f32 %v2875_v46, %v1183_v7 }
 0x207   : > { %2281 = vst [vmem:[%s3118_s3 + $0xd0] sm:$0xff] %v2229_v11   ;;  %v1513_v14 = vsel %vm1385_vm7, %v1321_v3, %v1449_v8  ;;  %vm1386_vm8 = vcmp.gt.f32.partialorder %v1322_v12, 0.0  ;;  %v1450_v25 = vmul.f32 0.2, %v1322_v12  ;;  %v1255_v18 = vmul.f32 %v2875_v46, %v1184_v10 }
 0x208   : > { %v2234_v32 = vpack.c.bf16 %v1513_v14, %v1512_v60  ;;  %vm1387_vm9 = vcmp.gt.f32.partialorder %v1323_v48, 0.0  ;;  %v1451_v23 = vmul.f32 0.2, %v1323_v48  ;;  %v1324_v21 = vadd.f32 %v2889_v2, %v1253_v13 }
 0x209   : > { %v1514_v61 = vsel %vm1386_vm8, %v1322_v12, %v1450_v25  ;;  %v1325_v26 = vadd.f32 %v2889_v2, %v1254_v6  ;;  %v1256_v30 = vmul.f32 %v2875_v46, %v1185_v42  ;;  %v1326_v27 = vadd.f32 %v2889_v2, %v1255_v18 }
 0x20a   : > { %2282 = vst [vmem:[%s3118_s3 + $0xd8] sm:$0xff] %v2234_v32   ;;  %v1515_v53 = vsel %vm1387_vm9, %v1323_v48, %v1451_v23  ;;  %vm1388_vm10 = vcmp.gt.f32.partialorder %v1324_v21, 0.0  ;;  %v1452_v4 = vmul.f32 0.2, %v1324_v21  ;;  %v1257_v33 = vmul.f32 %v2875_v46, %v1186_v20 }
 0x20b   : > { %v2239_v59 = vpack.c.bf16 %v1515_v53, %v1514_v61  ;;  %vm1389_vm11 = vcmp.gt.f32.partialorder %v1325_v26, 0.0  ;;  %v1453_v0 = vmul.f32 0.2, %v1325_v26  ;;  %v1327_v34 = vadd.f32 %v2889_v2, %v1256_v30 }
 0x20c   : > { %v1516_v51 = vsel %vm1388_vm10, %v1324_v21, %v1452_v4  ;;  %vm1390_vm12 = vcmp.gt.f32.partialorder %v1326_v27, 0.0  ;;  %v1454_v36 = vmul.f32 0.2, %v1326_v27  ;;  %v1258_v58 = vmul.f32 %v2875_v46, %v1187_v29 }
 0x20d   : > { %2283 = vst [vmem:[%s3118_s3 + $0xe0] sm:$0xff] %v2239_v59   ;;  %v1517_v38 = vsel %vm1389_vm11, %v1325_v26, %v1453_v0  ;;  %vm1391_vm13 = vcmp.gt.f32.partialorder %v1327_v34, 0.0  ;;  %v1455_v39 = vmul.f32 0.2, %v1327_v34  ;;  %v1328_v19 = vadd.f32 %v2889_v2, %v1257_v33 }
 0x20e   : > { %v2244_v17 = vpack.c.bf16 %v1517_v38, %v1516_v51  ;;  %v1518_v40 = vsel %vm1390_vm12, %v1326_v27, %v1454_v36  ;;  %v1329_v41 = vadd.f32 %v2889_v2, %v1258_v58 }
 0x20f   : > { %v1519_v45 = vsel %vm1391_vm13, %v1327_v34, %v1455_v39  ;;  %vm1392_vm14 = vcmp.gt.f32.partialorder %v1328_v19, 0.0  ;;  %v1456_v24 = vmul.f32 0.2, %v1328_v19 }
 0x210   : > { %2284 = vst [vmem:[%s3118_s3 + $0xe8] sm:$0xff] %v2244_v17   ;;  %v2249_v46 = vpack.c.bf16 %v1519_v45, %v1518_v40  ;;  %vm1393_vm15 = vcmp.gt.f32.partialorder %v1329_v41, 0.0  ;;  %v1457_v49 = vmul.f32 0.2, %v1329_v41 }
 0x211   : > { %v1520_v31 = vsel %vm1392_vm14, %v1328_v19, %v1456_v24 }
 0x212   : > { %2285 = vst [vmem:[%s3118_s3 + $0xf0] sm:$0xff] %v2249_v46   ;;  %v1521_v15 = vsel %vm1393_vm15, %v1329_v41, %v1457_v49 }
 0x213   : > { %v2254_v50 = vpack.c.bf16 %v1521_v15, %v1520_v31 }
 0x215   : > { %2286 = vst [vmem:[%s3118_s3 + $0xf8] sm:$0xff] %v2254_v50  }
 0x216 PF: > { %s13_s14 = sadd.s32 1, %s2512_s14   ;;  %s3119_s12 = smov %s2508_s13 }
 0x217   : > { %p10_p6 = scmp.ge.s32.totalorder %s13_s14, 4   ;;  %s3120_s13 = smov %s3122_s15 }
 0x219   :  { %12 = sbr.rel (!%p10_p6) target bundleno = 2 (0x2), region = 80 }

// kernel: forward.7
= control target key start
LH: loop header
LB: loop body
LE: loop exit
PB: predicated region body
PF: predicated region fallthrough
CT: control target
= control target key end

     0   :  { %s1226_s12 = smov 0   ;;  %s1228_s13 = smov 0   ;;  %s1422_s0 = inlined_call_operand.vmem [shape: bf16[128,256], index: 0, kind: input, shape index: {}]   ;;  %s1423_s1 = inlined_call_operand.vmem [shape: bf16[256,128], index: 1, kind: input, shape index: {}]   ;;  %s1424_s2 = inlined_call_operand.vmem [shape: f32[2,128], index: 2, kind: input, shape index: {}]   ;;  %s1425_s3 = inlined_call_operand.vmem [shape: bf16[128,128], index: 3, kind: output, shape index: {}]  }
   0x1   :  { %s1230_s14 = smov 0  }
   0x2 LB: > { %s25_s15 = sadd.s32 1, %s1199_s13  ;;  %p914_p0 = scmp.ge.s32.totalorder %s1203_s14, 1  ;;  %s1203_s14 = sphi %s1230_s14, %s13_s14   ;;  %s1199_s13 = sphi %s1228_s13, %s1427_s13   ;;  %s1195_s12 = sphi %s1226_s12, %s1426_s12  }
   0x3   : > { %p27_p1 = scmp.ge.s32.totalorder %s25_s15, 2  ;;  %p161_p2 = scmp.lt.s32.totalorder %s1203_s14, 3 }
   0x5   : > { %s1429_s15 = smov (%p27_p1, %s25_s15), 0  ;;  %p162_p3 = pnand %p914_p0, %p161_p2 }
   0x6   : > { %p915_p4 = scmp.ne.s32.totalorder (!%p162_p3), %s1195_s12, 0 }
   0x7   : > { %165 = sbr.rel (%p162_p3) target bundleno = 386 (0x182), region = 32 }
   0xe   : > { %213 = sbr.rel (%p915_p4) target bundleno = 323 (0x143), region = 36  ;;  %v1139_v0 = vld [vmem:[%s1423_s1 + $0x40] sm:$0xff] (!%p915_p4)   ;;  %v1141_v2 = vld [vmem:[%s1423_s1 + $0x48] sm:$0xff] (!%p915_p4)   ;;  %v1143_v4 = vld [vmem:[%s1423_s1 + $0x50] sm:$0xff] (!%p915_p4)   ;;  %v1205_v32 = vmov (!%p915_p4), 0.0  }
   0xf   : > { %v1140_v1 = vld [vmem:[%s1423_s1] sm:$0xff] (!%p915_p4)   ;;  %1034 = vmatprep.subr.bf16.mxu0 (!%p915_p4), %v1139_v0  ;;  %1098 = vmatprep.subr.bf16.mxu1 (!%p915_p4), %v1139_v0  ;;  %v1142_v3 = vld [vmem:[%s1423_s1 + $0x8] sm:$0xff] (!%p915_p4)   ;;  %v1144_v5 = vld [vmem:[%s1423_s1 + $0x10] sm:$0xff] (!%p915_p4)   ;;  %218 = vst [vmem:[#allocation3] sm:$0x1] (!%p915_p4), %v1205_v32 }
  0x10   : > { %1035 = vmatpush3.bf16.msra.mxu0 (!%p915_p4), %v1140_v1  ;;  %1106 = vmatpush3.bf16.msra.mxu1 (!%p915_p4), %v1140_v1  ;;  %v1145_v6 = vld [vmem:[%s1423_s1 + $0x58] sm:$0xff] (!%p915_p4)   ;;  %v1147_v8 = vld [vmem:[%s1423_s1 + $0x60] sm:$0xff] (!%p915_p4)   ;;  %v1149_v10 = vld [vmem:[%s1423_s1 + $0x68] sm:$0xff] (!%p915_p4)   ;;  %219 = vst [vmem:[#allocation4] sm:$0x1] (!%p915_p4), %v1205_v32 }
  0x11   : > { %1036 = vmatprep.subr.bf16.mxu0 (!%p915_p4), %v1141_v2  ;;  %1099 = vmatprep.subr.bf16.mxu1 (!%p915_p4), %v1141_v2  ;;  %v1146_v7 = vld [vmem:[%s1423_s1 + $0x18] sm:$0xff] (!%p915_p4)   ;;  %v1148_v9 = vld [vmem:[%s1423_s1 + $0x20] sm:$0xff] (!%p915_p4)   ;;  %v1150_v12 = vld [vmem:[%s1423_s1 + $0x28] sm:$0xff] (!%p915_p4)  }
  0x12   : > { %v1157_v11 = vld [vmem:[%s1422_s0 + $0x4] ss:$8 sps:$4 sm:$0xff] (!%p915_p4)   ;;  %v1151_v14 = vld [vmem:[%s1423_s1 + $0x70] sm:$0xff] (!%p915_p4)   ;;  %v1153_v16 = vld [vmem:[%s1423_s1 + $0x78] sm:$0xff] (!%p915_p4)  }
  0x13   : > { %v1163_v13 = vld [vmem:[%s1422_s0 + $0x44] ss:$8 sps:$4 sm:$0xff] (!%p915_p4)   ;;  %476 = vmatprep.mubr.bf16.mxu0 (!%p915_p4), %v1157_v11  ;;  %v1152_v15 = vld [vmem:[%s1423_s1 + $0x30] sm:$0xff] (!%p915_p4)   ;;  %v1154_v17 = vld [vmem:[%s1423_s1 + $0x38] sm:$0xff] (!%p915_p4)  }
  0x14   : > { %1037 = vmatpush3.bf16.msra.mxu0 (!%p915_p4), %v1142_v3  ;;  %1107 = vmatpush3.bf16.msra.mxu1 (!%p915_p4), %v1142_v3  ;;  %v1155_v18 = vld [vmem:[%s1422_s0] ss:$8 sps:$4 sm:$0xff] (!%p915_p4)   ;;  %v1158_v20 = vld [vmem:[%s1422_s0 + $0x14] ss:$8 sps:$4 sm:$0xff] (!%p915_p4)   ;;  %v1160_v22 = vld [vmem:[%s1422_s0 + $0x10] ss:$8 sps:$4 sm:$0xff] (!%p915_p4)  }
  0x15   : > { %1038 = vmatprep.subr.bf16.mxu0 %v1143_v4  ;;  %1100 = vmatprep.subr.bf16.mxu1 %v1143_v4  ;;  %v1161_v19 = vld [vmem:[%s1422_s0 + $0x40] ss:$8 sps:$4 sm:$0xff]   ;;  %v1167_v21 = vld [vmem:[%s1422_s0 + $0x54] ss:$8 sps:$4 sm:$0xff]   ;;  %v1169_v23 = vld [vmem:[%s1422_s0 + $0x50] ss:$8 sps:$4 sm:$0xff]  }
  0x16   : > { %508 = vmatprep.mubr.bf16.mxu1 %v1163_v13  ;;  %v1164_v24 = vld [vmem:[%s1422_s0 + $0x24] ss:$8 sps:$4 sm:$0xff]   ;;  %v1166_v26 = vld [vmem:[%s1422_s0 + $0x20] ss:$8 sps:$4 sm:$0xff]   ;;  %v1170_v28 = vld [vmem:[%s1422_s0 + $0x34] ss:$8 sps:$4 sm:$0xff]  }
  0x17   : > { %v1173_v25 = vld [vmem:[%s1422_s0 + $0x64] ss:$8 sps:$4 sm:$0xff]   ;;  %v1175_v27 = vld [vmem:[%s1422_s0 + $0x60] ss:$8 sps:$4 sm:$0xff]   ;;  %v1176_v29 = vld [vmem:[%s1422_s0 + $0x74] ss:$8 sps:$4 sm:$0xff]  }
  0x18   : > { %1039 = vmatpush3.bf16.msra.mxu0 %v1144_v5  ;;  %1108 = vmatpush3.bf16.msra.mxu1 %v1144_v5  ;;  %v1172_v30 = vld [vmem:[%s1422_s0 + $0x30] ss:$8 sps:$4 sm:$0xff]  }
  0x19   : > { %1040 = vmatprep.subr.bf16.mxu0 %v1145_v6  ;;  %1101 = vmatprep.subr.bf16.mxu1 %v1145_v6  ;;  %v1178_v31 = vld [vmem:[%s1422_s0 + $0x70] ss:$8 sps:$4 sm:$0xff]  }
  0x1c   : > { %1041 = vmatpush3.bf16.msra.mxu0 %v1146_v7  ;;  %1109 = vmatpush3.bf16.msra.mxu1 %v1146_v7 }
  0x1d   : > { %1042 = vmatprep.subr.bf16.mxu0 %v1147_v8  ;;  %1102 = vmatprep.subr.bf16.mxu1 %v1147_v8 }
  0x20   : > { %1043 = vmatpush3.bf16.msra.mxu0 %v1148_v9  ;;  %1110 = vmatpush3.bf16.msra.mxu1 %v1148_v9 }
  0x21   : > { %1044 = vmatprep.subr.bf16.mxu0 %v1149_v10  ;;  %1103 = vmatprep.subr.bf16.mxu1 %v1149_v10 }
  0x24   : > { %1045 = vmatpush3.bf16.msra.mxu0 %v1150_v12  ;;  %1111 = vmatpush3.bf16.msra.mxu1 %v1150_v12 }
  0x25   : > { %1046 = vmatprep.subr.bf16.mxu0 %v1151_v14  ;;  %1104 = vmatprep.subr.bf16.mxu1 %v1151_v14 }
  0x28   : > { %1047 = vmatpush3.bf16.msra.mxu0 %v1152_v15  ;;  %1112 = vmatpush3.bf16.msra.mxu1 %v1152_v15 }
  0x29   : > { %1048 = vmatprep.subr.bf16.mxu0 %v1153_v16  ;;  %1105 = vmatprep.subr.bf16.mxu1 %v1153_v16 }
  0x2c   : > { %1049 = vmatpush3.bf16.msra.mxu0 %v1154_v17  ;;  %1113 = vmatpush3.bf16.msra.mxu1 %v1154_v17 }
  0x2f   : > { %477 = vmatmul.mubr.bf16.vlgmr.msra.gmra.mrb[0].mxu0 %v1155_v18  ;;  %509 = vmatmul.mubr.bf16.vlgmr.msra.gmra.mrb[0].mxu1 %v1161_v19 }
  0x30   : > { %484 = vmatprep.mubr.bf16.mxu0 %v1158_v20  ;;  %516 = vmatprep.mubr.bf16.mxu1 %v1167_v21 }
  0x37   : > { %485 = vmatmul.mubr.bf16.gmra.mrb[4].mxu0 %v1160_v22  ;;  %517 = vmatmul.mubr.bf16.gmra.mrb[4].mxu1 %v1169_v23 }
  0x38   : > { %492 = vmatprep.mubr.bf16.mxu0 %v1164_v24  ;;  %524 = vmatprep.mubr.bf16.mxu1 %v1173_v25 }
  0x3f   : > { %493 = vmatmul.mubr.bf16.gmra.mrb[8].mxu0 %v1166_v26  ;;  %525 = vmatmul.mubr.bf16.gmra.mrb[8].mxu1 %v1175_v27 }
  0x40   : > { %500 = vmatprep.mubr.bf16.mxu0 %v1170_v28  ;;  %532 = vmatprep.mubr.bf16.mxu1 %v1176_v29 }
  0x47   : > { %501 = vmatmul.mubr.bf16.gmra.mrb[12].mxu0 %v1172_v30  ;;  %533 = vmatmul.mubr.bf16.gmra.mrb[12].mxu1 %v1178_v31 }
 0x102   : > { %v1050_v33 = vpop.f32.mrb[0].mxu0  ;;  %v1074_v34 = vpop.f32.mrb[0].mxu1 }
 0x103   : > { %v1051_v35 = vpop.f32.mrb[1].mxu0  ;;  %v1075_v36 = vpop.f32.mrb[1].mxu1 }
 0x104   : > { %v1052_v37 = vadd.f32 %v1051_v35, %v1050_v33  ;;  %v1053_v38 = vpop.f32.mrb[2].mxu0  ;;  %v1343_v39 = vadd.f32 %v1075_v36, %v1074_v34  ;;  %v1077_v40 = vpop.f32.mrb[2].mxu1 }
 0x105   : > { %v1054_v41 = vpop.f32.mrb[3].mxu0  ;;  %v1078_v42 = vpop.f32.mrb[3].mxu1 }
 0x106   : > { %542 = vst [vmem:[#allocation2] sm:$0xff] %v1052_v37  ;;  %v1055_v43 = vadd.f32 %v1054_v41, %v1053_v38  ;;  %550 = vst [vmem:[#allocation2 + $0x40] sm:$0xff] %v1343_v39  ;;  %v1346_v44 = vadd.f32 %v1078_v42, %v1077_v40  ;;  %v583_v45 = vmul.f32 %v1052_v37, %v1052_v37 }
 0x107   : > { %v591_v38 = vmul.f32 %v1343_v39, %v1343_v39 }
 0x108   : > { %543 = vst [vmem:[#allocation2 + $0x8] sm:$0xff] %v1055_v43  ;;  %v559_v46 = vadd.f32 %v1055_v43, %v1052_v37  ;;  %v584_v47 = vmul.f32 %v1055_v43, %v1055_v43  ;;  %551 = vst [vmem:[#allocation2 + $0x48] sm:$0xff] %v1346_v44  ;;  %v592_v42 = vmul.f32 %v1346_v44, %v1346_v44 }
 0x10a   : > { %v599_v48 = vadd.f32 %v584_v47, %v583_v45  ;;  %v1056_v49 = vpop.f32.mrb[4].mxu0  ;;  %v1080_v50 = vpop.f32.mrb[4].mxu1 }
 0x10b   : > { %v1057_v51 = vpop.f32.mrb[5].mxu0  ;;  %v1081_v52 = vpop.f32.mrb[5].mxu1 }
 0x10c   : > { %v1058_v53 = vadd.f32 %v1057_v51, %v1056_v49  ;;  %v1059_v54 = vpop.f32.mrb[6].mxu0  ;;  %v1349_v55 = vadd.f32 %v1081_v52, %v1080_v50  ;;  %v1083_v56 = vpop.f32.mrb[6].mxu1 }
 0x10d   : > { %v1060_v57 = vpop.f32.mrb[7].mxu0  ;;  %v1084_v58 = vpop.f32.mrb[7].mxu1 }
 0x10e   : > { %544 = vst [vmem:[#allocation2 + $0x10] sm:$0xff] %v1058_v53  ;;  %v560_v59 = vadd.f32 %v1058_v53, %v559_v46  ;;  %v585_v60 = vmul.f32 %v1058_v53, %v1058_v53  ;;  %v1061_v61 = vadd.f32 %v1060_v57, %v1059_v54  ;;  %552 = vst [vmem:[#allocation2 + $0x50] sm:$0xff] %v1349_v55 }
 0x10f   : > { %v1085_v62 = vadd.f32 %v1084_v58, %v1083_v56  ;;  %v593_v46 = vmul.f32 %v1349_v55, %v1349_v55 }
 0x110   : > { %v600_v63 = vadd.f32 %v599_v48, %v585_v60  ;;  %545 = vst [vmem:[#allocation2 + $0x18] sm:$0xff] %v1061_v61  ;;  %v561_v0 = vadd.f32 %v1061_v61, %v560_v59  ;;  %v586_v1 = vmul.f32 %v1061_v61, %v1061_v61 }
 0x111   : > { %553 = vst [vmem:[#allocation2 + $0x58] sm:$0xff] %v1085_v62  ;;  %v594_v49 = vmul.f32 %v1085_v62, %v1085_v62 }
 0x112   : > { %v601_v2 = vadd.f32 %v600_v63, %v586_v1  ;;  %v1062_v3 = vpop.f32.mrb[8].mxu0  ;;  %v1086_v4 = vpop.f32.mrb[8].mxu1 }
 0x113   : > { %v1063_v5 = vpop.f32.mrb[9].mxu0  ;;  %v1087_v6 = vpop.f32.mrb[9].mxu1 }
 0x114   : > { %v1064_v7 = vadd.f32 %v1063_v5, %v1062_v3  ;;  %v1065_v8 = vpop.f32.mrb[10].mxu0  ;;  %v1088_v9 = vadd.f32 %v1087_v6, %v1086_v4  ;;  %v1089_v10 = vpop.f32.mrb[10].mxu1 }
 0x115   : > { %v1066_v11 = vpop.f32.mrb[11].mxu0  ;;  %v1090_v12 = vpop.f32.mrb[11].mxu1 }
 0x116   : > { %546 = vst [vmem:[#allocation2 + $0x20] sm:$0xff] %v1064_v7  ;;  %v562_v13 = vadd.f32 %v1064_v7, %v561_v0  ;;  %v587_v14 = vmul.f32 %v1064_v7, %v1064_v7  ;;  %v1067_v15 = vadd.f32 %v1066_v11, %v1065_v8  ;;  %554 = vst [vmem:[#allocation2 + $0x60] sm:$0xff] %v1088_v9  ;;  %v558_v8 = vld [vmem:[#allocation3] sm:$0x1]  ;;  %v582_v11 = vld [vmem:[#allocation4] sm:$0x1] }
 0x117   : > { %v1091_v16 = vadd.f32 %v1090_v12, %v1089_v10  ;;  %v595_v53 = vmul.f32 %v1088_v9, %v1088_v9 }
 0x118   : > { %v602_v17 = vadd.f32 %v601_v2, %v587_v14  ;;  %547 = vst [vmem:[#allocation2 + $0x28] sm:$0xff] %v1067_v15  ;;  %v563_v18 = vadd.f32 %v1067_v15, %v562_v13  ;;  %v588_v19 = vmul.f32 %v1067_v15, %v1067_v15 }
 0x119   : > { %555 = vst [vmem:[#allocation2 + $0x68] sm:$0xff] %v1091_v16  ;;  %v596_v57 = vmul.f32 %v1091_v16, %v1091_v16 }
 0x11a   : > { %v603_v20 = vadd.f32 %v602_v17, %v588_v19  ;;  %v1068_v21 = vpop.f32.mrb[12].mxu0  ;;  %v1092_v22 = vpop.f32.mrb[12].mxu1 }
 0x11b   : > { %v1069_v23 = vpop.f32.mrb[13].mxu0  ;;  %v1093_v24 = vpop.f32.mrb[13].mxu1 }
 0x11c   : > { %v1070_v25 = vadd.f32 %v1069_v23, %v1068_v21  ;;  %v1071_v26 = vpop.f32.mrb[14].mxu0  ;;  %v1094_v27 = vadd.f32 %v1093_v24, %v1092_v22  ;;  %v1095_v28 = vpop.f32.mrb[14].mxu1 }
 0x11d   : > { %v1072_v29 = vpop.f32.mrb[15].mxu0  ;;  %v1096_v30 = vpop.f32.mrb[15].mxu1 }
 0x11e   : > { %548 = vst [vmem:[#allocation2 + $0x30] sm:$0xff] %v1070_v25  ;;  %v564_v31 = vadd.f32 %v1070_v25, %v563_v18  ;;  %v589_v32 = vmul.f32 %v1070_v25, %v1070_v25  ;;  %v1073_v33 = vadd.f32 %v1072_v29, %v1071_v26  ;;  %556 = vst [vmem:[#allocation2 + $0x70] sm:$0xff] %v1094_v27 }
 0x11f   : > { %v1097_v34 = vadd.f32 %v1096_v30, %v1095_v28  ;;  %v597_v58 = vmul.f32 %v1094_v27, %v1094_v27 }
 0x120   : > { %v604_v35 = vadd.f32 %v603_v20, %v589_v32  ;;  %549 = vst [vmem:[#allocation2 + $0x38] sm:$0xff] %v1073_v33  ;;  %v565_v36 = vadd.f32 %v1073_v33, %v564_v31  ;;  %v590_v37 = vmul.f32 %v1073_v33, %v1073_v33 }
 0x121   : > { %557 = vst [vmem:[#allocation2 + $0x78] sm:$0xff] %v1097_v34  ;;  %v598_v63 = vmul.f32 %v1097_v34, %v1097_v34 }
 0x122   : > { %v566_v40 = vadd.f32 %v1343_v39, %v565_v36  ;;  %v605_v41 = vadd.f32 %v604_v35, %v590_v37 }
 0x124   : > { %v567_v43 = vadd.f32 %v1346_v44, %v566_v40  ;;  %v606_v45 = vadd.f32 %v605_v41, %v591_v38 }
 0x126   : > { %v607_v47 = vadd.f32 %v606_v45, %v592_v42  ;;  %v568_v48 = vadd.f32 %v1349_v55, %v567_v43 }
 0x128   : > { %v569_v50 = vadd.f32 %v1085_v62, %v568_v48  ;;  %v608_v51 = vadd.f32 %v607_v47, %v593_v46 }
 0x12a   : > { %v570_v52 = vadd.f32 %v1088_v9, %v569_v50  ;;  %v609_v54 = vadd.f32 %v608_v51, %v594_v49 }
 0x12c   : > { %v610_v39 = vadd.f32 %v609_v54, %v595_v53  ;;  %v571_v56 = vadd.f32 %v1091_v16, %v570_v52 }
 0x12e   : > { %v611_v59 = vadd.f32 %v610_v39, %v596_v57  ;;  %v572_v60 = vadd.f32 %v1094_v27, %v571_v56 }
 0x130   : > { %v612_v44 = vadd.f32 %v611_v59, %v597_v58  ;;  %v573_v61 = vadd.f32 %v1097_v34, %v572_v60 }
 0x132   : > { %v574_v0 = vrot.slane %v573_v61, 4  ;;  %v613_v1 = vadd.f32 %v612_v44, %v598_v63 }
 0x134   : > { %v575_v2 = vadd.f32 %v574_v0, %v573_v61  ;;  %v614_v3 = vrot.slane %v613_v1, 4 }
 0x136   : > { %v576_v55 = vrot.slane %v575_v2, 2  ;;  %v615_v4 = vadd.f32 %v614_v3, %v613_v1 }
 0x138   : > { %v577_v62 = vadd.f32 %v576_v55, %v575_v2  ;;  %v616_v5 = vrot.slane %v615_v4, 2 }
 0x13a   : > { %v578_v6 = vrot.slane %v577_v62, 1  ;;  %v617_v7 = vadd.f32 %v616_v5, %v615_v4 }
 0x13c   : > { %v579_v9 = vadd.f32 %v578_v6, %v577_v62  ;;  %v618_v10 = vrot.slane %v617_v7, 1 }
 0x13e   : > { %v580_v12 = vadd.f32 %v579_v9, %v558_v8  ;;  %v619_v13 = vadd.f32 %v618_v10, %v617_v7 }
 0x140   : > { %581 = vst [vmem:[#allocation3] sm:$0x1] %v580_v12  ;;  %v620_v14 = vadd.f32 %v619_v13, %v582_v11 }
 0x142   : > { %621 = vst [vmem:[#allocation4] sm:$0x1] %v620_v14 }
 0x143 PF: > { %p948_p5 = scmp.ne.s32.totalorder %s1195_s12, 1 }
 0x144   : > { %v637_v23 = vld [vmem:[%s1424_s2] sm:$0x1] (!%p948_p5)  ;;  %v642_v26 = vld [vmem:[%s1424_s2 + $0x1] sm:$0x1] (!%p948_p5)  ;;  %v648_v30 = vld [vmem:[#allocation2 + $0x8] sm:$0xff] (!%p948_p5) }
 0x145   : > { %625 = sbr.rel (%p948_p5) target bundleno = 386 (0x182), region = 44  ;;  %v647_v29 = vld [vmem:[#allocation2] sm:$0xff] (!%p948_p5)  ;;  %v649_v31 = vld [vmem:[#allocation2 + $0x10] sm:$0xff] (!%p948_p5)  ;;  %v650_v32 = vld [vmem:[#allocation2 + $0x18] sm:$0xff] (!%p948_p5) }
 0x146   : > { %v651_v33 = vld [vmem:[#allocation2 + $0x20] sm:$0xff] (!%p948_p5)  ;;  %v652_v34 = vld [vmem:[#allocation2 + $0x28] sm:$0xff] (!%p948_p5)  ;;  %v653_v35 = vld [vmem:[#allocation2 + $0x30] sm:$0xff] (!%p948_p5) }
 0x147   : > { %v630_v15 = vld [vmem:[#allocation3] sm:$0x1] (!%p948_p5)  ;;  %v654_v36 = vld [vmem:[#allocation2 + $0x38] sm:$0xff] (!%p948_p5)  ;;  %v656_v38 = vld [vmem:[#allocation2 + $0x48] sm:$0xff] (!%p948_p5) }
 0x148   : > { %v631_v17 = vmul.f32 (!%p948_p5), 0.0078125, %v630_v15  ;;  %v655_v37 = vld [vmem:[#allocation2 + $0x40] sm:$0xff] (!%p948_p5)  ;;  %v657_v40 = vld [vmem:[#allocation2 + $0x50] sm:$0xff] (!%p948_p5)  ;;  %v658_v42 = vld [vmem:[#allocation2 + $0x58] sm:$0xff] (!%p948_p5) }
 0x149   : > { %v632_v16 = vld [vmem:[#allocation4] sm:$0x1] (!%p948_p5)  ;;  %v660_v49 = vld [vmem:[#allocation2 + $0x68] sm:$0xff] (!%p948_p5)  ;;  %v661_v50 = vld [vmem:[#allocation2 + $0x70] sm:$0xff] (!%p948_p5) }
 0x14a   : > { %v633_v18 = vmul.f32 (!%p948_p5), 0.0078125, %v632_v16  ;;  %v634_v19 = vmul.f32 (!%p948_p5), %v631_v17, %v631_v17  ;;  %v659_v43 = vld [vmem:[#allocation2 + $0x60] sm:$0xff] (!%p948_p5)  ;;  %v662_v51 = vld [vmem:[#allocation2 + $0x78] sm:$0xff] (!%p948_p5) }
 0x14c   : > { %v635_v20 = vsub.f32 %v633_v18, %v634_v19 }
 0x14e   : > { %v636_v21 = vmax.f32 %v635_v20, 0.0 }
 0x150   : > { %v638_v22 = vadd.f32 1e-05, %v636_v21 }
 0x152   : > { %1179 = vrsqrt.f32 %v638_v22 }
 0x15c   : > { %v1180_v24 = vpop.eup %1179 }
 0x15d   : > { %v640_v25 = vmul.f32 %v1180_v24, %v637_v23 }
 0x15f   : > { %641 = vst [vmem:[#allocation5] sm:$0x1] %v640_v25  ;;  %v643_v27 = vmul.f32 %v640_v25, %v631_v17 }
 0x161   : > { %v644_v28 = vsub.f32 %v642_v26, %v643_v27 }
 0x163   : > { %645 = vst [vmem:[#allocation6] sm:$0x1] %v644_v28 }
 0x166   : > { %v949_v41 = vld [vmem:[#allocation5] ss:$0 sm:$0xff] }
 0x167   : > { %v670_v45 = vmul.f32 %v949_v41, %v647_v29  ;;  %v671_v46 = vmul.f32 %v949_v41, %v648_v30  ;;  %v672_v47 = vmul.f32 %v949_v41, %v649_v31  ;;  %v673_v48 = vmul.f32 %v949_v41, %v650_v32 }
 0x168   : > { %v674_v52 = vmul.f32 %v949_v41, %v651_v33  ;;  %v675_v53 = vmul.f32 %v949_v41, %v652_v34  ;;  %v676_v54 = vmul.f32 %v949_v41, %v653_v35  ;;  %v677_v39 = vmul.f32 %v949_v41, %v654_v36 }
 0x169   : > { %v678_v56 = vmul.f32 %v949_v41, %v655_v37  ;;  %v679_v57 = vmul.f32 %v949_v41, %v656_v38  ;;  %v680_v58 = vmul.f32 %v949_v41, %v657_v40  ;;  %v681_v59 = vmul.f32 %v949_v41, %v658_v42 }
 0x16a   : > { %v1368_v60 = vld [vmem:[#allocation6] ss:$0 sm:$0xff]  ;;  %v682_v44 = vmul.f32 %v949_v41, %v659_v43  ;;  %v683_v61 = vmul.f32 %v949_v41, %v660_v49  ;;  %v684_v63 = vmul.f32 %v949_v41, %v661_v50  ;;  %v1370_v0 = vmul.f32 %v949_v41, %v662_v51 }
 0x16b   : > { %v693_v1 = vadd.f32 %v1368_v60, %v670_v45  ;;  %v694_v2 = vadd.f32 %v1368_v60, %v671_v46  ;;  %v695_v3 = vadd.f32 %v1368_v60, %v672_v47  ;;  %v696_v55 = vadd.f32 %v1368_v60, %v673_v48 }
 0x16c   : > { %v697_v4 = vadd.f32 %v1368_v60, %v674_v52  ;;  %v698_v62 = vadd.f32 %v1368_v60, %v675_v53  ;;  %v699_v5 = vadd.f32 %v1368_v60, %v676_v54  ;;  %v700_v6 = vadd.f32 %v1368_v60, %v677_v39 }
 0x16d   : > { %vm709_vm0 = vcmp.gt.f32.partialorder %v693_v1, 0.0  ;;  %vm710_vm1 = vcmp.gt.f32.partialorder %v694_v2, 0.0  ;;  %v725_v7 = vmul.f32 0.2, %v693_v1  ;;  %v726_v8 = vmul.f32 0.2, %v694_v2 }
 0x16e   : > { %vm711_vm2 = vcmp.gt.f32.partialorder %v695_v3, 0.0  ;;  %vm712_vm3 = vcmp.gt.f32.partialorder %v696_v55, 0.0  ;;  %v727_v9 = vmul.f32 0.2, %v695_v3  ;;  %v728_v10 = vmul.f32 0.2, %v696_v55 }
 0x16f   : > { %v741_v11 = vsel %vm709_vm0, %v693_v1, %v725_v7  ;;  %v742_v12 = vsel %vm710_vm1, %v694_v2, %v726_v8  ;;  %vm713_vm4 = vcmp.gt.f32.partialorder %v697_v4, 0.0  ;;  %vm714_vm5 = vcmp.gt.f32.partialorder %v698_v62, 0.0 }
 0x170   : > { %v990_v13 = vpack.c.bf16 %v742_v12, %v741_v11  ;;  %v743_v14 = vsel %vm711_vm2, %v695_v3, %v727_v9  ;;  %v744_v15 = vsel %vm712_vm3, %v696_v55, %v728_v10  ;;  %v729_v16 = vmul.f32 0.2, %v697_v4 }
 0x171   : > { %v995_v17 = vpack.c.bf16 %v744_v15, %v743_v14  ;;  %v730_v18 = vmul.f32 0.2, %v698_v62  ;;  %vm715_vm6 = vcmp.gt.f32.partialorder %v699_v5, 0.0  ;;  %vm716_vm7 = vcmp.gt.f32.partialorder %v700_v6, 0.0 }
 0x172   : > { %991 = vst [vmem:[%s1425_s3] sm:$0xff] %v990_v13   ;;  %v745_v19 = vsel %vm713_vm4, %v697_v4, %v729_v16  ;;  %v731_v20 = vmul.f32 0.2, %v699_v5  ;;  %v732_v21 = vmul.f32 0.2, %v700_v6  ;;  %v701_v22 = vadd.f32 %v1368_v60, %v678_v56 }
 0x173   : > { %1027 = vst [vmem:[%s1425_s3 + $0x8] sm:$0xff] %v995_v17   ;;  %v746_v23 = vsel %vm714_vm5, %v698_v62, %v730_v18  ;;  %v702_v24 = vadd.f32 %v1368_v60, %v679_v57  ;;  %v703_v25 = vadd.f32 %v1368_v60, %v680_v58  ;;  %v704_v26 = vadd.f32 %v1368_v60, %v681_v59 }
 0x174   : > { %v1000_v27 = vpack.c.bf16 %v746_v23, %v745_v19  ;;  %v747_v28 = vsel %vm715_vm6, %v699_v5, %v731_v20  ;;  %v748_v29 = vsel %vm716_vm7, %v700_v6, %v732_v21  ;;  %vm717_vm8 = vcmp.gt.f32.partialorder %v701_v22, 0.0 }
 0x175   : > { %v1005_v30 = vpack.c.bf16 %v748_v29, %v747_v28  ;;  %vm718_vm9 = vcmp.gt.f32.partialorder %v702_v24, 0.0  ;;  %v733_v31 = vmul.f32 0.2, %v701_v22  ;;  %v734_v32 = vmul.f32 0.2, %v702_v24 }
 0x176   : > { %1028 = vst [vmem:[%s1425_s3 + $0x10] sm:$0xff] %v1000_v27   ;;  %vm719_vm10 = vcmp.gt.f32.partialorder %v703_v25, 0.0  ;;  %vm720_vm11 = vcmp.gt.f32.partialorder %v704_v26, 0.0  ;;  %v735_v33 = vmul.f32 0.2, %v703_v25  ;;  %v705_v37 = vadd.f32 %v1368_v60, %v682_v44 }
 0x177   : > { %v736_v34 = vmul.f32 0.2, %v704_v26  ;;  %1029 = vst [vmem:[%s1425_s3 + $0x18] sm:$0xff] %v1005_v30   ;;  %v749_v35 = vsel %vm717_vm8, %v701_v22, %v733_v31  ;;  %v750_v36 = vsel %vm718_vm9, %v702_v24, %v734_v32  ;;  %v706_v38 = vadd.f32 %v1368_v60, %v683_v61 }
 0x178   : > { %v1010_v40 = vpack.c.bf16 %v750_v36, %v749_v35  ;;  %v751_v41 = vsel %vm719_vm10, %v703_v25, %v735_v33  ;;  %v707_v43 = vadd.f32 %v1368_v60, %v684_v63  ;;  %vm721_vm12 = vcmp.gt.f32.partialorder %v705_v37, 0.0 }
 0x179   : > { %v752_v42 = vsel %vm720_vm11, %v704_v26, %v736_v34  ;;  %vm722_vm13 = vcmp.gt.f32.partialorder %v706_v38, 0.0  ;;  %v737_v46 = vmul.f32 0.2, %v705_v37  ;;  %v738_v47 = vmul.f32 0.2, %v706_v38 }
 0x17a   : > { %v1015_v45 = vpack.c.bf16 %v752_v42, %v751_v41  ;;  %1030 = vst [vmem:[%s1425_s3 + $0x20] sm:$0xff] %v1010_v40   ;;  %v708_v48 = vadd.f32 %v1368_v60, %v1370_v0  ;;  %vm723_vm14 = vcmp.gt.f32.partialorder %v707_v43, 0.0  ;;  %v739_v49 = vmul.f32 0.2, %v707_v43 }
 0x17b   : > { %v753_v50 = vsel %vm721_vm12, %v705_v37, %v737_v46  ;;  %v754_v51 = vsel %vm722_vm13, %v706_v38, %v738_v47 }
 0x17c   : > { %1031 = vst [vmem:[%s1425_s3 + $0x28] sm:$0xff] %v1015_v45   ;;  %vm724_vm15 = vcmp.gt.f32.partialorder %v708_v48, 0.0  ;;  %v740_v52 = vmul.f32 0.2, %v708_v48  ;;  %v755_v53 = vsel %vm723_vm14, %v707_v43, %v739_v49  ;;  %v1020_v54 = vpack.c.bf16 %v754_v51, %v753_v50 }
 0x17e   : > { %v756_v39 = vsel %vm724_vm15, %v708_v48, %v740_v52  ;;  %1032 = vst [vmem:[%s1425_s3 + $0x30] sm:$0xff] %v1020_v54  }
 0x17f   : > { %v1025_v56 = vpack.c.bf16 %v756_v39, %v755_v53 }
 0x181   : > { %1033 = vst [vmem:[%s1425_s3 + $0x38] sm:$0xff] %v1025_v56  }
 0x182 PF: > { %s13_s14 = sadd.s32 1, %s1203_s14   ;;  %s1426_s12 = smov %s1199_s13 }
 0x183   : > { %p10_p6 = scmp.ge.s32.totalorder %s13_s14, 4   ;;  %s1427_s13 = smov %s1429_s15 }
 0x185   :  { %12 = sbr.rel (!%p10_p6) target bundleno = 2 (0x2), region = 80 }

// kernel: forward.8
= control target key start
LH: loop header
LB: loop body
LE: loop exit
PB: predicated region body
PF: predicated region fallthrough
CT: control target
= control target key end

     0   :  { %s1055_s12 = smov 0   ;;  %s1057_s13 = smov 0   ;;  %s1218_s0 = inlined_call_operand.vmem [shape: bf16[32,512], index: 0, kind: input, shape index: {}]   ;;  %s1219_s1 = inlined_call_operand.vmem [shape: bf16[512,128], index: 1, kind: input, shape index: {}]   ;;  %s1220_s2 = inlined_call_operand.vmem [shape: f32[2,128], index: 2, kind: input, shape index: {}]   ;;  %s1221_s3 = inlined_call_operand.vmem [shape: bf16[32,128], index: 3, kind: output, shape index: {}]  }
   0x1   :  { %s1059_s14 = smov 0  }
   0x2 LB: > { %s25_s15 = sadd.s32 1, %s1028_s13  ;;  %p815_p0 = scmp.ge.s32.totalorder %s1032_s14, 1  ;;  %s1032_s14 = sphi %s1059_s14, %s13_s14   ;;  %s1028_s13 = sphi %s1057_s13, %s1223_s13   ;;  %s1024_s12 = sphi %s1055_s12, %s1222_s12  }
   0x3   : > { %p27_p1 = scmp.ge.s32.totalorder %s25_s15, 2  ;;  %p161_p2 = scmp.lt.s32.totalorder %s1032_s14, 3 }
   0x5   : > { %s1225_s15 = smov (%p27_p1, %s25_s15), 0  ;;  %p162_p3 = pnand %p815_p0, %p161_p2 }
   0x6   : > { %p816_p4 = scmp.ne.s32.totalorder (!%p162_p3), %s1024_s12, 0 }
   0x7   : > { %165 = sbr.rel (%p162_p3) target bundleno = 344 (0x158), region = 32 }
   0xe   : > { %213 = sbr.rel (%p816_p4) target bundleno = 295 (0x127), region = 36  ;;  %v964_v0 = vld [vmem:[%s1219_s1 + $0x40] sm:$0xff] (!%p816_p4)   ;;  %v968_v4 = vld [vmem:[%s1219_s1 + $0x48] sm:$0xff] (!%p816_p4)   ;;  %v972_v8 = vld [vmem:[%s1219_s1 + $0x50] sm:$0xff] (!%p816_p4)   ;;  %v1034_v40 = vmov (!%p816_p4), 0.0  }
   0xf   : > { %v965_v1 = vld [vmem:[%s1219_s1 + $0xc0] sm:$0xff] (!%p816_p4)   ;;  %883 = vmatprep.subr.bf16.mxu0 (!%p816_p4), %v964_v0  ;;  %v969_v5 = vld [vmem:[%s1219_s1 + $0xc8] sm:$0xff] (!%p816_p4)   ;;  %v973_v9 = vld [vmem:[%s1219_s1 + $0xd0] sm:$0xff] (!%p816_p4)   ;;  %218 = vst [vmem:[#allocation3] sm:$0x1] (!%p816_p4), %v1034_v40 }
  0x10   : > { %v966_v2 = vld [vmem:[%s1219_s1] sm:$0xff] (!%p816_p4)   ;;  %911 = vmatprep.subr.bf16.mxu1 (!%p816_p4), %v965_v1  ;;  %v970_v6 = vld [vmem:[%s1219_s1 + $0x8] sm:$0xff] (!%p816_p4)   ;;  %v974_v10 = vld [vmem:[%s1219_s1 + $0x10] sm:$0xff] (!%p816_p4)   ;;  %219 = vst [vmem:[#allocation4] sm:$0x1] (!%p816_p4), %v1034_v40 }
  0x11   : > { %v967_v3 = vld [vmem:[%s1219_s1 + $0x80] sm:$0xff] (!%p816_p4)   ;;  %884 = vmatpush3.bf16.msra.mxu0 (!%p816_p4), %v966_v2  ;;  %v971_v7 = vld [vmem:[%s1219_s1 + $0x88] sm:$0xff] (!%p816_p4)   ;;  %v975_v11 = vld [vmem:[%s1219_s1 + $0x90] sm:$0xff] (!%p816_p4)  }
  0x12   : > { %912 = vmatpush3.bf16.msra.mxu1 (!%p816_p4), %v967_v3  ;;  %885 = vmatprep.subr.bf16.mxu0 (!%p816_p4), %v968_v4  ;;  %v976_v12 = vld [vmem:[%s1219_s1 + $0x58] sm:$0xff] (!%p816_p4)   ;;  %v980_v16 = vld [vmem:[%s1219_s1 + $0x60] sm:$0xff] (!%p816_p4)   ;;  %v984_v20 = vld [vmem:[%s1219_s1 + $0x68] sm:$0xff] (!%p816_p4)  }
  0x13   : > { %913 = vmatprep.subr.bf16.mxu1 (!%p816_p4), %v969_v5  ;;  %v977_v13 = vld [vmem:[%s1219_s1 + $0xd8] sm:$0xff] (!%p816_p4)   ;;  %v981_v17 = vld [vmem:[%s1219_s1 + $0xe0] sm:$0xff] (!%p816_p4)   ;;  %v985_v21 = vld [vmem:[%s1219_s1 + $0xe8] sm:$0xff] (!%p816_p4)  }
  0x14   : > { %v978_v14 = vld [vmem:[%s1219_s1 + $0x18] sm:$0xff] (!%p816_p4)   ;;  %v982_v18 = vld [vmem:[%s1219_s1 + $0x20] sm:$0xff] (!%p816_p4)   ;;  %v986_v22 = vld [vmem:[%s1219_s1 + $0x28] sm:$0xff] (!%p816_p4)  }
  0x15   : > { %886 = vmatpush3.bf16.msra.mxu0 %v970_v6  ;;  %v979_v15 = vld [vmem:[%s1219_s1 + $0x98] sm:$0xff]   ;;  %v983_v19 = vld [vmem:[%s1219_s1 + $0xa0] sm:$0xff]   ;;  %v987_v23 = vld [vmem:[%s1219_s1 + $0xa8] sm:$0xff]  }
  0x16   : > { %914 = vmatpush3.bf16.msra.mxu1 %v971_v7  ;;  %887 = vmatprep.subr.bf16.mxu0 %v972_v8  ;;  %v988_v24 = vld [vmem:[%s1219_s1 + $0x70] sm:$0xff]   ;;  %v992_v28 = vld [vmem:[%s1219_s1 + $0x78] sm:$0xff]  }
  0x17   : > { %915 = vmatprep.subr.bf16.mxu1 %v973_v9  ;;  %v989_v25 = vld [vmem:[%s1219_s1 + $0xf0] sm:$0xff]   ;;  %v993_v29 = vld [vmem:[%s1219_s1 + $0xf8] sm:$0xff]  }
  0x18   : > { %v990_v26 = vld [vmem:[%s1219_s1 + $0x30] sm:$0xff]   ;;  %v994_v30 = vld [vmem:[%s1219_s1 + $0x38] sm:$0xff]  }
  0x19   : > { %888 = vmatpush3.bf16.msra.mxu0 %v974_v10  ;;  %v991_v27 = vld [vmem:[%s1219_s1 + $0xb0] sm:$0xff]   ;;  %v995_v31 = vld [vmem:[%s1219_s1 + $0xb8] sm:$0xff]  }
  0x1a   : > { %916 = vmatpush3.bf16.msra.mxu1 %v975_v11  ;;  %889 = vmatprep.subr.bf16.mxu0 %v976_v12  ;;  %v996_v32 = vld [vmem:[%s1218_s0] ss:$16 sps:$4 sm:$0xff]   ;;  %v998_v33 = vld [vmem:[%s1218_s0 + $0x4] ss:$16 sps:$4 sm:$0xff]   ;;  %v999_v34 = vld [vmem:[%s1218_s0 + $0x8] ss:$16 sps:$4 sm:$0xff]  }
  0x1b   : > { %917 = vmatprep.subr.bf16.mxu1 %v977_v13  ;;  %v1001_v35 = vld [vmem:[%s1218_s0 + $0xc] ss:$16 sps:$4 sm:$0xff]   ;;  %556 = vmatprep.mubr.bf16.mxu0 %v998_v33  ;;  %v1002_v36 = vld [vmem:[%s1218_s0 + $0x24] ss:$16 sps:$4 sm:$0xff]   ;;  %v1006_v38 = vld [vmem:[%s1218_s0 + $0x20] ss:$16 sps:$4 sm:$0xff]  }
  0x1c   : > { %605 = vmatprep.mubr.bf16.mxu1 %v1001_v35  ;;  %v1004_v37 = vld [vmem:[%s1218_s0 + $0x2c] ss:$16 sps:$4 sm:$0xff]   ;;  %v1007_v39 = vld [vmem:[%s1218_s0 + $0x28] ss:$16 sps:$4 sm:$0xff]  }
  0x1d   : > { %890 = vmatpush3.bf16.msra.mxu0 %v978_v14 }
  0x1e   : > { %918 = vmatpush3.bf16.msra.mxu1 %v979_v15  ;;  %891 = vmatprep.subr.bf16.mxu0 %v980_v16 }
  0x1f   : > { %919 = vmatprep.subr.bf16.mxu1 %v981_v17 }
  0x21   : > { %892 = vmatpush3.bf16.msra.mxu0 %v982_v18 }
  0x22   : > { %920 = vmatpush3.bf16.msra.mxu1 %v983_v19  ;;  %893 = vmatprep.subr.bf16.mxu0 %v984_v20 }
  0x23   : > { %921 = vmatprep.subr.bf16.mxu1 %v985_v21 }
  0x25   : > { %894 = vmatpush3.bf16.msra.mxu0 %v986_v22 }
  0x26   : > { %922 = vmatpush3.bf16.msra.mxu1 %v987_v23  ;;  %895 = vmatprep.subr.bf16.mxu0 %v988_v24  ;;  %v627_v24 = vld [vmem:[#allocation3] sm:$0x1] }
  0x27   : > { %923 = vmatprep.subr.bf16.mxu1 %v989_v25 }
  0x29   : > { %896 = vmatpush3.bf16.msra.mxu0 %v990_v26 }
  0x2a   : > { %924 = vmatpush3.bf16.msra.mxu1 %v991_v27  ;;  %897 = vmatprep.subr.bf16.mxu0 %v992_v28  ;;  %v639_v27 = vld [vmem:[#allocation4] sm:$0x1] }
  0x2b   : > { %925 = vmatprep.subr.bf16.mxu1 %v993_v29 }
  0x2d   : > { %898 = vmatpush3.bf16.msra.mxu0 %v994_v30 }
  0x2e   : > { %926 = vmatpush3.bf16.msra.mxu1 %v995_v31 }
  0x30   : > { %557 = vmatmul.mubr.bf16.vlgmr.msra.gmra.mrb[0].mxu0 %v996_v32 }
  0x31   : > { %606 = vmatmul.mubr.bf16.vlgmr.msra.gmra.mrb[0].mxu1 %v999_v34  ;;  %564 = vmatprep.mubr.bf16.mxu0 %v1002_v36 }
  0x32   : > { %613 = vmatprep.mubr.bf16.mxu1 %v1004_v37 }
  0x38   : > { %565 = vmatmul.mubr.bf16.gmra.mrb[4].mxu0 %v1006_v38 }
  0x39   : > { %614 = vmatmul.mubr.bf16.gmra.mrb[4].mxu1 %v1007_v39 }
 0x103   : > { %v899_v41 = vpop.f32.mrb[0].mxu0 }
 0x104   : > { %v927_v42 = vpop.f32.mrb[0].mxu1  ;;  %v900_v43 = vpop.f32.mrb[1].mxu0 }
 0x105   : > { %v901_v44 = vadd.f32 %v900_v43, %v899_v41  ;;  %v928_v45 = vpop.f32.mrb[1].mxu1  ;;  %v902_v46 = vpop.f32.mrb[2].mxu0 }
 0x106   : > { %v929_v47 = vadd.f32 %v928_v45, %v927_v42  ;;  %v930_v48 = vpop.f32.mrb[2].mxu1  ;;  %v903_v49 = vpop.f32.mrb[3].mxu0 }
 0x107   : > { %v904_v50 = vadd.f32 %v903_v49, %v902_v46  ;;  %v931_v51 = vpop.f32.mrb[3].mxu1 }
 0x108   : > { %v608_v52 = vadd.f32 %v929_v47, %v901_v44  ;;  %v932_v53 = vadd.f32 %v931_v51, %v930_v48 }
 0x10a   : > { %623 = vst [vmem:[#allocation2] sm:$0xff] %v608_v52  ;;  %v611_v54 = vadd.f32 %v932_v53, %v904_v50  ;;  %v640_v56 = vmul.f32 %v608_v52, %v608_v52 }
 0x10b   : > { %v905_v55 = vpop.f32.mrb[4].mxu0 }
 0x10c   : > { %624 = vst [vmem:[#allocation2 + $0x8] sm:$0xff] %v611_v54  ;;  %v628_v57 = vadd.f32 %v611_v54, %v608_v52  ;;  %v641_v58 = vmul.f32 %v611_v54, %v611_v54  ;;  %v933_v59 = vpop.f32.mrb[4].mxu1  ;;  %v906_v60 = vpop.f32.mrb[5].mxu0 }
 0x10d   : > { %v907_v61 = vadd.f32 %v906_v60, %v905_v55  ;;  %v934_v62 = vpop.f32.mrb[5].mxu1  ;;  %v908_v63 = vpop.f32.mrb[6].mxu0 }
 0x10e   : > { %v644_v0 = vadd.f32 %v641_v58, %v640_v56  ;;  %v935_v1 = vadd.f32 %v934_v62, %v933_v59  ;;  %v936_v2 = vpop.f32.mrb[6].mxu1  ;;  %v909_v3 = vpop.f32.mrb[7].mxu0 }
 0x10f   : > { %v910_v4 = vadd.f32 %v909_v3, %v908_v63  ;;  %v937_v5 = vpop.f32.mrb[7].mxu1 }
 0x110   : > { %v616_v6 = vadd.f32 %v935_v1, %v907_v61  ;;  %v938_v7 = vadd.f32 %v937_v5, %v936_v2 }
 0x112   : > { %625 = vst [vmem:[#allocation2 + $0x10] sm:$0xff] %v616_v6  ;;  %v629_v8 = vadd.f32 %v628_v57, %v616_v6  ;;  %v642_v9 = vmul.f32 %v616_v6, %v616_v6  ;;  %v619_v10 = vadd.f32 %v938_v7, %v910_v4 }
 0x114   : > { %v645_v11 = vadd.f32 %v644_v0, %v642_v9  ;;  %626 = vst [vmem:[#allocation2 + $0x18] sm:$0xff] %v619_v10  ;;  %v630_v12 = vadd.f32 %v629_v8, %v619_v10  ;;  %v643_v13 = vmul.f32 %v619_v10, %v619_v10 }
 0x116   : > { %v631_v14 = vrot.slane %v630_v12, 4  ;;  %v646_v15 = vadd.f32 %v645_v11, %v643_v13 }
 0x118   : > { %v632_v16 = vadd.f32 %v631_v14, %v630_v12  ;;  %v647_v17 = vrot.slane %v646_v15, 4 }
 0x11a   : > { %v633_v18 = vrot.slane %v632_v16, 2  ;;  %v648_v19 = vadd.f32 %v647_v17, %v646_v15 }
 0x11c   : > { %v634_v20 = vadd.f32 %v633_v18, %v632_v16  ;;  %v649_v21 = vrot.slane %v648_v19, 2 }
 0x11e   : > { %v635_v22 = vrot.slane %v634_v20, 1  ;;  %v650_v23 = vadd.f32 %v649_v21, %v648_v19 }
 0x120   : > { %v636_v25 = vadd.f32 %v635_v22, %v634_v20  ;;  %v651_v26 = vrot.slane %v650_v23, 1 }
 0x122   : > { %v637_v28 = vadd.f32 %v636_v25, %v627_v24  ;;  %v652_v29 = vadd.f32 %v651_v26, %v650_v23 }
 0x124   : > { %638 = vst [vmem:[#allocation3] sm:$0x1] %v637_v28  ;;  %v653_v30 = vadd.f32 %v652_v29, %v639_v27 }
 0x126   : > { %654 = vst [vmem:[#allocation4] sm:$0x1] %v653_v30 }
 0x127 PF: > { %p857_p5 = scmp.ne.s32.totalorder %s1024_s12, 1 }
 0x128   : > { %v670_v39 = vld [vmem:[%s1220_s2] sm:$0x1] (!%p857_p5)  ;;  %v675_v42 = vld [vmem:[%s1220_s2 + $0x1] sm:$0x1] (!%p857_p5)  ;;  %v681_v46 = vld [vmem:[#allocation2 + $0x8] sm:$0xff] (!%p857_p5) }
 0x129   : > { %658 = sbr.rel (%p857_p5) target bundleno = 344 (0x158), region = 44  ;;  %v680_v45 = vld [vmem:[#allocation2] sm:$0xff] (!%p857_p5)  ;;  %v682_v47 = vld [vmem:[#allocation2 + $0x10] sm:$0xff] (!%p857_p5)  ;;  %v683_v48 = vld [vmem:[#allocation2 + $0x18] sm:$0xff] (!%p857_p5) }
 0x12b   : > { %v663_v31 = vld [vmem:[#allocation3] sm:$0x1] (!%p857_p5) }
 0x12c   : > { %v664_v33 = vmul.f32 (!%p857_p5), 0.03125, %v663_v31 }
 0x12d   : > { %v665_v32 = vld [vmem:[#allocation4] sm:$0x1] (!%p857_p5) }
 0x12e   : > { %v666_v34 = vmul.f32 (!%p857_p5), 0.03125, %v665_v32  ;;  %v667_v35 = vmul.f32 (!%p857_p5), %v664_v33, %v664_v33 }
 0x130   : > { %v668_v36 = vsub.f32 %v666_v34, %v667_v35 }
 0x132   : > { %v669_v37 = vmax.f32 %v668_v36, 0.0 }
 0x134   : > { %v671_v38 = vadd.f32 1e-05, %v669_v37 }
 0x136   : > { %1008 = vrsqrt.f32 %v671_v38 }
 0x140   : > { %v1009_v40 = vpop.eup %1008 }
 0x141   : > { %v673_v41 = vmul.f32 %v1009_v40, %v670_v39 }
 0x143   : > { %674 = vst [vmem:[#allocation5] sm:$0x1] %v673_v41  ;;  %v676_v43 = vmul.f32 %v673_v41, %v664_v33 }
 0x145   : > { %v677_v44 = vsub.f32 %v675_v42, %v676_v43 }
 0x147   : > { %678 = vst [vmem:[#allocation6] sm:$0x1] %v677_v44 }
 0x14a   : > { %v858_v49 = vld [vmem:[#allocation5] ss:$0 sm:$0xff] }
 0x14b   : > { %v691_v50 = vmul.f32 %v858_v49, %v680_v45  ;;  %v692_v51 = vmul.f32 %v858_v49, %v681_v46  ;;  %v693_v52 = vmul.f32 %v858_v49, %v682_v47  ;;  %v694_v53 = vmul.f32 %v858_v49, %v683_v48 }
 0x14e   : > { %v859_v54 = vld [vmem:[#allocation6] ss:$0 sm:$0xff] }
 0x14f   : > { %v702_v55 = vadd.f32 %v859_v54, %v691_v50  ;;  %v703_v56 = vadd.f32 %v859_v54, %v692_v51  ;;  %v704_v57 = vadd.f32 %v859_v54, %v693_v52  ;;  %v705_v58 = vadd.f32 %v859_v54, %v694_v53 }
 0x151   : > { %vm706_vm0 = vcmp.gt.f32.partialorder %v702_v55, 0.0  ;;  %vm707_vm1 = vcmp.gt.f32.partialorder %v703_v56, 0.0  ;;  %v710_v59 = vmul.f32 0.2, %v702_v55  ;;  %v711_v60 = vmul.f32 0.2, %v703_v56 }
 0x152   : > { %vm708_vm2 = vcmp.gt.f32.partialorder %v704_v57, 0.0  ;;  %vm709_vm3 = vcmp.gt.f32.partialorder %v705_v58, 0.0  ;;  %v712_v61 = vmul.f32 0.2, %v704_v57  ;;  %v713_v62 = vmul.f32 0.2, %v705_v58 }
 0x153   : > { %v714_v63 = vsel %vm706_vm0, %v702_v55, %v710_v59  ;;  %v715_v0 = vsel %vm707_vm1, %v703_v56, %v711_v60 }
 0x154   : > { %v875_v1 = vpack.c.bf16 %v715_v0, %v714_v63  ;;  %v716_v2 = vsel %vm708_vm2, %v704_v57, %v712_v61  ;;  %v717_v3 = vsel %vm709_vm3, %v705_v58, %v713_v62 }
 0x155   : > { %v880_v4 = vpack.c.bf16 %v717_v3, %v716_v2 }
 0x156   : > { %876 = vst [vmem:[%s1221_s3] sm:$0xff] %v875_v1  }
 0x157   : > { %882 = vst [vmem:[%s1221_s3 + $0x8] sm:$0xff] %v880_v4  }
 0x158 PF: > { %s13_s14 = sadd.s32 1, %s1032_s14   ;;  %s1222_s12 = smov %s1028_s13 }
 0x159   : > { %p10_p6 = scmp.ge.s32.totalorder %s13_s14, 4   ;;  %s1223_s13 = smov %s1225_s15 }
 0x15b   :  { %12 = sbr.rel (!%p10_p6) target bundleno = 2 (0x2), region = 80 }

// kernel: forward.9
= control target key start
LH: loop header
LB: loop body
LE: loop exit
PB: predicated region body
PF: predicated region fallthrough
CT: control target
= control target key end

     0   :  { %s1189_s1 = inlined_call_operand.vmem [shape: bf16[1024,128], index: 1, kind: input, shape index: {}]   ;;  %s1190_s0 = inlined_call_operand.vmem [shape: bf16[8,1024], index: 0, kind: input, shape index: {}]   ;;  %s1191_s2 = inlined_call_operand.vmem [shape: f32[8,128], index: 2, kind: output, shape index: {}]  }
   0x1   :  { %v891_v0 = vld [vmem:[%s1189_s1 + $0x40] sm:$0xff]   ;;  %v895_v4 = vld [vmem:[%s1189_s1 + $0x48] sm:$0xff]   ;;  %v899_v8 = vld [vmem:[%s1189_s1 + $0x50] sm:$0xff]  }
   0x2   :  { %v892_v1 = vld [vmem:[%s1189_s1 + $0xc0] sm:$0xff]   ;;  %803 = vmatprep.subr.bf16.mxu0 %v891_v0  ;;  %v896_v5 = vld [vmem:[%s1189_s1 + $0xc8] sm:$0xff]   ;;  %v900_v9 = vld [vmem:[%s1189_s1 + $0xd0] sm:$0xff]  }
   0x3   :  { %v893_v2 = vld [vmem:[%s1189_s1] sm:$0xff]   ;;  %825 = vmatprep.subr.bf16.mxu1 %v892_v1  ;;  %v897_v6 = vld [vmem:[%s1189_s1 + $0x8] sm:$0xff]   ;;  %v901_v10 = vld [vmem:[%s1189_s1 + $0x10] sm:$0xff]  }
   0x4   :  { %v894_v3 = vld [vmem:[%s1189_s1 + $0x80] sm:$0xff]   ;;  %804 = vmatpush3.bf16.msra.mxu0 %v893_v2  ;;  %v898_v7 = vld [vmem:[%s1189_s1 + $0x88] sm:$0xff]   ;;  %v902_v11 = vld [vmem:[%s1189_s1 + $0x90] sm:$0xff]  }
   0x5   :  { %826 = vmatpush3.bf16.msra.mxu1 %v894_v3  ;;  %805 = vmatprep.subr.bf16.mxu0 %v895_v4  ;;  %v903_v12 = vld [vmem:[%s1189_s1 + $0x58] sm:$0xff]   ;;  %v907_v16 = vld [vmem:[%s1189_s1 + $0x60] sm:$0xff]   ;;  %v911_v20 = vld [vmem:[%s1189_s1 + $0x68] sm:$0xff]  }
   0x6   :  { %827 = vmatprep.subr.bf16.mxu1 %v896_v5  ;;  %v904_v13 = vld [vmem:[%s1189_s1 + $0xd8] sm:$0xff]   ;;  %v908_v17 = vld [vmem:[%s1189_s1 + $0xe0] sm:$0xff]   ;;  %v912_v21 = vld [vmem:[%s1189_s1 + $0xe8] sm:$0xff]  }
   0x7   :  { %v905_v14 = vld [vmem:[%s1189_s1 + $0x18] sm:$0xff]   ;;  %v909_v18 = vld [vmem:[%s1189_s1 + $0x20] sm:$0xff]   ;;  %v913_v22 = vld [vmem:[%s1189_s1 + $0x28] sm:$0xff]  }
   0x8   :  { %806 = vmatpush3.bf16.msra.mxu0 %v897_v6  ;;  %v906_v15 = vld [vmem:[%s1189_s1 + $0x98] sm:$0xff]   ;;  %v910_v19 = vld [vmem:[%s1189_s1 + $0xa0] sm:$0xff]   ;;  %v914_v23 = vld [vmem:[%s1189_s1 + $0xa8] sm:$0xff]  }
   0x9   :  { %828 = vmatpush3.bf16.msra.mxu1 %v898_v7  ;;  %807 = vmatprep.subr.bf16.mxu0 %v899_v8  ;;  %v915_v24 = vld [vmem:[%s1189_s1 + $0x70] sm:$0xff]   ;;  %v919_v28 = vld [vmem:[%s1189_s1 + $0x78] sm:$0xff]   ;;  %v12_v32 = vld [vmem:[%s1190_s0] sm:$0xff] }
   0xa   :  { %829 = vmatprep.subr.bf16.mxu1 %v900_v9  ;;  %v916_v25 = vld [vmem:[%s1189_s1 + $0xf0] sm:$0xff]   ;;  %v920_v29 = vld [vmem:[%s1189_s1 + $0xf8] sm:$0xff]   ;;  %v13_v33 = vld [vmem:[%s1190_s0 + $0x8] sm:$0xff]  ;;  %v731_v34 = vcombine.low %v12_v32, %v12_v32  ;;  %v732_v35 = vcombine.high %v12_v32, %v12_v32 }
   0xb   :  { %v917_v26 = vld [vmem:[%s1189_s1 + $0x30] sm:$0xff]   ;;  %v921_v30 = vld [vmem:[%s1189_s1 + $0x38] sm:$0xff]   ;;  %v733_v36 = vcombine.low %v13_v33, %v13_v33  ;;  %v734_v37 = vcombine.high %v13_v33, %v13_v33  ;;  %v927_v38 = vld [vmem:[%s1189_s1 + $0x140] sm:$0xff]  }
   0xc   :  { %808 = vmatpush3.bf16.msra.mxu0 %v901_v10  ;;  %v918_v27 = vld [vmem:[%s1189_s1 + $0xb0] sm:$0xff]   ;;  %v922_v31 = vld [vmem:[%s1189_s1 + $0xb8] sm:$0xff]   ;;  %v928_v39 = vld [vmem:[%s1189_s1 + $0x1c0] sm:$0xff]   ;;  %588 = vmatprep.mubr.bf16.mxu0 %v732_v35 }
   0xd   :  { %830 = vmatpush3.bf16.msra.mxu1 %v902_v11  ;;  %809 = vmatprep.subr.bf16.mxu0 %v903_v12  ;;  %v929_v40 = vld [vmem:[%s1189_s1 + $0x100] sm:$0xff]   ;;  %v931_v42 = vld [vmem:[%s1189_s1 + $0x148] sm:$0xff]   ;;  %v935_v46 = vld [vmem:[%s1189_s1 + $0x150] sm:$0xff]  }
   0xe   :  { %831 = vmatprep.subr.bf16.mxu1 %v904_v13  ;;  %628 = vmatprep.mubr.bf16.mxu1 %v734_v37  ;;  %v930_v41 = vld [vmem:[%s1189_s1 + $0x180] sm:$0xff]   ;;  %v932_v43 = vld [vmem:[%s1189_s1 + $0x1c8] sm:$0xff]   ;;  %v936_v47 = vld [vmem:[%s1189_s1 + $0x1d0] sm:$0xff]  }
   0xf   :  { %v933_v44 = vld [vmem:[%s1189_s1 + $0x108] sm:$0xff]   ;;  %v937_v48 = vld [vmem:[%s1189_s1 + $0x110] sm:$0xff]   ;;  %v939_v50 = vld [vmem:[%s1189_s1 + $0x158] sm:$0xff]  }
  0x10   :  { %810 = vmatpush3.bf16.msra.mxu0 %v905_v14  ;;  %v934_v45 = vld [vmem:[%s1189_s1 + $0x188] sm:$0xff]   ;;  %v938_v49 = vld [vmem:[%s1189_s1 + $0x190] sm:$0xff]   ;;  %v940_v51 = vld [vmem:[%s1189_s1 + $0x1d8] sm:$0xff]  }
  0x11   :  { %832 = vmatpush3.bf16.msra.mxu1 %v906_v15  ;;  %811 = vmatprep.subr.bf16.mxu0 %v907_v16  ;;  %v941_v52 = vld [vmem:[%s1189_s1 + $0x118] sm:$0xff]   ;;  %v943_v54 = vld [vmem:[%s1189_s1 + $0x160] sm:$0xff]   ;;  %v947_v58 = vld [vmem:[%s1189_s1 + $0x168] sm:$0xff]  }
  0x12   :  { %833 = vmatprep.subr.bf16.mxu1 %v908_v17  ;;  %v942_v53 = vld [vmem:[%s1189_s1 + $0x198] sm:$0xff]   ;;  %v944_v55 = vld [vmem:[%s1189_s1 + $0x1e0] sm:$0xff]   ;;  %v948_v59 = vld [vmem:[%s1189_s1 + $0x1e8] sm:$0xff]  }
  0x13   :  { %v945_v56 = vld [vmem:[%s1189_s1 + $0x120] sm:$0xff]   ;;  %v949_v60 = vld [vmem:[%s1189_s1 + $0x128] sm:$0xff]   ;;  %v951_v62 = vld [vmem:[%s1189_s1 + $0x170] sm:$0xff]  }
  0x14   :  { %812 = vmatpush3.bf16.msra.mxu0 %v909_v18  ;;  %v946_v57 = vld [vmem:[%s1189_s1 + $0x1a0] sm:$0xff]   ;;  %v950_v61 = vld [vmem:[%s1189_s1 + $0x1a8] sm:$0xff]   ;;  %v952_v63 = vld [vmem:[%s1189_s1 + $0x1f0] sm:$0xff]  }
  0x15   :  { %834 = vmatpush3.bf16.msra.mxu1 %v910_v19  ;;  %813 = vmatprep.subr.bf16.mxu0 %v911_v20  ;;  %v953_v0 = vld [vmem:[%s1189_s1 + $0x130] sm:$0xff]   ;;  %v955_v2 = vld [vmem:[%s1189_s1 + $0x178] sm:$0xff]  }
  0x16   :  { %835 = vmatprep.subr.bf16.mxu1 %v912_v21  ;;  %v954_v1 = vld [vmem:[%s1189_s1 + $0x1b0] sm:$0xff]   ;;  %v956_v3 = vld [vmem:[%s1189_s1 + $0x1f8] sm:$0xff]  }
  0x17   :  { %v957_v4 = vld [vmem:[%s1189_s1 + $0x138] sm:$0xff]   ;;  %v14_v6 = vld [vmem:[%s1190_s0 + $0x10] sm:$0xff] }
  0x18   :  { %814 = vmatpush3.bf16.msra.mxu0 %v913_v22  ;;  %v958_v5 = vld [vmem:[%s1189_s1 + $0x1b8] sm:$0xff]   ;;  %v735_v7 = vcombine.low %v14_v6, %v14_v6  ;;  %v736_v8 = vcombine.high %v14_v6, %v14_v6 }
  0x19   :  { %836 = vmatpush3.bf16.msra.mxu1 %v914_v23  ;;  %815 = vmatprep.subr.bf16.mxu0 %v915_v24  ;;  %v15_v9 = vld [vmem:[%s1190_s0 + $0x18] sm:$0xff] }
  0x1a   :  { %837 = vmatprep.subr.bf16.mxu1 %v916_v25  ;;  %v737_v10 = vcombine.low %v15_v9, %v15_v9  ;;  %v738_v11 = vcombine.high %v15_v9, %v15_v9 }
  0x1c   :  { %816 = vmatpush3.bf16.msra.mxu0 %v917_v26 }
  0x1d   :  { %838 = vmatpush3.bf16.msra.mxu1 %v918_v27  ;;  %817 = vmatprep.subr.bf16.mxu0 %v919_v28 }
  0x1e   :  { %839 = vmatprep.subr.bf16.mxu1 %v920_v29 }
  0x20   :  { %818 = vmatpush3.bf16.msra.mxu0 %v921_v30 }
  0x21   :  { %840 = vmatpush3.bf16.msra.mxu1 %v922_v31  ;;  %847 = vmatprep.subr.bf16.mxu0 %v927_v38 }
  0x22   :  { %869 = vmatprep.subr.bf16.mxu1 %v928_v39 }
  0x23   :  { %589 = vmatmul.mubr.bf16.vlgmr.msra.gmra.mrb[0].mxu0 %v731_v34 }
  0x24   :  { %629 = vmatmul.mubr.bf16.vlgmr.msra.gmra.mrb[0].mxu1 %v733_v36  ;;  %848 = vmatpush3.bf16.msra.mxu0 %v929_v40 }
  0x25   :  { %870 = vmatpush3.bf16.msra.mxu1 %v930_v41  ;;  %849 = vmatprep.subr.bf16.mxu0 %v931_v42 }
  0x26   :  { %871 = vmatprep.subr.bf16.mxu1 %v932_v43  ;;  %668 = vmatprep.mubr.bf16.mxu0 %v736_v8 }
  0x27   :  { %708 = vmatprep.mubr.bf16.mxu1 %v738_v11 }
  0x28   :  { %850 = vmatpush3.bf16.msra.mxu0 %v933_v44 }
  0x29   :  { %872 = vmatpush3.bf16.msra.mxu1 %v934_v45  ;;  %851 = vmatprep.subr.bf16.mxu0 %v935_v46 }
  0x2a   :  { %873 = vmatprep.subr.bf16.mxu1 %v936_v47 }
  0x2c   :  { %852 = vmatpush3.bf16.msra.mxu0 %v937_v48 }
  0x2d   :  { %874 = vmatpush3.bf16.msra.mxu1 %v938_v49  ;;  %853 = vmatprep.subr.bf16.mxu0 %v939_v50 }
  0x2e   :  { %875 = vmatprep.subr.bf16.mxu1 %v940_v51 }
  0x30   :  { %854 = vmatpush3.bf16.msra.mxu0 %v941_v52 }
  0x31   :  { %876 = vmatpush3.bf16.msra.mxu1 %v942_v53  ;;  %855 = vmatprep.subr.bf16.mxu0 %v943_v54 }
  0x32   :  { %877 = vmatprep.subr.bf16.mxu1 %v944_v55 }
  0x34   :  { %856 = vmatpush3.bf16.msra.mxu0 %v945_v56 }
  0x35   :  { %878 = vmatpush3.bf16.msra.mxu1 %v946_v57  ;;  %857 = vmatprep.subr.bf16.mxu0 %v947_v58 }
  0x36   :  { %879 = vmatprep.subr.bf16.mxu1 %v948_v59 }
  0x38   :  { %858 = vmatpush3.bf16.msra.mxu0 %v949_v60 }
  0x39   :  { %880 = vmatpush3.bf16.msra.mxu1 %v950_v61  ;;  %859 = vmatprep.subr.bf16.mxu0 %v951_v62 }
  0x3a   :  { %881 = vmatprep.subr.bf16.mxu1 %v952_v63 }
  0x3c   :  { %860 = vmatpush3.bf16.msra.mxu0 %v953_v0 }
  0x3d   :  { %882 = vmatpush3.bf16.msra.mxu1 %v954_v1  ;;  %861 = vmatprep.subr.bf16.mxu0 %v955_v2 }
  0x3e   :  { %883 = vmatprep.subr.bf16.mxu1 %v956_v3 }
  0x40   :  { %862 = vmatpush3.bf16.msra.mxu0 %v957_v4 }
  0x41   :  { %884 = vmatpush3.bf16.msra.mxu1 %v958_v5 }
  0x43   :  { %669 = vmatmul.mubr.bf16.vlgmr.msra.gmra.mrb[4].mxu0 %v735_v7 }
  0x44   :  { %709 = vmatmul.mubr.bf16.vlgmr.msra.gmra.mrb[4].mxu1 %v737_v10 }
  0xf6   :  { %v819_v12 = vpop.f32.mrb[0].mxu0 }
  0xf7   :  { %v841_v13 = vpop.f32.mrb[0].mxu1  ;;  %v820_v14 = vpop.f32.mrb[1].mxu0 }
  0xf8   :  { %v842_v15 = vpop.f32.mrb[1].mxu1  ;;  %v821_v16 = vadd.f32 %v820_v14, %v819_v12  ;;  %v822_v18 = vpop.f32.mrb[2].mxu0 }
  0xf9   :  { %v843_v17 = vadd.f32 %v842_v15, %v841_v13  ;;  %v844_v19 = vpop.f32.mrb[2].mxu1  ;;  %v823_v20 = vpop.f32.mrb[3].mxu0 }
  0xfa   :  { %v845_v21 = vpop.f32.mrb[3].mxu1 }
  0xfb   :  { %v631_v22 = vadd.f32 %v843_v17, %v821_v16 }
 0x116   :  { %v863_v23 = vpop.f32.mrb[4].mxu0 }
 0x117   :  { %v885_v24 = vpop.f32.mrb[4].mxu1  ;;  %v864_v25 = vpop.f32.mrb[5].mxu0 }
 0x118   :  { %v886_v26 = vpop.f32.mrb[5].mxu1  ;;  %v865_v27 = vadd.f32 %v864_v25, %v863_v23  ;;  %v866_v29 = vpop.f32.mrb[6].mxu0 }
 0x119   :  { %v887_v28 = vadd.f32 %v886_v26, %v885_v24  ;;  %v888_v30 = vpop.f32.mrb[6].mxu1  ;;  %v867_v31 = vpop.f32.mrb[7].mxu0 }
 0x11a   :  { %v889_v32 = vpop.f32.mrb[7].mxu1  ;;  %v671_v33 = vadd.f32 %v865_v27, %v631_v22 }
 0x11c   :  { %v711_v34 = vadd.f32 %v887_v28, %v671_v33 }
 0x11e   :  { %v716_v35 = vand.u32 2147483647, %v711_v34  ;;  %vm720_vm0 = vcmp.ge.f32.partialorder %v711_v34, 0.0 }
 0x120   :  { %v717_v36 = vsub.f32 0.0, %v716_v35 }
 0x122   :  { %v718_v37 = vmul.f32 1.442695, %v717_v36 }
 0x124   :  { %963 = vpow2.f32 %v718_v37 }
 0x12e   :  { %v964_v38 = vpop.eup %963 }
 0x12f   :  { %v721_v39 = vadd.f32 1.0, %v964_v38 }
 0x131   :  { %965 = vrcp.f32 %v721_v39 }
 0x13b   :  { %v966_v40 = vpop.eup %965 }
 0x13c   :  { %v724_v41 = vmul.f32 %v966_v40, %v964_v38 }
 0x13e   :  { %v725_v42 = vsel %vm720_vm0, %v966_v40, %v724_v41 }
 0x13f   :  { %726 = vst [vmem:[%s1191_s2] sm:$0xff] %v725_v42 }

</bundles_post_ra>
